<compile_context>
chip_gen: v7x
topology: tpu7x:2x2x1
jax: 0.10.0
libtpu: 0.0.40
codegen_flags: <defaults>
</compile_context>

<pallas_src>
import jax
import jax.numpy as jnp
from jax.experimental import pallas as pl
from jax.experimental.pallas import tpu as pltpu

SOS_TOKEN = 0
EOS_TOKEN = 1
UNK_TOKEN = 2


# --------------------------------------------------------------------------
# Fused kernel: encoder GRU + decoder GRU (teacher forcing) + output layer
# --------------------------------------------------------------------------
def _seq_ae_kernel(xp_e_ref,    # (T*B, 3H) f32 encoder input projections (+ b_ih)
                   xp_d_ref,    # (T*B, 3H) f32 decoder input projections (+ b_ih)
                   mask_ref,    # (T*B, 1)  f32 1.0 for real tokens, 0.0 for pad
                   onehot_ref,  # (T*B, V)  f32 one-hot targets, pre-masked
                   whh_e_ref,   # (H, 3H)   f32 encoder recurrent weights (concat r,z,n)
                   bhh_e_ref,   # (1, 3H)   f32
                   whh_d_ref,   # (H, 3H)   f32 decoder recurrent weights
                   bhh_d_ref,   # (1, 3H)   f32
                   wout_ref,    # (H, V)    f32 output Linear weight (transposed)
                   bout_ref,    # (1, V)    f32
                   hlast_ref,   # out: (B, H)  encoder final hidden per sequence
                   loss_ref,    # out: (1, 1)  summed NLL over valid tokens
                   hs_ref):     # scratch: (T*B, H) decoder hidden states
    B, H = hlast_ref.shape
    TB = xp_e_ref.shape[0]
    T = TB // B

    whh_e = whh_e_ref[...]
    bhh_e = bhh_e_ref[...]
    whh_d = whh_d_ref[...]
    bhh_d = bhh_d_ref[...]

    def gru_step(xp, h, whh, bhh):
        # xp = x @ W_ih + b_ih (precomputed), gate order r, z, n (torch GRU).
        gh = jnp.dot(h, whh, preferred_element_type=jnp.float32) + bhh
        r = jax.nn.sigmoid(xp[:, 0:H] + gh[:, 0:H])
        z = jax.nn.sigmoid(xp[:, H:2 * H] + gh[:, H:2 * H])
        n = jnp.tanh(xp[:, 2 * H:3 * H] + r * gh[:, 2 * H:3 * H])
        return (1.0 - z) * n + z * h

    # ---- encoder recurrence (statically unrolled; only h @ W_hh per step) --
    h = jnp.zeros((B, H), jnp.float32)
    for t in range(T):
        rows = pl.ds(t * B, B)
        m = mask_ref[rows, :]
        h_new = gru_step(xp_e_ref[rows, :], h, whh_e, bhh_e)
        h = m * h_new + (1.0 - m) * h          # freeze h past each sequence end
    hlast_ref[...] = h

    # ---- decoder recurrence (teacher forcing), hidden states -> scratch ----
    for t in range(T):
        rows = pl.ds(t * B, B)
        m = mask_ref[rows, :]
        h_new = gru_step(xp_d_ref[rows, :], h, whh_d, bhh_d)
        h = m * h_new + (1.0 - m) * h
        hs_ref[rows, :] = h

    # ---- batched output projection + log-softmax + masked NLL --------------
    logits = jnp.dot(hs_ref[...], wout_ref[...],
                     preferred_element_type=jnp.float32) + bout_ref[...]
    mx = jnp.max(logits, axis=-1, keepdims=True)
    lse = jnp.log(jnp.sum(jnp.exp(logits - mx), axis=-1, keepdims=True)) + mx
    logp = logits - lse                                    # LogSoftmax(dim=1)
    per_tok = -jnp.sum(onehot_ref[...] * logp, axis=-1, keepdims=True)
    loss_ref[...] = jnp.sum(per_tok, axis=0, keepdims=True)


# --------------------------------------------------------------------------
# Jitted wrapper: pre-gather embeddings, hoist input projections, one launch
# --------------------------------------------------------------------------
def _autoencode_batch_impl(tokens, lengths, enc, dec):
    """tokens: (B, T) int32 (padded), lengths: (B,) int32.
    Returns (encoder last hidden (B, H), summed NLL, valid-token count)."""
    B, T = tokens.shape
    H = enc["emb"].shape[1]
    V = dec["wout"].shape[1]

    pos = jnp.arange(T, dtype=jnp.int32)[None, :]
    mask = (pos < lengths[:, None]).astype(jnp.float32)             # (B, T)

    sos = jnp.full((B, 1), SOS_TOKEN, jnp.int32)
    dec_in = jnp.concatenate([sos, tokens[:, :-1]], axis=1)         # (B, T)

    x_enc = jnp.take(enc["emb"], tokens, axis=0)                    # (B, T, H)
    x_dec = jnp.maximum(jnp.take(dec["emb"], dec_in, axis=0), 0.0)  # relu(emb)

    # Hoisted non-recurrent input projections: ONE batched matmul per RNN.
    xp_enc = jnp.einsum("bth,hg->btg", x_enc, enc["wih"],
                        precision="highest") + enc["bih"]
    xp_dec = jnp.einsum("bth,hg->btg", x_dec, dec["wih"],
                        precision="highest") + dec["bih"]

    onehot = jax.nn.one_hot(tokens, V, dtype=jnp.float32) * mask[..., None]

    def time_major(a):        # (B, T, C) -> (T*B, C), row index = t*B + b
        return jnp.transpose(a, (1, 0, 2)).reshape(T * B, a.shape[-1])

    hlast, loss = pl.pallas_call(
        _seq_ae_kernel,
        out_shape=(jax.ShapeDtypeStruct((B, H), jnp.float32),
                   jax.ShapeDtypeStruct((1, 1), jnp.float32)),
        scratch_shapes=[pltpu.VMEM((T * B, H), jnp.float32)],
    )(time_major(xp_enc), time_major(xp_dec),
      jnp.transpose(mask, (1, 0)).reshape(T * B, 1), time_major(onehot),
      enc["whh"], enc["bhh"], dec["whh"], dec["bhh"],
      dec["wout"], dec["bout"])

    ct = jnp.sum(lengths).astype(jnp.float32)
    return hlast, loss[0, 0], ct


_autoencode_batch = jax.jit(_autoencode_batch_impl)


# --------------------------------------------------------------------------
# Parameters & host-side module (mirrors seqAutoencoder)
# --------------------------------------------------------------------------
def _init_gru_params(key, num_rows, hidden_size):
    kemb, kwih, kwhh, kbih, kbhh = jax.random.split(key, 5)
    bound = 1.0 / float(hidden_size) ** 0.5
    emb = jax.random.normal(kemb, (num_rows, hidden_size), jnp.float32)
    wih = jax.random.uniform(kwih, (hidden_size, 3 * hidden_size),
                             jnp.float32, -bound, bound)
    whh = jax.random.uniform(kwhh, (hidden_size, 3 * hidden_size),
                             jnp.float32, -bound, bound)
    bih = jax.random.uniform(kbih, (1, 3 * hidden_size), jnp.float32, -bound, bound)
    bhh = jax.random.uniform(kbhh, (1, 3 * hidden_size), jnp.float32, -bound, bound)
    return dict(emb=emb, wih=wih, whh=whh, bih=bih, bhh=bhh)


class SeqAutoencoder:
    """JAX/Pallas port of the PyTorch seqAutoencoder (teacher-forcing path)."""

    def __init__(self, config, key):
        self.vocab_size = config["vocab_size"]
        self.hidden_size = config["hidden_size"]
        self.output_size = config["output_size"]
        self.max_length = config["max_length"]
        self.teacher_enforcing = config["teacher_enforcing"]

        kenc, kdec, kout = jax.random.split(key, 3)
        H = self.hidden_size
        self.enc = _init_gru_params(kenc, self.vocab_size, H)
        self.dec = _init_gru_params(kdec, self.output_size, H)
        kw, kb = jax.random.split(kout)
        bound = 1.0 / float(H) ** 0.5
        self.dec["wout"] = jax.random.uniform(kw, (H, self.output_size),
                                              jnp.float32, -bound, bound)
        self.dec["bout"] = jax.random.uniform(kb, (1, self.output_size),
                                              jnp.float32, -bound, bound)

    # host-side preprocessing, mirroring the torch module
    def seq2letter(self, sequence):
        return [s for s in sequence]

    def prepare_seq(self, seq_letters, letter_to_idx):
        idxs = [letter_to_idx.get(w, UNK_TOKEN) for w in seq_letters]
        idxs.append(EOS_TOKEN)
        return jnp.asarray(idxs, dtype=jnp.int32)

    def aggregate(self, last_hiddens, aggregate="MEAN", keep_dim=False):
        if aggregate == "MAX":
            return jnp.max(last_hiddens, axis=0, keepdims=keep_dim)
        if aggregate == "SUM":
            return jnp.sum(last_hiddens, axis=0, keepdims=keep_dim)
        return jnp.mean(last_hiddens, axis=0, keepdims=keep_dim)

    def forward(self, drug_seq, letter_to_idx):
        if not self.teacher_enforcing:
            # TODO(synk): greedy (non-teacher-forcing) decode with EOS early
            # break is data-dependent control flow; not implemented in-kernel.
            raise NotImplementedError("only teacher_enforcing=True supported")

        seqs = [self.prepare_seq(self.seq2letter(s), letter_to_idx)
                for s in drug_seq]
        lengths = [int(s.shape[0]) for s in seqs]
        B = len(seqs)
        T_pad = max(self.max_length, max(lengths))   # single compile for all calls
        tokens = jnp.full((B, T_pad), EOS_TOKEN, jnp.int32)
        for b, s in enumerate(seqs):
            tokens = tokens.at[b, :lengths[b]].set(s)
        lengths_arr = jnp.asarray(lengths, jnp.int32)

        hlast, loss_sum, ct = _autoencode_batch(tokens, lengths_arr,
                                                self.enc, self.dec)
        embeds = self.aggregate(hlast, "MEAN", keep_dim=False)
        return embeds, loss_sum / ct


# --------------------------------------------------------------------------
# Pure-JAX reference (per-sequence, per-token, mirrors the PyTorch loops)
# --------------------------------------------------------------------------
def _ref_gru_step(x, h, p):
    H = h.shape[1]
    gi = jnp.dot(x, p["wih"], precision="highest") + p["bih"]
    gh = jnp.dot(h, p["whh"], precision="highest") + p["bhh"]
    r = jax.nn.sigmoid(gi[:, :H] + gh[:, :H])
    z = jax.nn.sigmoid(gi[:, H:2 * H] + gh[:, H:2 * H])
    n = jnp.tanh(gi[:, 2 * H:] + r * gh[:, 2 * H:])
    return (1.0 - z) * n + z * h


def _ref_forward(model, drug_seq, letter_to_idx):
    enc, dec = model.enc, model.dec
    H = model.hidden_size
    total = jnp.zeros((), jnp.float32)
    ct = 0
    lasts = []
    for s in drug_seq:
        toks = model.prepare_seq(model.seq2letter(s), letter_to_idx)
        L = int(toks.shape[0])
        h = jnp.zeros((1, H), jnp.float32)
        for t in range(L):
            x = enc["emb"][toks[t]][None, :]
            h = _ref_gru_step(x, h, enc)
        lasts.append(h)
        hd = h
        dinp = jnp.concatenate([jnp.array([SOS_TOKEN], jnp.int32), toks[:-1]])
        for t in range(L):
            x = jnp.maximum(dec["emb"][dinp[t]][None, :], 0.0)
            hd = _ref_gru_step(x, hd, dec)
            logits = jnp.dot(hd, dec["wout"], precision="highest") + dec["bout"]
            logp = jax.nn.log_softmax(logits, axis=1)
            total = total + (-logp[0, toks[t]])
            ct += 1
    embeds = jnp.mean(jnp.concatenate(lasts, axis=0), axis=0)
    return embeds, total / ct


if __name__ == "__main__":
    key = jax.random.PRNGKey(0)

    # amino-acid alphabet -> indices (SOS=0, EOS=1, UNK=2, letters from 3)
    letters = "ACDEFGHIKLMNPQRSTVWY"
    letter_to_idx = {c: i + 3 for i, c in enumerate(letters)}
    vocab_size = len(letters) + 4          # 24

    config = dict(vocab_size=vocab_size, hidden_size=32, output_size=vocab_size,
                  max_length=10, teacher_enforcing=True)
    model = SeqAutoencoder(config, key)

    # two small "protein" sequences (7 letters + EOS = 8 tokens, padded to 10)
    drug_seq = ["MKVLAGH", "ACDWYTS"]

    embeds, loss = model.forward(drug_seq, letter_to_idx)
    jax.block_until_ready((embeds, loss))

    ref_embeds, ref_loss = _ref_forward(model, drug_seq, letter_to_idx)
    assert embeds.shape == (config["hidden_size"],)
    assert jnp.allclose(embeds, ref_embeds, atol=2e-2, rtol=2e-2), "embeds mismatch"
    assert jnp.allclose(loss, ref_loss, atol=2e-2, rtol=2e-2), "loss mismatch"

    print("KERNEL_OK")
</pallas_src>

<mosaic_0001>
module attributes {stable_mosaic.version = 11 : i64} {
  func.func @_seq_ae_kernel(%arg0: memref<20x96xf32, #tpu.memory_space<vmem>>, %arg1: memref<20x96xf32, #tpu.memory_space<vmem>>, %arg2: memref<20x1xf32, #tpu.memory_space<vmem>>, %arg3: memref<20x24xf32, #tpu.memory_space<vmem>>, %arg4: memref<32x96xf32, #tpu.memory_space<vmem>>, %arg5: memref<1x96xf32, #tpu.memory_space<vmem>>, %arg6: memref<32x96xf32, #tpu.memory_space<vmem>>, %arg7: memref<1x96xf32, #tpu.memory_space<vmem>>, %arg8: memref<32x24xf32, #tpu.memory_space<vmem>>, %arg9: memref<1x24xf32, #tpu.memory_space<vmem>>, %arg10: memref<2x32xf32, #tpu.memory_space<vmem>>, %arg11: memref<1x1xf32, #tpu.memory_space<vmem>>, %arg12: memref<20x32xf32, #tpu.memory_space<vmem>>) attributes {dimension_semantics = [], scalar_prefetch = 0 : i64, scratch_operands = 1 : i64, tpu.core_type = #tpu.core_type<tc>} {
    %c0 = arith.constant 0 : index
    %c0_0 = arith.constant 0 : index
    %0 = vector.load %arg4[%c0, %c0_0] : memref<32x96xf32, #tpu.memory_space<vmem>>, vector<32x96xf32>
    %c0_1 = arith.constant 0 : index
    %c0_2 = arith.constant 0 : index
    %1 = vector.load %arg5[%c0_1, %c0_2] : memref<1x96xf32, #tpu.memory_space<vmem>>, vector<1x96xf32>
    %c0_3 = arith.constant 0 : index
    %c0_4 = arith.constant 0 : index
    %2 = vector.load %arg6[%c0_3, %c0_4] : memref<32x96xf32, #tpu.memory_space<vmem>>, vector<32x96xf32>
    %c0_5 = arith.constant 0 : index
    %c0_6 = arith.constant 0 : index
    %3 = vector.load %arg7[%c0_5, %c0_6] : memref<1x96xf32, #tpu.memory_space<vmem>>, vector<1x96xf32>
    %cst = arith.constant 0.000000e+00 : f32
    %4 = vector.broadcast %cst : f32 to vector<2x32xf32>
    %c0_7 = arith.constant 0 : index
    %c0_8 = arith.constant 0 : index
    %5 = vector.load %arg2[%c0_7, %c0_8] : memref<20x1xf32, #tpu.memory_space<vmem>>, vector<2x1xf32>
    %c0_9 = arith.constant 0 : index
    %c0_10 = arith.constant 0 : index
    %6 = vector.load %arg0[%c0_9, %c0_10] : memref<20x96xf32, #tpu.memory_space<vmem>>, vector<2x96xf32>
    %cst_11 = arith.constant dense<0.000000e+00> : vector<2x96xf32>
    %7 = tpu.matmul %4, %0, %cst_11 {dimension_numbers = #tpu.dot_dimension_numbers<[1], [0], [0], [1], [0, 0, 1, 1], [], []>} : vector<2x32xf32>, vector<32x96xf32>, vector<2x96xf32> -> vector<2x96xf32>
    %8 = vector.broadcast %1 : vector<1x96xf32> to vector<2x96xf32>
    %9 = arith.addf %7, %8 : vector<2x96xf32>
    %10 = vector.extract_strided_slice %6 {offsets = [0, 0], sizes = [2, 32], strides = [1, 1]} : vector<2x96xf32> to vector<2x32xf32>
    %11 = vector.extract_strided_slice %9 {offsets = [0, 0], sizes = [2, 32], strides = [1, 1]} : vector<2x96xf32> to vector<2x32xf32>
    %12 = arith.addf %10, %11 : vector<2x32xf32>
    %13 = arith.negf %12 : vector<2x32xf32>
    %14 = math.exp %13 : vector<2x32xf32>
    %cst_12 = arith.constant 1.000000e+00 : f32
    %15 = vector.broadcast %cst_12 : f32 to vector<2x32xf32>
    %16 = arith.addf %15, %14 : vector<2x32xf32>
    %17 = arith.divf %15, %16 : vector<2x32xf32>
    %18 = vector.extract_strided_slice %6 {offsets = [0, 32], sizes = [2, 32], strides = [1, 1]} : vector<2x96xf32> to vector<2x32xf32>
    %19 = vector.extract_strided_slice %9 {offsets = [0, 32], sizes = [2, 32], strides = [1, 1]} : vector<2x96xf32> to vector<2x32xf32>
    %20 = arith.addf %18, %19 : vector<2x32xf32>
    %21 = arith.negf %20 : vector<2x32xf32>
    %22 = math.exp %21 : vector<2x32xf32>
    %cst_13 = arith.constant 1.000000e+00 : f32
    %23 = vector.broadcast %cst_13 : f32 to vector<2x32xf32>
    %24 = arith.addf %23, %22 : vector<2x32xf32>
    %25 = arith.divf %23, %24 : vector<2x32xf32>
    %26 = vector.extract_strided_slice %6 {offsets = [0, 64], sizes = [2, 32], strides = [1, 1]} : vector<2x96xf32> to vector<2x32xf32>
    %27 = vector.extract_strided_slice %9 {offsets = [0, 64], sizes = [2, 32], strides = [1, 1]} : vector<2x96xf32> to vector<2x32xf32>
    %28 = arith.mulf %17, %27 : vector<2x32xf32>
    %29 = arith.addf %26, %28 : vector<2x32xf32>
    %30 = math.tanh %29 : vector<2x32xf32>
    %cst_14 = arith.constant 1.000000e+00 : f32
    %31 = vector.broadcast %cst_14 : f32 to vector<2x32xf32>
    %32 = arith.subf %31, %25 : vector<2x32xf32>
    %33 = arith.mulf %32, %30 : vector<2x32xf32>
    %34 = arith.mulf %25, %4 : vector<2x32xf32>
    %35 = arith.addf %33, %34 : vector<2x32xf32>
    %36 = vector.broadcast %5 : vector<2x1xf32> to vector<2x32xf32>
    %37 = arith.mulf %36, %35 : vector<2x32xf32>
    %cst_15 = arith.constant 1.000000e+00 : f32
    %38 = vector.broadcast %cst_15 : f32 to vector<2x1xf32>
    %39 = arith.subf %38, %5 : vector<2x1xf32>
    %40 = vector.broadcast %39 : vector<2x1xf32> to vector<2x32xf32>
    %41 = arith.mulf %40, %4 : vector<2x32xf32>
    %42 = arith.addf %37, %41 : vector<2x32xf32>
    %c2 = arith.constant 2 : index
    %c0_16 = arith.constant 0 : index
    %43 = vector.load %arg2[%c2, %c0_16] : memref<20x1xf32, #tpu.memory_space<vmem>>, vector<2x1xf32>
    %c2_17 = arith.constant 2 : index
    %c0_18 = arith.constant 0 : index
    %44 = vector.load %arg0[%c2_17, %c0_18] : memref<20x96xf32, #tpu.memory_space<vmem>>, vector<2x96xf32>
    %cst_19 = arith.constant dense<0.000000e+00> : vector<2x96xf32>
    %45 = tpu.matmul %42, %0, %cst_19 {dimension_numbers = #tpu.dot_dimension_numbers<[1], [0], [0], [1], [0, 0, 1, 1], [], []>} : vector<2x32xf32>, vector<32x96xf32>, vector<2x96xf32> -> vector<2x96xf32>
    %46 = vector.broadcast %1 : vector<1x96xf32> to vector<2x96xf32>
    %47 = arith.addf %45, %46 : vector<2x96xf32>
    %48 = vector.extract_strided_slice %44 {offsets = [0, 0], sizes = [2, 32], strides = [1, 1]} : vector<2x96xf32> to vector<2x32xf32>
    %49 = vector.extract_strided_slice %47 {offsets = [0, 0], sizes = [2, 32], strides = [1, 1]} : vector<2x96xf32> to vector<2x32xf32>
    %50 = arith.addf %48, %49 : vector<2x32xf32>
    %51 = arith.negf %50 : vector<2x32xf32>
    %52 = math.exp %51 : vector<2x32xf32>
    %cst_20 = arith.constant 1.000000e+00 : f32
    %53 = vector.broadcast %cst_20 : f32 to vector<2x32xf32>
    %54 = arith.addf %53, %52 : vector<2x32xf32>
    %55 = arith.divf %53, %54 : vector<2x32xf32>
    %56 = vector.extract_strided_slice %44 {offsets = [0, 32], sizes = [2, 32], strides = [1, 1]} : vector<2x96xf32> to vector<2x32xf32>
    %57 = vector.extract_strided_slice %47 {offsets = [0, 32], sizes = [2, 32], strides = [1, 1]} : vector<2x96xf32> to vector<2x32xf32>
    %58 = arith.addf %56, %57 : vector<2x32xf32>
    %59 = arith.negf %58 : vector<2x32xf32>
    %60 = math.exp %59 : vector<2x32xf32>
    %cst_21 = arith.constant 1.000000e+00 : f32
    %61 = vector.broadcast %cst_21 : f32 to vector<2x32xf32>
    %62 = arith.addf %61, %60 : vector<2x32xf32>
    %63 = arith.divf %61, %62 : vector<2x32xf32>
    %64 = vector.extract_strided_slice %44 {offsets = [0, 64], sizes = [2, 32], strides = [1, 1]} : vector<2x96xf32> to vector<2x32xf32>
    %65 = vector.extract_strided_slice %47 {offsets = [0, 64], sizes = [2, 32], strides = [1, 1]} : vector<2x96xf32> to vector<2x32xf32>
    %66 = arith.mulf %55, %65 : vector<2x32xf32>
    %67 = arith.addf %64, %66 : vector<2x32xf32>
    %68 = math.tanh %67 : vector<2x32xf32>
    %cst_22 = arith.constant 1.000000e+00 : f32
    %69 = vector.broadcast %cst_22 : f32 to vector<2x32xf32>
    %70 = arith.subf %69, %63 : vector<2x32xf32>
    %71 = arith.mulf %70, %68 : vector<2x32xf32>
    %72 = arith.mulf %63, %42 : vector<2x32xf32>
    %73 = arith.addf %71, %72 : vector<2x32xf32>
    %74 = vector.broadcast %43 : vector<2x1xf32> to vector<2x32xf32>
    %75 = arith.mulf %74, %73 : vector<2x32xf32>
    %cst_23 = arith.constant 1.000000e+00 : f32
    %76 = vector.broadcast %cst_23 : f32 to vector<2x1xf32>
    %77 = arith.subf %76, %43 : vector<2x1xf32>
    %78 = vector.broadcast %77 : vector<2x1xf32> to vector<2x32xf32>
    %79 = arith.mulf %78, %42 : vector<2x32xf32>
    %80 = arith.addf %75, %79 : vector<2x32xf32>
    %c4 = arith.constant 4 : index
    %c0_24 = arith.constant 0 : index
    %81 = vector.load %arg2[%c4, %c0_24] : memref<20x1xf32, #tpu.memory_space<vmem>>, vector<2x1xf32>
    %c4_25 = arith.constant 4 : index
    %c0_26 = arith.constant 0 : index
    %82 = vector.load %arg0[%c4_25, %c0_26] : memref<20x96xf32, #tpu.memory_space<vmem>>, vector<2x96xf32>
    %cst_27 = arith.constant dense<0.000000e+00> : vector<2x96xf32>
    %83 = tpu.matmul %80, %0, %cst_27 {dimension_numbers = #tpu.dot_dimension_numbers<[1], [0], [0], [1], [0, 0, 1, 1], [], []>} : vector<2x32xf32>, vector<32x96xf32>, vector<2x96xf32> -> vector<2x96xf32>
    %84 = vector.broadcast %1 : vector<1x96xf32> to vector<2x96xf32>
    %85 = arith.addf %83, %84 : vector<2x96xf32>
    %86 = vector.extract_strided_slice %82 {offsets = [0, 0], sizes = [2, 32], strides = [1, 1]} : vector<2x96xf32> to vector<2x32xf32>
    %87 = vector.extract_strided_slice %85 {offsets = [0, 0], sizes = [2, 32], strides = [1, 1]} : vector<2x96xf32> to vector<2x32xf32>
    %88 = arith.addf %86, %87 : vector<2x32xf32>
    %89 = arith.negf %88 : vector<2x32xf32>
    %90 = math.exp %89 : vector<2x32xf32>
    %cst_28 = arith.constant 1.000000e+00 : f32
    %91 = vector.broadcast %cst_28 : f32 to vector<2x32xf32>
    %92 = arith.addf %91, %90 : vector<2x32xf32>
    %93 = arith.divf %91, %92 : vector<2x32xf32>
    %94 = vector.extract_strided_slice %82 {offsets = [0, 32], sizes = [2, 32], strides = [1, 1]} : vector<2x96xf32> to vector<2x32xf32>
    %95 = vector.extract_strided_slice %85 {offsets = [0, 32], sizes = [2, 32], strides = [1, 1]} : vector<2x96xf32> to vector<2x32xf32>
    %96 = arith.addf %94, %95 : vector<2x32xf32>
    %97 = arith.negf %96 : vector<2x32xf32>
    %98 = math.exp %97 : vector<2x32xf32>
    %cst_29 = arith.constant 1.000000e+00 : f32
    %99 = vector.broadcast %cst_29 : f32 to vector<2x32xf32>
    %100 = arith.addf %99, %98 : vector<2x32xf32>
    %101 = arith.divf %99, %100 : vector<2x32xf32>
    %102 = vector.extract_strided_slice %82 {offsets = [0, 64], sizes = [2, 32], strides = [1, 1]} : vector<2x96xf32> to vector<2x32xf32>
    %103 = vector.extract_strided_slice %85 {offsets = [0, 64], sizes = [2, 32], strides = [1, 1]} : vector<2x96xf32> to vector<2x32xf32>
    %104 = arith.mulf %93, %103 : vector<2x32xf32>
    %105 = arith.addf %102, %104 : vector<2x32xf32>
    %106 = math.tanh %105 : vector<2x32xf32>
    %cst_30 = arith.constant 1.000000e+00 : f32
    %107 = vector.broadcast %cst_30 : f32 to vector<2x32xf32>
    %108 = arith.subf %107, %101 : vector<2x32xf32>
    %109 = arith.mulf %108, %106 : vector<2x32xf32>
    %110 = arith.mulf %101, %80 : vector<2x32xf32>
    %111 = arith.addf %109, %110 : vector<2x32xf32>
    %112 = vector.broadcast %81 : vector<2x1xf32> to vector<2x32xf32>
    %113 = arith.mulf %112, %111 : vector<2x32xf32>
    %cst_31 = arith.constant 1.000000e+00 : f32
    %114 = vector.broadcast %cst_31 : f32 to vector<2x1xf32>
    %115 = arith.subf %114, %81 : vector<2x1xf32>
    %116 = vector.broadcast %115 : vector<2x1xf32> to vector<2x32xf32>
    %117 = arith.mulf %116, %80 : vector<2x32xf32>
    %118 = arith.addf %113, %117 : vector<2x32xf32>
    %c6 = arith.constant 6 : index
    %c0_32 = arith.constant 0 : index
    %119 = vector.load %arg2[%c6, %c0_32] : memref<20x1xf32, #tpu.memory_space<vmem>>, vector<2x1xf32>
    %c6_33 = arith.constant 6 : index
    %c0_34 = arith.constant 0 : index
    %120 = vector.load %arg0[%c6_33, %c0_34] : memref<20x96xf32, #tpu.memory_space<vmem>>, vector<2x96xf32>
    %cst_35 = arith.constant dense<0.000000e+00> : vector<2x96xf32>
    %121 = tpu.matmul %118, %0, %cst_35 {dimension_numbers = #tpu.dot_dimension_numbers<[1], [0], [0], [1], [0, 0, 1, 1], [], []>} : vector<2x32xf32>, vector<32x96xf32>, vector<2x96xf32> -> vector<2x96xf32>
    %122 = vector.broadcast %1 : vector<1x96xf32> to vector<2x96xf32>
    %123 = arith.addf %121, %122 : vector<2x96xf32>
    %124 = vector.extract_strided_slice %120 {offsets = [0, 0], sizes = [2, 32], strides = [1, 1]} : vector<2x96xf32> to vector<2x32xf32>
    %125 = vector.extract_strided_slice %123 {offsets = [0, 0], sizes = [2, 32], strides = [1, 1]} : vector<2x96xf32> to vector<2x32xf32>
    %126 = arith.addf %124, %125 : vector<2x32xf32>
    %127 = arith.negf %126 : vector<2x32xf32>
    %128 = math.exp %127 : vector<2x32xf32>
    %cst_36 = arith.constant 1.000000e+00 : f32
    %129 = vector.broadcast %cst_36 : f32 to vector<2x32xf32>
    %130 = arith.addf %129, %128 : vector<2x32xf32>
    %131 = arith.divf %129, %130 : vector<2x32xf32>
    %132 = vector.extract_strided_slice %120 {offsets = [0, 32], sizes = [2, 32], strides = [1, 1]} : vector<2x96xf32> to vector<2x32xf32>
    %133 = vector.extract_strided_slice %123 {offsets = [0, 32], sizes = [2, 32], strides = [1, 1]} : vector<2x96xf32> to vector<2x32xf32>
    %134 = arith.addf %132, %133 : vector<2x32xf32>
    %135 = arith.negf %134 : vector<2x32xf32>
    %136 = math.exp %135 : vector<2x32xf32>
    %cst_37 = arith.constant 1.000000e+00 : f32
    %137 = vector.broadcast %cst_37 : f32 to vector<2x32xf32>
    %138 = arith.addf %137, %136 : vector<2x32xf32>
    %139 = arith.divf %137, %138 : vector<2x32xf32>
    %140 = vector.extract_strided_slice %120 {offsets = [0, 64], sizes = [2, 32], strides = [1, 1]} : vector<2x96xf32> to vector<2x32xf32>
    %141 = vector.extract_strided_slice %123 {offsets = [0, 64], sizes = [2, 32], strides = [1, 1]} : vector<2x96xf32> to vector<2x32xf32>
    %142 = arith.mulf %131, %141 : vector<2x32xf32>
    %143 = arith.addf %140, %142 : vector<2x32xf32>
    %144 = math.tanh %143 : vector<2x32xf32>
    %cst_38 = arith.constant 1.000000e+00 : f32
    %145 = vector.broadcast %cst_38 : f32 to vector<2x32xf32>
    %146 = arith.subf %145, %139 : vector<2x32xf32>
    %147 = arith.mulf %146, %144 : vector<2x32xf32>
    %148 = arith.mulf %139, %118 : vector<2x32xf32>
    %149 = arith.addf %147, %148 : vector<2x32xf32>
    %150 = vector.broadcast %119 : vector<2x1xf32> to vector<2x32xf32>
    %151 = arith.mulf %150, %149 : vector<2x32xf32>
    %cst_39 = arith.constant 1.000000e+00 : f32
    %152 = vector.broadcast %cst_39 : f32 to vector<2x1xf32>
    %153 = arith.subf %152, %119 : vector<2x1xf32>
    %154 = vector.broadcast %153 : vector<2x1xf32> to vector<2x32xf32>
    %155 = arith.mulf %154, %118 : vector<2x32xf32>
    %156 = arith.addf %151, %155 : vector<2x32xf32>
    %c8 = arith.constant 8 : index
    %c0_40 = arith.constant 0 : index
    %157 = vector.load %arg2[%c8, %c0_40] : memref<20x1xf32, #tpu.memory_space<vmem>>, vector<2x1xf32>
    %c8_41 = arith.constant 8 : index
    %c0_42 = arith.constant 0 : index
    %158 = vector.load %arg0[%c8_41, %c0_42] : memref<20x96xf32, #tpu.memory_space<vmem>>, vector<2x96xf32>
    %cst_43 = arith.constant dense<0.000000e+00> : vector<2x96xf32>
    %159 = tpu.matmul %156, %0, %cst_43 {dimension_numbers = #tpu.dot_dimension_numbers<[1], [0], [0], [1], [0, 0, 1, 1], [], []>} : vector<2x32xf32>, vector<32x96xf32>, vector<2x96xf32> -> vector<2x96xf32>
    %160 = vector.broadcast %1 : vector<1x96xf32> to vector<2x96xf32>
    %161 = arith.addf %159, %160 : vector<2x96xf32>
    %162 = vector.extract_strided_slice %158 {offsets = [0, 0], sizes = [2, 32], strides = [1, 1]} : vector<2x96xf32> to vector<2x32xf32>
    %163 = vector.extract_strided_slice %161 {offsets = [0, 0], sizes = [2, 32], strides = [1, 1]} : vector<2x96xf32> to vector<2x32xf32>
    %164 = arith.addf %162, %163 : vector<2x32xf32>
    %165 = arith.negf %164 : vector<2x32xf32>
    %166 = math.exp %165 : vector<2x32xf32>
    %cst_44 = arith.constant 1.000000e+00 : f32
    %167 = vector.broadcast %cst_44 : f32 to vector<2x32xf32>
    %168 = arith.addf %167, %166 : vector<2x32xf32>
    %169 = arith.divf %167, %168 : vector<2x32xf32>
    %170 = vector.extract_strided_slice %158 {offsets = [0, 32], sizes = [2, 32], strides = [1, 1]} : vector<2x96xf32> to vector<2x32xf32>
    %171 = vector.extract_strided_slice %161 {offsets = [0, 32], sizes = [2, 32], strides = [1, 1]} : vector<2x96xf32> to vector<2x32xf32>
    %172 = arith.addf %170, %171 : vector<2x32xf32>
    %173 = arith.negf %172 : vector<2x32xf32>
    %174 = math.exp %173 : vector<2x32xf32>
    %cst_45 = arith.constant 1.000000e+00 : f32
    %175 = vector.broadcast %cst_45 : f32 to vector<2x32xf32>
    %176 = arith.addf %175, %174 : vector<2x32xf32>
    %177 = arith.divf %175, %176 : vector<2x32xf32>
    %178 = vector.extract_strided_slice %158 {offsets = [0, 64], sizes = [2, 32], strides = [1, 1]} : vector<2x96xf32> to vector<2x32xf32>
    %179 = vector.extract_strided_slice %161 {offsets = [0, 64], sizes = [2, 32], strides = [1, 1]} : vector<2x96xf32> to vector<2x32xf32>
    %180 = arith.mulf %169, %179 : vector<2x32xf32>
    %181 = arith.addf %178, %180 : vector<2x32xf32>
    %182 = math.tanh %181 : vector<2x32xf32>
    %cst_46 = arith.constant 1.000000e+00 : f32
    %183 = vector.broadcast %cst_46 : f32 to vector<2x32xf32>
    %184 = arith.subf %183, %177 : vector<2x32xf32>
    %185 = arith.mulf %184, %182 : vector<2x32xf32>
    %186 = arith.mulf %177, %156 : vector<2x32xf32>
    %187 = arith.addf %185, %186 : vector<2x32xf32>
    %188 = vector.broadcast %157 : vector<2x1xf32> to vector<2x32xf32>
    %189 = arith.mulf %188, %187 : vector<2x32xf32>
    %cst_47 = arith.constant 1.000000e+00 : f32
    %190 = vector.broadcast %cst_47 : f32 to vector<2x1xf32>
    %191 = arith.subf %190, %157 : vector<2x1xf32>
    %192 = vector.broadcast %191 : vector<2x1xf32> to vector<2x32xf32>
    %193 = arith.mulf %192, %156 : vector<2x32xf32>
    %194 = arith.addf %189, %193 : vector<2x32xf32>
    %c10 = arith.constant 10 : index
    %c0_48 = arith.constant 0 : index
    %195 = vector.load %arg2[%c10, %c0_48] : memref<20x1xf32, #tpu.memory_space<vmem>>, vector<2x1xf32>
    %c10_49 = arith.constant 10 : index
    %c0_50 = arith.constant 0 : index
    %196 = vector.load %arg0[%c10_49, %c0_50] : memref<20x96xf32, #tpu.memory_space<vmem>>, vector<2x96xf32>
    %cst_51 = arith.constant dense<0.000000e+00> : vector<2x96xf32>
    %197 = tpu.matmul %194, %0, %cst_51 {dimension_numbers = #tpu.dot_dimension_numbers<[1], [0], [0], [1], [0, 0, 1, 1], [], []>} : vector<2x32xf32>, vector<32x96xf32>, vector<2x96xf32> -> vector<2x96xf32>
    %198 = vector.broadcast %1 : vector<1x96xf32> to vector<2x96xf32>
    %199 = arith.addf %197, %198 : vector<2x96xf32>
    %200 = vector.extract_strided_slice %196 {offsets = [0, 0], sizes = [2, 32], strides = [1, 1]} : vector<2x96xf32> to vector<2x32xf32>
    %201 = vector.extract_strided_slice %199 {offsets = [0, 0], sizes = [2, 32], strides = [1, 1]} : vector<2x96xf32> to vector<2x32xf32>
    %202 = arith.addf %200, %201 : vector<2x32xf32>
    %203 = arith.negf %202 : vector<2x32xf32>
    %204 = math.exp %203 : vector<2x32xf32>
    %cst_52 = arith.constant 1.000000e+00 : f32
    %205 = vector.broadcast %cst_52 : f32 to vector<2x32xf32>
    %206 = arith.addf %205, %204 : vector<2x32xf32>
    %207 = arith.divf %205, %206 : vector<2x32xf32>
    %208 = vector.extract_strided_slice %196 {offsets = [0, 32], sizes = [2, 32], strides = [1, 1]} : vector<2x96xf32> to vector<2x32xf32>
    %209 = vector.extract_strided_slice %199 {offsets = [0, 32], sizes = [2, 32], strides = [1, 1]} : vector<2x96xf32> to vector<2x32xf32>
    %210 = arith.addf %208, %209 : vector<2x32xf32>
    %211 = arith.negf %210 : vector<2x32xf32>
    %212 = math.exp %211 : vector<2x32xf32>
    %cst_53 = arith.constant 1.000000e+00 : f32
    %213 = vector.broadcast %cst_53 : f32 to vector<2x32xf32>
    %214 = arith.addf %213, %212 : vector<2x32xf32>
    %215 = arith.divf %213, %214 : vector<2x32xf32>
    %216 = vector.extract_strided_slice %196 {offsets = [0, 64], sizes = [2, 32], strides = [1, 1]} : vector<2x96xf32> to vector<2x32xf32>
    %217 = vector.extract_strided_slice %199 {offsets = [0, 64], sizes = [2, 32], strides = [1, 1]} : vector<2x96xf32> to vector<2x32xf32>
    %218 = arith.mulf %207, %217 : vector<2x32xf32>
    %219 = arith.addf %216, %218 : vector<2x32xf32>
    %220 = math.tanh %219 : vector<2x32xf32>
    %cst_54 = arith.constant 1.000000e+00 : f32
    %221 = vector.broadcast %cst_54 : f32 to vector<2x32xf32>
    %222 = arith.subf %221, %215 : vector<2x32xf32>
    %223 = arith.mulf %222, %220 : vector<2x32xf32>
    %224 = arith.mulf %215, %194 : vector<2x32xf32>
    %225 = arith.addf %223, %224 : vector<2x32xf32>
    %226 = vector.broadcast %195 : vector<2x1xf32> to vector<2x32xf32>
    %227 = arith.mulf %226, %225 : vector<2x32xf32>
    %cst_55 = arith.constant 1.000000e+00 : f32
    %228 = vector.broadcast %cst_55 : f32 to vector<2x1xf32>
    %229 = arith.subf %228, %195 : vector<2x1xf32>
    %230 = vector.broadcast %229 : vector<2x1xf32> to vector<2x32xf32>
    %231 = arith.mulf %230, %194 : vector<2x32xf32>
    %232 = arith.addf %227, %231 : vector<2x32xf32>
    %c12 = arith.constant 12 : index
    %c0_56 = arith.constant 0 : index
    %233 = vector.load %arg2[%c12, %c0_56] : memref<20x1xf32, #tpu.memory_space<vmem>>, vector<2x1xf32>
    %c12_57 = arith.constant 12 : index
    %c0_58 = arith.constant 0 : index
    %234 = vector.load %arg0[%c12_57, %c0_58] : memref<20x96xf32, #tpu.memory_space<vmem>>, vector<2x96xf32>
    %cst_59 = arith.constant dense<0.000000e+00> : vector<2x96xf32>
    %235 = tpu.matmul %232, %0, %cst_59 {dimension_numbers = #tpu.dot_dimension_numbers<[1], [0], [0], [1], [0, 0, 1, 1], [], []>} : vector<2x32xf32>, vector<32x96xf32>, vector<2x96xf32> -> vector<2x96xf32>
    %236 = vector.broadcast %1 : vector<1x96xf32> to vector<2x96xf32>
    %237 = arith.addf %235, %236 : vector<2x96xf32>
    %238 = vector.extract_strided_slice %234 {offsets = [0, 0], sizes = [2, 32], strides = [1, 1]} : vector<2x96xf32> to vector<2x32xf32>
    %239 = vector.extract_strided_slice %237 {offsets = [0, 0], sizes = [2, 32], strides = [1, 1]} : vector<2x96xf32> to vector<2x32xf32>
    %240 = arith.addf %238, %239 : vector<2x32xf32>
    %241 = arith.negf %240 : vector<2x32xf32>
    %242 = math.exp %241 : vector<2x32xf32>
    %cst_60 = arith.constant 1.000000e+00 : f32
    %243 = vector.broadcast %cst_60 : f32 to vector<2x32xf32>
    %244 = arith.addf %243, %242 : vector<2x32xf32>
    %245 = arith.divf %243, %244 : vector<2x32xf32>
    %246 = vector.extract_strided_slice %234 {offsets = [0, 32], sizes = [2, 32], strides = [1, 1]} : vector<2x96xf32> to vector<2x32xf32>
    %247 = vector.extract_strided_slice %237 {offsets = [0, 32], sizes = [2, 32], strides = [1, 1]} : vector<2x96xf32> to vector<2x32xf32>
    %248 = arith.addf %246, %247 : vector<2x32xf32>
    %249 = arith.negf %248 : vector<2x32xf32>
    %250 = math.exp %249 : vector<2x32xf32>
    %cst_61 = arith.constant 1.000000e+00 : f32
    %251 = vector.broadcast %cst_61 : f32 to vector<2x32xf32>
    %252 = arith.addf %251, %250 : vector<2x32xf32>
    %253 = arith.divf %251, %252 : vector<2x32xf32>
    %254 = vector.extract_strided_slice %234 {offsets = [0, 64], sizes = [2, 32], strides = [1, 1]} : vector<2x96xf32> to vector<2x32xf32>
    %255 = vector.extract_strided_slice %237 {offsets = [0, 64], sizes = [2, 32], strides = [1, 1]} : vector<2x96xf32> to vector<2x32xf32>
    %256 = arith.mulf %245, %255 : vector<2x32xf32>
    %257 = arith.addf %254, %256 : vector<2x32xf32>
    %258 = math.tanh %257 : vector<2x32xf32>
    %cst_62 = arith.constant 1.000000e+00 : f32
    %259 = vector.broadcast %cst_62 : f32 to vector<2x32xf32>
    %260 = arith.subf %259, %253 : vector<2x32xf32>
    %261 = arith.mulf %260, %258 : vector<2x32xf32>
    %262 = arith.mulf %253, %232 : vector<2x32xf32>
    %263 = arith.addf %261, %262 : vector<2x32xf32>
    %264 = vector.broadcast %233 : vector<2x1xf32> to vector<2x32xf32>
    %265 = arith.mulf %264, %263 : vector<2x32xf32>
    %cst_63 = arith.constant 1.000000e+00 : f32
    %266 = vector.broadcast %cst_63 : f32 to vector<2x1xf32>
    %267 = arith.subf %266, %233 : vector<2x1xf32>
    %268 = vector.broadcast %267 : vector<2x1xf32> to vector<2x32xf32>
    %269 = arith.mulf %268, %232 : vector<2x32xf32>
    %270 = arith.addf %265, %269 : vector<2x32xf32>
    %c14 = arith.constant 14 : index
    %c0_64 = arith.constant 0 : index
    %271 = vector.load %arg2[%c14, %c0_64] : memref<20x1xf32, #tpu.memory_space<vmem>>, vector<2x1xf32>
    %c14_65 = arith.constant 14 : index
    %c0_66 = arith.constant 0 : index
    %272 = vector.load %arg0[%c14_65, %c0_66] : memref<20x96xf32, #tpu.memory_space<vmem>>, vector<2x96xf32>
    %cst_67 = arith.constant dense<0.000000e+00> : vector<2x96xf32>
    %273 = tpu.matmul %270, %0, %cst_67 {dimension_numbers = #tpu.dot_dimension_numbers<[1], [0], [0], [1], [0, 0, 1, 1], [], []>} : vector<2x32xf32>, vector<32x96xf32>, vector<2x96xf32> -> vector<2x96xf32>
    %274 = vector.broadcast %1 : vector<1x96xf32> to vector<2x96xf32>
    %275 = arith.addf %273, %274 : vector<2x96xf32>
    %276 = vector.extract_strided_slice %272 {offsets = [0, 0], sizes = [2, 32], strides = [1, 1]} : vector<2x96xf32> to vector<2x32xf32>
    %277 = vector.extract_strided_slice %275 {offsets = [0, 0], sizes = [2, 32], strides = [1, 1]} : vector<2x96xf32> to vector<2x32xf32>
    %278 = arith.addf %276, %277 : vector<2x32xf32>
    %279 = arith.negf %278 : vector<2x32xf32>
    %280 = math.exp %279 : vector<2x32xf32>
    %cst_68 = arith.constant 1.000000e+00 : f32
    %281 = vector.broadcast %cst_68 : f32 to vector<2x32xf32>
    %282 = arith.addf %281, %280 : vector<2x32xf32>
    %283 = arith.divf %281, %282 : vector<2x32xf32>
    %284 = vector.extract_strided_slice %272 {offsets = [0, 32], sizes = [2, 32], strides = [1, 1]} : vector<2x96xf32> to vector<2x32xf32>
    %285 = vector.extract_strided_slice %275 {offsets = [0, 32], sizes = [2, 32], strides = [1, 1]} : vector<2x96xf32> to vector<2x32xf32>
    %286 = arith.addf %284, %285 : vector<2x32xf32>
    %287 = arith.negf %286 : vector<2x32xf32>
    %288 = math.exp %287 : vector<2x32xf32>
    %cst_69 = arith.constant 1.000000e+00 : f32
    %289 = vector.broadcast %cst_69 : f32 to vector<2x32xf32>
    %290 = arith.addf %289, %288 : vector<2x32xf32>
    %291 = arith.divf %289, %290 : vector<2x32xf32>
    %292 = vector.extract_strided_slice %272 {offsets = [0, 64], sizes = [2, 32], strides = [1, 1]} : vector<2x96xf32> to vector<2x32xf32>
    %293 = vector.extract_strided_slice %275 {offsets = [0, 64], sizes = [2, 32], strides = [1, 1]} : vector<2x96xf32> to vector<2x32xf32>
    %294 = arith.mulf %283, %293 : vector<2x32xf32>
    %295 = arith.addf %292, %294 : vector<2x32xf32>
    %296 = math.tanh %295 : vector<2x32xf32>
    %cst_70 = arith.constant 1.000000e+00 : f32
    %297 = vector.broadcast %cst_70 : f32 to vector<2x32xf32>
    %298 = arith.subf %297, %291 : vector<2x32xf32>
    %299 = arith.mulf %298, %296 : vector<2x32xf32>
    %300 = arith.mulf %291, %270 : vector<2x32xf32>
    %301 = arith.addf %299, %300 : vector<2x32xf32>
    %302 = vector.broadcast %271 : vector<2x1xf32> to vector<2x32xf32>
    %303 = arith.mulf %302, %301 : vector<2x32xf32>
    %cst_71 = arith.constant 1.000000e+00 : f32
    %304 = vector.broadcast %cst_71 : f32 to vector<2x1xf32>
    %305 = arith.subf %304, %271 : vector<2x1xf32>
    %306 = vector.broadcast %305 : vector<2x1xf32> to vector<2x32xf32>
    %307 = arith.mulf %306, %270 : vector<2x32xf32>
    %308 = arith.addf %303, %307 : vector<2x32xf32>
    %c16 = arith.constant 16 : index
    %c0_72 = arith.constant 0 : index
    %309 = vector.load %arg2[%c16, %c0_72] : memref<20x1xf32, #tpu.memory_space<vmem>>, vector<2x1xf32>
    %c16_73 = arith.constant 16 : index
    %c0_74 = arith.constant 0 : index
    %310 = vector.load %arg0[%c16_73, %c0_74] : memref<20x96xf32, #tpu.memory_space<vmem>>, vector<2x96xf32>
    %cst_75 = arith.constant dense<0.000000e+00> : vector<2x96xf32>
    %311 = tpu.matmul %308, %0, %cst_75 {dimension_numbers = #tpu.dot_dimension_numbers<[1], [0], [0], [1], [0, 0, 1, 1], [], []>} : vector<2x32xf32>, vector<32x96xf32>, vector<2x96xf32> -> vector<2x96xf32>
    %312 = vector.broadcast %1 : vector<1x96xf32> to vector<2x96xf32>
    %313 = arith.addf %311, %312 : vector<2x96xf32>
    %314 = vector.extract_strided_slice %310 {offsets = [0, 0], sizes = [2, 32], strides = [1, 1]} : vector<2x96xf32> to vector<2x32xf32>
    %315 = vector.extract_strided_slice %313 {offsets = [0, 0], sizes = [2, 32], strides = [1, 1]} : vector<2x96xf32> to vector<2x32xf32>
    %316 = arith.addf %314, %315 : vector<2x32xf32>
    %317 = arith.negf %316 : vector<2x32xf32>
    %318 = math.exp %317 : vector<2x32xf32>
    %cst_76 = arith.constant 1.000000e+00 : f32
    %319 = vector.broadcast %cst_76 : f32 to vector<2x32xf32>
    %320 = arith.addf %319, %318 : vector<2x32xf32>
    %321 = arith.divf %319, %320 : vector<2x32xf32>
    %322 = vector.extract_strided_slice %310 {offsets = [0, 32], sizes = [2, 32], strides = [1, 1]} : vector<2x96xf32> to vector<2x32xf32>
    %323 = vector.extract_strided_slice %313 {offsets = [0, 32], sizes = [2, 32], strides = [1, 1]} : vector<2x96xf32> to vector<2x32xf32>
    %324 = arith.addf %322, %323 : vector<2x32xf32>
    %325 = arith.negf %324 : vector<2x32xf32>
    %326 = math.exp %325 : vector<2x32xf32>
    %cst_77 = arith.constant 1.000000e+00 : f32
    %327 = vector.broadcast %cst_77 : f32 to vector<2x32xf32>
    %328 = arith.addf %327, %326 : vector<2x32xf32>
    %329 = arith.divf %327, %328 : vector<2x32xf32>
    %330 = vector.extract_strided_slice %310 {offsets = [0, 64], sizes = [2, 32], strides = [1, 1]} : vector<2x96xf32> to vector<2x32xf32>
    %331 = vector.extract_strided_slice %313 {offsets = [0, 64], sizes = [2, 32], strides = [1, 1]} : vector<2x96xf32> to vector<2x32xf32>
    %332 = arith.mulf %321, %331 : vector<2x32xf32>
    %333 = arith.addf %330, %332 : vector<2x32xf32>
    %334 = math.tanh %333 : vector<2x32xf32>
    %cst_78 = arith.constant 1.000000e+00 : f32
    %335 = vector.broadcast %cst_78 : f32 to vector<2x32xf32>
    %336 = arith.subf %335, %329 : vector<2x32xf32>
    %337 = arith.mulf %336, %334 : vector<2x32xf32>
    %338 = arith.mulf %329, %308 : vector<2x32xf32>
    %339 = arith.addf %337, %338 : vector<2x32xf32>
    %340 = vector.broadcast %309 : vector<2x1xf32> to vector<2x32xf32>
    %341 = arith.mulf %340, %339 : vector<2x32xf32>
    %cst_79 = arith.constant 1.000000e+00 : f32
    %342 = vector.broadcast %cst_79 : f32 to vector<2x1xf32>
    %343 = arith.subf %342, %309 : vector<2x1xf32>
    %344 = vector.broadcast %343 : vector<2x1xf32> to vector<2x32xf32>
    %345 = arith.mulf %344, %308 : vector<2x32xf32>
    %346 = arith.addf %341, %345 : vector<2x32xf32>
    %c18 = arith.constant 18 : index
    %c0_80 = arith.constant 0 : index
    %347 = vector.load %arg2[%c18, %c0_80] : memref<20x1xf32, #tpu.memory_space<vmem>>, vector<2x1xf32>
    %c18_81 = arith.constant 18 : index
    %c0_82 = arith.constant 0 : index
    %348 = vector.load %arg0[%c18_81, %c0_82] : memref<20x96xf32, #tpu.memory_space<vmem>>, vector<2x96xf32>
    %cst_83 = arith.constant dense<0.000000e+00> : vector<2x96xf32>
    %349 = tpu.matmul %346, %0, %cst_83 {dimension_numbers = #tpu.dot_dimension_numbers<[1], [0], [0], [1], [0, 0, 1, 1], [], []>} : vector<2x32xf32>, vector<32x96xf32>, vector<2x96xf32> -> vector<2x96xf32>
    %350 = vector.broadcast %1 : vector<1x96xf32> to vector<2x96xf32>
    %351 = arith.addf %349, %350 : vector<2x96xf32>
    %352 = vector.extract_strided_slice %348 {offsets = [0, 0], sizes = [2, 32], strides = [1, 1]} : vector<2x96xf32> to vector<2x32xf32>
    %353 = vector.extract_strided_slice %351 {offsets = [0, 0], sizes = [2, 32], strides = [1, 1]} : vector<2x96xf32> to vector<2x32xf32>
    %354 = arith.addf %352, %353 : vector<2x32xf32>
    %355 = arith.negf %354 : vector<2x32xf32>
    %356 = math.exp %355 : vector<2x32xf32>
    %cst_84 = arith.constant 1.000000e+00 : f32
    %357 = vector.broadcast %cst_84 : f32 to vector<2x32xf32>
    %358 = arith.addf %357, %356 : vector<2x32xf32>
    %359 = arith.divf %357, %358 : vector<2x32xf32>
    %360 = vector.extract_strided_slice %348 {offsets = [0, 32], sizes = [2, 32], strides = [1, 1]} : vector<2x96xf32> to vector<2x32xf32>
    %361 = vector.extract_strided_slice %351 {offsets = [0, 32], sizes = [2, 32], strides = [1, 1]} : vector<2x96xf32> to vector<2x32xf32>
    %362 = arith.addf %360, %361 : vector<2x32xf32>
    %363 = arith.negf %362 : vector<2x32xf32>
    %364 = math.exp %363 : vector<2x32xf32>
    %cst_85 = arith.constant 1.000000e+00 : f32
    %365 = vector.broadcast %cst_85 : f32 to vector<2x32xf32>
    %366 = arith.addf %365, %364 : vector<2x32xf32>
    %367 = arith.divf %365, %366 : vector<2x32xf32>
    %368 = vector.extract_strided_slice %348 {offsets = [0, 64], sizes = [2, 32], strides = [1, 1]} : vector<2x96xf32> to vector<2x32xf32>
    %369 = vector.extract_strided_slice %351 {offsets = [0, 64], sizes = [2, 32], strides = [1, 1]} : vector<2x96xf32> to vector<2x32xf32>
    %370 = arith.mulf %359, %369 : vector<2x32xf32>
    %371 = arith.addf %368, %370 : vector<2x32xf32>
    %372 = math.tanh %371 : vector<2x32xf32>
    %cst_86 = arith.constant 1.000000e+00 : f32
    %373 = vector.broadcast %cst_86 : f32 to vector<2x32xf32>
    %374 = arith.subf %373, %367 : vector<2x32xf32>
    %375 = arith.mulf %374, %372 : vector<2x32xf32>
    %376 = arith.mulf %367, %346 : vector<2x32xf32>
    %377 = arith.addf %375, %376 : vector<2x32xf32>
    %378 = vector.broadcast %347 : vector<2x1xf32> to vector<2x32xf32>
    %379 = arith.mulf %378, %377 : vector<2x32xf32>
    %cst_87 = arith.constant 1.000000e+00 : f32
    %380 = vector.broadcast %cst_87 : f32 to vector<2x1xf32>
    %381 = arith.subf %380, %347 : vector<2x1xf32>
    %382 = vector.broadcast %381 : vector<2x1xf32> to vector<2x32xf32>
    %383 = arith.mulf %382, %346 : vector<2x32xf32>
    %384 = arith.addf %379, %383 : vector<2x32xf32>
    %c0_88 = arith.constant 0 : index
    %c0_89 = arith.constant 0 : index
    %385 = vector.load %arg10[%c0_88, %c0_89] : memref<2x32xf32, #tpu.memory_space<vmem>>, vector<2x32xf32>
    tpu.vector_store %arg10[%c0_88, %c0_89], %384 {strides = array<i32>} : memref<2x32xf32, #tpu.memory_space<vmem>>, vector<2x32xf32>,
    %c0_90 = arith.constant 0 : index
    %c0_91 = arith.constant 0 : index
    %386 = vector.load %arg2[%c0_90, %c0_91] : memref<20x1xf32, #tpu.memory_space<vmem>>, vector<2x1xf32>
    %c0_92 = arith.constant 0 : index
    %c0_93 = arith.constant 0 : index
    %387 = vector.load %arg1[%c0_92, %c0_93] : memref<20x96xf32, #tpu.memory_space<vmem>>, vector<2x96xf32>
    %cst_94 = arith.constant dense<0.000000e+00> : vector<2x96xf32>
    %388 = tpu.matmul %384, %2, %cst_94 {dimension_numbers = #tpu.dot_dimension_numbers<[1], [0], [0], [1], [0, 0, 1, 1], [], []>} : vector<2x32xf32>, vector<32x96xf32>, vector<2x96xf32> -> vector<2x96xf32>
    %389 = vector.broadcast %3 : vector<1x96xf32> to vector<2x96xf32>
    %390 = arith.addf %388, %389 : vector<2x96xf32>
    %391 = vector.extract_strided_slice %387 {offsets = [0, 0], sizes = [2, 32], strides = [1, 1]} : vector<2x96xf32> to vector<2x32xf32>
    %392 = vector.extract_strided_slice %390 {offsets = [0, 0], sizes = [2, 32], strides = [1, 1]} : vector<2x96xf32> to vector<2x32xf32>
    %393 = arith.addf %391, %392 : vector<2x32xf32>
    %394 = arith.negf %393 : vector<2x32xf32>
    %395 = math.exp %394 : vector<2x32xf32>
    %cst_95 = arith.constant 1.000000e+00 : f32
    %396 = vector.broadcast %cst_95 : f32 to vector<2x32xf32>
    %397 = arith.addf %396, %395 : vector<2x32xf32>
    %398 = arith.divf %396, %397 : vector<2x32xf32>
    %399 = vector.extract_strided_slice %387 {offsets = [0, 32], sizes = [2, 32], strides = [1, 1]} : vector<2x96xf32> to vector<2x32xf32>
    %400 = vector.extract_strided_slice %390 {offsets = [0, 32], sizes = [2, 32], strides = [1, 1]} : vector<2x96xf32> to vector<2x32xf32>
    %401 = arith.addf %399, %400 : vector<2x32xf32>
    %402 = arith.negf %401 : vector<2x32xf32>
    %403 = math.exp %402 : vector<2x32xf32>
    %cst_96 = arith.constant 1.000000e+00 : f32
    %404 = vector.broadcast %cst_96 : f32 to vector<2x32xf32>
    %405 = arith.addf %404, %403 : vector<2x32xf32>
    %406 = arith.divf %404, %405 : vector<2x32xf32>
    %407 = vector.extract_strided_slice %387 {offsets = [0, 64], sizes = [2, 32], strides = [1, 1]} : vector<2x96xf32> to vector<2x32xf32>
    %408 = vector.extract_strided_slice %390 {offsets = [0, 64], sizes = [2, 32], strides = [1, 1]} : vector<2x96xf32> to vector<2x32xf32>
    %409 = arith.mulf %398, %408 : vector<2x32xf32>
    %410 = arith.addf %407, %409 : vector<2x32xf32>
    %411 = math.tanh %410 : vector<2x32xf32>
    %cst_97 = arith.constant 1.000000e+00 : f32
    %412 = vector.broadcast %cst_97 : f32 to vector<2x32xf32>
    %413 = arith.subf %412, %406 : vector<2x32xf32>
    %414 = arith.mulf %413, %411 : vector<2x32xf32>
    %415 = arith.mulf %406, %384 : vector<2x32xf32>
    %416 = arith.addf %414, %415 : vector<2x32xf32>
    %417 = vector.broadcast %386 : vector<2x1xf32> to vector<2x32xf32>
    %418 = arith.mulf %417, %416 : vector<2x32xf32>
    %cst_98 = arith.constant 1.000000e+00 : f32
    %419 = vector.broadcast %cst_98 : f32 to vector<2x1xf32>
    %420 = arith.subf %419, %386 : vector<2x1xf32>
    %421 = vector.broadcast %420 : vector<2x1xf32> to vector<2x32xf32>
    %422 = arith.mulf %421, %384 : vector<2x32xf32>
    %423 = arith.addf %418, %422 : vector<2x32xf32>
    %c0_99 = arith.constant 0 : index
    %c0_100 = arith.constant 0 : index
    %424 = vector.load %arg12[%c0_99, %c0_100] : memref<20x32xf32, #tpu.memory_space<vmem>>, vector<2x32xf32>
    tpu.vector_store %arg12[%c0_99, %c0_100], %423 {strides = array<i32>} : memref<20x32xf32, #tpu.memory_space<vmem>>, vector<2x32xf32>,
    %c2_101 = arith.constant 2 : index
    %c0_102 = arith.constant 0 : index
    %425 = vector.load %arg2[%c2_101, %c0_102] : memref<20x1xf32, #tpu.memory_space<vmem>>, vector<2x1xf32>
    %c2_103 = arith.constant 2 : index
    %c0_104 = arith.constant 0 : index
    %426 = vector.load %arg1[%c2_103, %c0_104] : memref<20x96xf32, #tpu.memory_space<vmem>>, vector<2x96xf32>
    %cst_105 = arith.constant dense<0.000000e+00> : vector<2x96xf32>
    %427 = tpu.matmul %423, %2, %cst_105 {dimension_numbers = #tpu.dot_dimension_numbers<[1], [0], [0], [1], [0, 0, 1, 1], [], []>} : vector<2x32xf32>, vector<32x96xf32>, vector<2x96xf32> -> vector<2x96xf32>
    %428 = vector.broadcast %3 : vector<1x96xf32> to vector<2x96xf32>
    %429 = arith.addf %427, %428 : vector<2x96xf32>
    %430 = vector.extract_strided_slice %426 {offsets = [0, 0], sizes = [2, 32], strides = [1, 1]} : vector<2x96xf32> to vector<2x32xf32>
    %431 = vector.extract_strided_slice %429 {offsets = [0, 0], sizes = [2, 32], strides = [1, 1]} : vector<2x96xf32> to vector<2x32xf32>
    %432 = arith.addf %430, %431 : vector<2x32xf32>
    %433 = arith.negf %432 : vector<2x32xf32>
    %434 = math.exp %433 : vector<2x32xf32>
    %cst_106 = arith.constant 1.000000e+00 : f32
    %435 = vector.broadcast %cst_106 : f32 to vector<2x32xf32>
    %436 = arith.addf %435, %434 : vector<2x32xf32>
    %437 = arith.divf %435, %436 : vector<2x32xf32>
    %438 = vector.extract_strided_slice %426 {offsets = [0, 32], sizes = [2, 32], strides = [1, 1]} : vector<2x96xf32> to vector<2x32xf32>
    %439 = vector.extract_strided_slice %429 {offsets = [0, 32], sizes = [2, 32], strides = [1, 1]} : vector<2x96xf32> to vector<2x32xf32>
    %440 = arith.addf %438, %439 : vector<2x32xf32>
    %441 = arith.negf %440 : vector<2x32xf32>
    %442 = math.exp %441 : vector<2x32xf32>
    %cst_107 = arith.constant 1.000000e+00 : f32
    %443 = vector.broadcast %cst_107 : f32 to vector<2x32xf32>
    %444 = arith.addf %443, %442 : vector<2x32xf32>
    %445 = arith.divf %443, %444 : vector<2x32xf32>
    %446 = vector.extract_strided_slice %426 {offsets = [0, 64], sizes = [2, 32], strides = [1, 1]} : vector<2x96xf32> to vector<2x32xf32>
    %447 = vector.extract_strided_slice %429 {offsets = [0, 64], sizes = [2, 32], strides = [1, 1]} : vector<2x96xf32> to vector<2x32xf32>
    %448 = arith.mulf %437, %447 : vector<2x32xf32>
    %449 = arith.addf %446, %448 : vector<2x32xf32>
    %450 = math.tanh %449 : vector<2x32xf32>
    %cst_108 = arith.constant 1.000000e+00 : f32
    %451 = vector.broadcast %cst_108 : f32 to vector<2x32xf32>
    %452 = arith.subf %451, %445 : vector<2x32xf32>
    %453 = arith.mulf %452, %450 : vector<2x32xf32>
    %454 = arith.mulf %445, %423 : vector<2x32xf32>
    %455 = arith.addf %453, %454 : vector<2x32xf32>
    %456 = vector.broadcast %425 : vector<2x1xf32> to vector<2x32xf32>
    %457 = arith.mulf %456, %455 : vector<2x32xf32>
    %cst_109 = arith.constant 1.000000e+00 : f32
    %458 = vector.broadcast %cst_109 : f32 to vector<2x1xf32>
    %459 = arith.subf %458, %425 : vector<2x1xf32>
    %460 = vector.broadcast %459 : vector<2x1xf32> to vector<2x32xf32>
    %461 = arith.mulf %460, %423 : vector<2x32xf32>
    %462 = arith.addf %457, %461 : vector<2x32xf32>
    %c2_110 = arith.constant 2 : index
    %c0_111 = arith.constant 0 : index
    %463 = vector.load %arg12[%c2_110, %c0_111] : memref<20x32xf32, #tpu.memory_space<vmem>>, vector<2x32xf32>
    tpu.vector_store %arg12[%c2_110, %c0_111], %462 {strides = array<i32>} : memref<20x32xf32, #tpu.memory_space<vmem>>, vector<2x32xf32>,
    %c4_112 = arith.constant 4 : index
    %c0_113 = arith.constant 0 : index
    %464 = vector.load %arg2[%c4_112, %c0_113] : memref<20x1xf32, #tpu.memory_space<vmem>>, vector<2x1xf32>
    %c4_114 = arith.constant 4 : index
    %c0_115 = arith.constant 0 : index
    %465 = vector.load %arg1[%c4_114, %c0_115] : memref<20x96xf32, #tpu.memory_space<vmem>>, vector<2x96xf32>
    %cst_116 = arith.constant dense<0.000000e+00> : vector<2x96xf32>
    %466 = tpu.matmul %462, %2, %cst_116 {dimension_numbers = #tpu.dot_dimension_numbers<[1], [0], [0], [1], [0, 0, 1, 1], [], []>} : vector<2x32xf32>, vector<32x96xf32>, vector<2x96xf32> -> vector<2x96xf32>
    %467 = vector.broadcast %3 : vector<1x96xf32> to vector<2x96xf32>
    %468 = arith.addf %466, %467 : vector<2x96xf32>
    %469 = vector.extract_strided_slice %465 {offsets = [0, 0], sizes = [2, 32], strides = [1, 1]} : vector<2x96xf32> to vector<2x32xf32>
    %470 = vector.extract_strided_slice %468 {offsets = [0, 0], sizes = [2, 32], strides = [1, 1]} : vector<2x96xf32> to vector<2x32xf32>
    %471 = arith.addf %469, %470 : vector<2x32xf32>
    %472 = arith.negf %471 : vector<2x32xf32>
    %473 = math.exp %472 : vector<2x32xf32>
    %cst_117 = arith.constant 1.000000e+00 : f32
    %474 = vector.broadcast %cst_117 : f32 to vector<2x32xf32>
    %475 = arith.addf %474, %473 : vector<2x32xf32>
    %476 = arith.divf %474, %475 : vector<2x32xf32>
    %477 = vector.extract_strided_slice %465 {offsets = [0, 32], sizes = [2, 32], strides = [1, 1]} : vector<2x96xf32> to vector<2x32xf32>
    %478 = vector.extract_strided_slice %468 {offsets = [0, 32], sizes = [2, 32], strides = [1, 1]} : vector<2x96xf32> to vector<2x32xf32>
    %479 = arith.addf %477, %478 : vector<2x32xf32>
    %480 = arith.negf %479 : vector<2x32xf32>
    %481 = math.exp %480 : vector<2x32xf32>
    %cst_118 = arith.constant 1.000000e+00 : f32
    %482 = vector.broadcast %cst_118 : f32 to vector<2x32xf32>
    %483 = arith.addf %482, %481 : vector<2x32xf32>
    %484 = arith.divf %482, %483 : vector<2x32xf32>
    %485 = vector.extract_strided_slice %465 {offsets = [0, 64], sizes = [2, 32], strides = [1, 1]} : vector<2x96xf32> to vector<2x32xf32>
    %486 = vector.extract_strided_slice %468 {offsets = [0, 64], sizes = [2, 32], strides = [1, 1]} : vector<2x96xf32> to vector<2x32xf32>
    %487 = arith.mulf %476, %486 : vector<2x32xf32>
    %488 = arith.addf %485, %487 : vector<2x32xf32>
    %489 = math.tanh %488 : vector<2x32xf32>
    %cst_119 = arith.constant 1.000000e+00 : f32
    %490 = vector.broadcast %cst_119 : f32 to vector<2x32xf32>
    %491 = arith.subf %490, %484 : vector<2x32xf32>
    %492 = arith.mulf %491, %489 : vector<2x32xf32>
    %493 = arith.mulf %484, %462 : vector<2x32xf32>
    %494 = arith.addf %492, %493 : vector<2x32xf32>
    %495 = vector.broadcast %464 : vector<2x1xf32> to vector<2x32xf32>
    %496 = arith.mulf %495, %494 : vector<2x32xf32>
    %cst_120 = arith.constant 1.000000e+00 : f32
    %497 = vector.broadcast %cst_120 : f32 to vector<2x1xf32>
    %498 = arith.subf %497, %464 : vector<2x1xf32>
    %499 = vector.broadcast %498 : vector<2x1xf32> to vector<2x32xf32>
    %500 = arith.mulf %499, %462 : vector<2x32xf32>
    %501 = arith.addf %496, %500 : vector<2x32xf32>
    %c4_121 = arith.constant 4 : index
    %c0_122 = arith.constant 0 : index
    %502 = vector.load %arg12[%c4_121, %c0_122] : memref<20x32xf32, #tpu.memory_space<vmem>>, vector<2x32xf32>
    tpu.vector_store %arg12[%c4_121, %c0_122], %501 {strides = array<i32>} : memref<20x32xf32, #tpu.memory_space<vmem>>, vector<2x32xf32>,
    %c6_123 = arith.constant 6 : index
    %c0_124 = arith.constant 0 : index
    %503 = vector.load %arg2[%c6_123, %c0_124] : memref<20x1xf32, #tpu.memory_space<vmem>>, vector<2x1xf32>
    %c6_125 = arith.constant 6 : index
    %c0_126 = arith.constant 0 : index
    %504 = vector.load %arg1[%c6_125, %c0_126] : memref<20x96xf32, #tpu.memory_space<vmem>>, vector<2x96xf32>
    %cst_127 = arith.constant dense<0.000000e+00> : vector<2x96xf32>
    %505 = tpu.matmul %501, %2, %cst_127 {dimension_numbers = #tpu.dot_dimension_numbers<[1], [0], [0], [1], [0, 0, 1, 1], [], []>} : vector<2x32xf32>, vector<32x96xf32>, vector<2x96xf32> -> vector<2x96xf32>
    %506 = vector.broadcast %3 : vector<1x96xf32> to vector<2x96xf32>
    %507 = arith.addf %505, %506 : vector<2x96xf32>
    %508 = vector.extract_strided_slice %504 {offsets = [0, 0], sizes = [2, 32], strides = [1, 1]} : vector<2x96xf32> to vector<2x32xf32>
    %509 = vector.extract_strided_slice %507 {offsets = [0, 0], sizes = [2, 32], strides = [1, 1]} : vector<2x96xf32> to vector<2x32xf32>
    %510 = arith.addf %508, %509 : vector<2x32xf32>
    %511 = arith.negf %510 : vector<2x32xf32>
    %512 = math.exp %511 : vector<2x32xf32>
    %cst_128 = arith.constant 1.000000e+00 : f32
    %513 = vector.broadcast %cst_128 : f32 to vector<2x32xf32>
    %514 = arith.addf %513, %512 : vector<2x32xf32>
    %515 = arith.divf %513, %514 : vector<2x32xf32>
    %516 = vector.extract_strided_slice %504 {offsets = [0, 32], sizes = [2, 32], strides = [1, 1]} : vector<2x96xf32> to vector<2x32xf32>
    %517 = vector.extract_strided_slice %507 {offsets = [0, 32], sizes = [2, 32], strides = [1, 1]} : vector<2x96xf32> to vector<2x32xf32>
    %518 = arith.addf %516, %517 : vector<2x32xf32>
    %519 = arith.negf %518 : vector<2x32xf32>
    %520 = math.exp %519 : vector<2x32xf32>
    %cst_129 = arith.constant 1.000000e+00 : f32
    %521 = vector.broadcast %cst_129 : f32 to vector<2x32xf32>
    %522 = arith.addf %521, %520 : vector<2x32xf32>
    %523 = arith.divf %521, %522 : vector<2x32xf32>
    %524 = vector.extract_strided_slice %504 {offsets = [0, 64], sizes = [2, 32], strides = [1, 1]} : vector<2x96xf32> to vector<2x32xf32>
    %525 = vector.extract_strided_slice %507 {offsets = [0, 64], sizes = [2, 32], strides = [1, 1]} : vector<2x96xf32> to vector<2x32xf32>
    %526 = arith.mulf %515, %525 : vector<2x32xf32>
    %527 = arith.addf %524, %526 : vector<2x32xf32>
    %528 = math.tanh %527 : vector<2x32xf32>
    %cst_130 = arith.constant 1.000000e+00 : f32
    %529 = vector.broadcast %cst_130 : f32 to vector<2x32xf32>
    %530 = arith.subf %529, %523 : vector<2x32xf32>
    %531 = arith.mulf %530, %528 : vector<2x32xf32>
    %532 = arith.mulf %523, %501 : vector<2x32xf32>
    %533 = arith.addf %531, %532 : vector<2x32xf32>
    %534 = vector.broadcast %503 : vector<2x1xf32> to vector<2x32xf32>
    %535 = arith.mulf %534, %533 : vector<2x32xf32>
    %cst_131 = arith.constant 1.000000e+00 : f32
    %536 = vector.broadcast %cst_131 : f32 to vector<2x1xf32>
    %537 = arith.subf %536, %503 : vector<2x1xf32>
    %538 = vector.broadcast %537 : vector<2x1xf32> to vector<2x32xf32>
    %539 = arith.mulf %538, %501 : vector<2x32xf32>
    %540 = arith.addf %535, %539 : vector<2x32xf32>
    %c6_132 = arith.constant 6 : index
    %c0_133 = arith.constant 0 : index
    %541 = vector.load %arg12[%c6_132, %c0_133] : memref<20x32xf32, #tpu.memory_space<vmem>>, vector<2x32xf32>
    tpu.vector_store %arg12[%c6_132, %c0_133], %540 {strides = array<i32>} : memref<20x32xf32, #tpu.memory_space<vmem>>, vector<2x32xf32>,
    %c8_134 = arith.constant 8 : index
    %c0_135 = arith.constant 0 : index
    %542 = vector.load %arg2[%c8_134, %c0_135] : memref<20x1xf32, #tpu.memory_space<vmem>>, vector<2x1xf32>
    %c8_136 = arith.constant 8 : index
    %c0_137 = arith.constant 0 : index
    %543 = vector.load %arg1[%c8_136, %c0_137] : memref<20x96xf32, #tpu.memory_space<vmem>>, vector<2x96xf32>
    %cst_138 = arith.constant dense<0.000000e+00> : vector<2x96xf32>
    %544 = tpu.matmul %540, %2, %cst_138 {dimension_numbers = #tpu.dot_dimension_numbers<[1], [0], [0], [1], [0, 0, 1, 1], [], []>} : vector<2x32xf32>, vector<32x96xf32>, vector<2x96xf32> -> vector<2x96xf32>
    %545 = vector.broadcast %3 : vector<1x96xf32> to vector<2x96xf32>
    %546 = arith.addf %544, %545 : vector<2x96xf32>
    %547 = vector.extract_strided_slice %543 {offsets = [0, 0], sizes = [2, 32], strides = [1, 1]} : vector<2x96xf32> to vector<2x32xf32>
    %548 = vector.extract_strided_slice %546 {offsets = [0, 0], sizes = [2, 32], strides = [1, 1]} : vector<2x96xf32> to vector<2x32xf32>
    %549 = arith.addf %547, %548 : vector<2x32xf32>
    %550 = arith.negf %549 : vector<2x32xf32>
    %551 = math.exp %550 : vector<2x32xf32>
    %cst_139 = arith.constant 1.000000e+00 : f32
    %552 = vector.broadcast %cst_139 : f32 to vector<2x32xf32>
    %553 = arith.addf %552, %551 : vector<2x32xf32>
    %554 = arith.divf %552, %553 : vector<2x32xf32>
    %555 = vector.extract_strided_slice %543 {offsets = [0, 32], sizes = [2, 32], strides = [1, 1]} : vector<2x96xf32> to vector<2x32xf32>
    %556 = vector.extract_strided_slice %546 {offsets = [0, 32], sizes = [2, 32], strides = [1, 1]} : vector<2x96xf32> to vector<2x32xf32>
    %557 = arith.addf %555, %556 : vector<2x32xf32>
    %558 = arith.negf %557 : vector<2x32xf32>
    %559 = math.exp %558 : vector<2x32xf32>
    %cst_140 = arith.constant 1.000000e+00 : f32
    %560 = vector.broadcast %cst_140 : f32 to vector<2x32xf32>
    %561 = arith.addf %560, %559 : vector<2x32xf32>
    %562 = arith.divf %560, %561 : vector<2x32xf32>
    %563 = vector.extract_strided_slice %543 {offsets = [0, 64], sizes = [2, 32], strides = [1, 1]} : vector<2x96xf32> to vector<2x32xf32>
    %564 = vector.extract_strided_slice %546 {offsets = [0, 64], sizes = [2, 32], strides = [1, 1]} : vector<2x96xf32> to vector<2x32xf32>
    %565 = arith.mulf %554, %564 : vector<2x32xf32>
    %566 = arith.addf %563, %565 : vector<2x32xf32>
    %567 = math.tanh %566 : vector<2x32xf32>
    %cst_141 = arith.constant 1.000000e+00 : f32
    %568 = vector.broadcast %cst_141 : f32 to vector<2x32xf32>
    %569 = arith.subf %568, %562 : vector<2x32xf32>
    %570 = arith.mulf %569, %567 : vector<2x32xf32>
    %571 = arith.mulf %562, %540 : vector<2x32xf32>
    %572 = arith.addf %570, %571 : vector<2x32xf32>
    %573 = vector.broadcast %542 : vector<2x1xf32> to vector<2x32xf32>
    %574 = arith.mulf %573, %572 : vector<2x32xf32>
    %cst_142 = arith.constant 1.000000e+00 : f32
    %575 = vector.broadcast %cst_142 : f32 to vector<2x1xf32>
    %576 = arith.subf %575, %542 : vector<2x1xf32>
    %577 = vector.broadcast %576 : vector<2x1xf32> to vector<2x32xf32>
    %578 = arith.mulf %577, %540 : vector<2x32xf32>
    %579 = arith.addf %574, %578 : vector<2x32xf32>
    %c8_143 = arith.constant 8 : index
    %c0_144 = arith.constant 0 : index
    %580 = vector.load %arg12[%c8_143, %c0_144] : memref<20x32xf32, #tpu.memory_space<vmem>>, vector<2x32xf32>
    tpu.vector_store %arg12[%c8_143, %c0_144], %579 {strides = array<i32>} : memref<20x32xf32, #tpu.memory_space<vmem>>, vector<2x32xf32>,
    %c10_145 = arith.constant 10 : index
    %c0_146 = arith.constant 0 : index
    %581 = vector.load %arg2[%c10_145, %c0_146] : memref<20x1xf32, #tpu.memory_space<vmem>>, vector<2x1xf32>
    %c10_147 = arith.constant 10 : index
    %c0_148 = arith.constant 0 : index
    %582 = vector.load %arg1[%c10_147, %c0_148] : memref<20x96xf32, #tpu.memory_space<vmem>>, vector<2x96xf32>
    %cst_149 = arith.constant dense<0.000000e+00> : vector<2x96xf32>
    %583 = tpu.matmul %579, %2, %cst_149 {dimension_numbers = #tpu.dot_dimension_numbers<[1], [0], [0], [1], [0, 0, 1, 1], [], []>} : vector<2x32xf32>, vector<32x96xf32>, vector<2x96xf32> -> vector<2x96xf32>
    %584 = vector.broadcast %3 : vector<1x96xf32> to vector<2x96xf32>
    %585 = arith.addf %583, %584 : vector<2x96xf32>
    %586 = vector.extract_strided_slice %582 {offsets = [0, 0], sizes = [2, 32], strides = [1, 1]} : vector<2x96xf32> to vector<2x32xf32>
    %587 = vector.extract_strided_slice %585 {offsets = [0, 0], sizes = [2, 32], strides = [1, 1]} : vector<2x96xf32> to vector<2x32xf32>
    %588 = arith.addf %586, %587 : vector<2x32xf32>
    %589 = arith.negf %588 : vector<2x32xf32>
    %590 = math.exp %589 : vector<2x32xf32>
    %cst_150 = arith.constant 1.000000e+00 : f32
    %591 = vector.broadcast %cst_150 : f32 to vector<2x32xf32>
    %592 = arith.addf %591, %590 : vector<2x32xf32>
    %593 = arith.divf %591, %592 : vector<2x32xf32>
    %594 = vector.extract_strided_slice %582 {offsets = [0, 32], sizes = [2, 32], strides = [1, 1]} : vector<2x96xf32> to vector<2x32xf32>
    %595 = vector.extract_strided_slice %585 {offsets = [0, 32], sizes = [2, 32], strides = [1, 1]} : vector<2x96xf32> to vector<2x32xf32>
    %596 = arith.addf %594, %595 : vector<2x32xf32>
    %597 = arith.negf %596 : vector<2x32xf32>
    %598 = math.exp %597 : vector<2x32xf32>
    %cst_151 = arith.constant 1.000000e+00 : f32
    %599 = vector.broadcast %cst_151 : f32 to vector<2x32xf32>
    %600 = arith.addf %599, %598 : vector<2x32xf32>
    %601 = arith.divf %599, %600 : vector<2x32xf32>
    %602 = vector.extract_strided_slice %582 {offsets = [0, 64], sizes = [2, 32], strides = [1, 1]} : vector<2x96xf32> to vector<2x32xf32>
    %603 = vector.extract_strided_slice %585 {offsets = [0, 64], sizes = [2, 32], strides = [1, 1]} : vector<2x96xf32> to vector<2x32xf32>
    %604 = arith.mulf %593, %603 : vector<2x32xf32>
    %605 = arith.addf %602, %604 : vector<2x32xf32>
    %606 = math.tanh %605 : vector<2x32xf32>
    %cst_152 = arith.constant 1.000000e+00 : f32
    %607 = vector.broadcast %cst_152 : f32 to vector<2x32xf32>
    %608 = arith.subf %607, %601 : vector<2x32xf32>
    %609 = arith.mulf %608, %606 : vector<2x32xf32>
    %610 = arith.mulf %601, %579 : vector<2x32xf32>
    %611 = arith.addf %609, %610 : vector<2x32xf32>
    %612 = vector.broadcast %581 : vector<2x1xf32> to vector<2x32xf32>
    %613 = arith.mulf %612, %611 : vector<2x32xf32>
    %cst_153 = arith.constant 1.000000e+00 : f32
    %614 = vector.broadcast %cst_153 : f32 to vector<2x1xf32>
    %615 = arith.subf %614, %581 : vector<2x1xf32>
    %616 = vector.broadcast %615 : vector<2x1xf32> to vector<2x32xf32>
    %617 = arith.mulf %616, %579 : vector<2x32xf32>
    %618 = arith.addf %613, %617 : vector<2x32xf32>
    %c10_154 = arith.constant 10 : index
    %c0_155 = arith.constant 0 : index
    %619 = vector.load %arg12[%c10_154, %c0_155] : memref<20x32xf32, #tpu.memory_space<vmem>>, vector<2x32xf32>
    tpu.vector_store %arg12[%c10_154, %c0_155], %618 {strides = array<i32>} : memref<20x32xf32, #tpu.memory_space<vmem>>, vector<2x32xf32>,
    %c12_156 = arith.constant 12 : index
    %c0_157 = arith.constant 0 : index
    %620 = vector.load %arg2[%c12_156, %c0_157] : memref<20x1xf32, #tpu.memory_space<vmem>>, vector<2x1xf32>
    %c12_158 = arith.constant 12 : index
    %c0_159 = arith.constant 0 : index
    %621 = vector.load %arg1[%c12_158, %c0_159] : memref<20x96xf32, #tpu.memory_space<vmem>>, vector<2x96xf32>
    %cst_160 = arith.constant dense<0.000000e+00> : vector<2x96xf32>
    %622 = tpu.matmul %618, %2, %cst_160 {dimension_numbers = #tpu.dot_dimension_numbers<[1], [0], [0], [1], [0, 0, 1, 1], [], []>} : vector<2x32xf32>, vector<32x96xf32>, vector<2x96xf32> -> vector<2x96xf32>
    %623 = vector.broadcast %3 : vector<1x96xf32> to vector<2x96xf32>
    %624 = arith.addf %622, %623 : vector<2x96xf32>
    %625 = vector.extract_strided_slice %621 {offsets = [0, 0], sizes = [2, 32], strides = [1, 1]} : vector<2x96xf32> to vector<2x32xf32>
    %626 = vector.extract_strided_slice %624 {offsets = [0, 0], sizes = [2, 32], strides = [1, 1]} : vector<2x96xf32> to vector<2x32xf32>
    %627 = arith.addf %625, %626 : vector<2x32xf32>
    %628 = arith.negf %627 : vector<2x32xf32>
    %629 = math.exp %628 : vector<2x32xf32>
    %cst_161 = arith.constant 1.000000e+00 : f32
    %630 = vector.broadcast %cst_161 : f32 to vector<2x32xf32>
    %631 = arith.addf %630, %629 : vector<2x32xf32>
    %632 = arith.divf %630, %631 : vector<2x32xf32>
    %633 = vector.extract_strided_slice %621 {offsets = [0, 32], sizes = [2, 32], strides = [1, 1]} : vector<2x96xf32> to vector<2x32xf32>
    %634 = vector.extract_strided_slice %624 {offsets = [0, 32], sizes = [2, 32], strides = [1, 1]} : vector<2x96xf32> to vector<2x32xf32>
    %635 = arith.addf %633, %634 : vector<2x32xf32>
    %636 = arith.negf %635 : vector<2x32xf32>
    %637 = math.exp %636 : vector<2x32xf32>
    %cst_162 = arith.constant 1.000000e+00 : f32
    %638 = vector.broadcast %cst_162 : f32 to vector<2x32xf32>
    %639 = arith.addf %638, %637 : vector<2x32xf32>
    %640 = arith.divf %638, %639 : vector<2x32xf32>
    %641 = vector.extract_strided_slice %621 {offsets = [0, 64], sizes = [2, 32], strides = [1, 1]} : vector<2x96xf32> to vector<2x32xf32>
    %642 = vector.extract_strided_slice %624 {offsets = [0, 64], sizes = [2, 32], strides = [1, 1]} : vector<2x96xf32> to vector<2x32xf32>
    %643 = arith.mulf %632, %642 : vector<2x32xf32>
    %644 = arith.addf %641, %643 : vector<2x32xf32>
    %645 = math.tanh %644 : vector<2x32xf32>
    %cst_163 = arith.constant 1.000000e+00 : f32
    %646 = vector.broadcast %cst_163 : f32 to vector<2x32xf32>
    %647 = arith.subf %646, %640 : vector<2x32xf32>
    %648 = arith.mulf %647, %645 : vector<2x32xf32>
    %649 = arith.mulf %640, %618 : vector<2x32xf32>
    %650 = arith.addf %648, %649 : vector<2x32xf32>
    %651 = vector.broadcast %620 : vector<2x1xf32> to vector<2x32xf32>
    %652 = arith.mulf %651, %650 : vector<2x32xf32>
    %cst_164 = arith.constant 1.000000e+00 : f32
    %653 = vector.broadcast %cst_164 : f32 to vector<2x1xf32>
    %654 = arith.subf %653, %620 : vector<2x1xf32>
    %655 = vector.broadcast %654 : vector<2x1xf32> to vector<2x32xf32>
    %656 = arith.mulf %655, %618 : vector<2x32xf32>
    %657 = arith.addf %652, %656 : vector<2x32xf32>
    %c12_165 = arith.constant 12 : index
    %c0_166 = arith.constant 0 : index
    %658 = vector.load %arg12[%c12_165, %c0_166] : memref<20x32xf32, #tpu.memory_space<vmem>>, vector<2x32xf32>
    tpu.vector_store %arg12[%c12_165, %c0_166], %657 {strides = array<i32>} : memref<20x32xf32, #tpu.memory_space<vmem>>, vector<2x32xf32>,
    %c14_167 = arith.constant 14 : index
    %c0_168 = arith.constant 0 : index
    %659 = vector.load %arg2[%c14_167, %c0_168] : memref<20x1xf32, #tpu.memory_space<vmem>>, vector<2x1xf32>
    %c14_169 = arith.constant 14 : index
    %c0_170 = arith.constant 0 : index
    %660 = vector.load %arg1[%c14_169, %c0_170] : memref<20x96xf32, #tpu.memory_space<vmem>>, vector<2x96xf32>
    %cst_171 = arith.constant dense<0.000000e+00> : vector<2x96xf32>
    %661 = tpu.matmul %657, %2, %cst_171 {dimension_numbers = #tpu.dot_dimension_numbers<[1], [0], [0], [1], [0, 0, 1, 1], [], []>} : vector<2x32xf32>, vector<32x96xf32>, vector<2x96xf32> -> vector<2x96xf32>
    %662 = vector.broadcast %3 : vector<1x96xf32> to vector<2x96xf32>
    %663 = arith.addf %661, %662 : vector<2x96xf32>
    %664 = vector.extract_strided_slice %660 {offsets = [0, 0], sizes = [2, 32], strides = [1, 1]} : vector<2x96xf32> to vector<2x32xf32>
    %665 = vector.extract_strided_slice %663 {offsets = [0, 0], sizes = [2, 32], strides = [1, 1]} : vector<2x96xf32> to vector<2x32xf32>
    %666 = arith.addf %664, %665 : vector<2x32xf32>
    %667 = arith.negf %666 : vector<2x32xf32>
    %668 = math.exp %667 : vector<2x32xf32>
    %cst_172 = arith.constant 1.000000e+00 : f32
    %669 = vector.broadcast %cst_172 : f32 to vector<2x32xf32>
    %670 = arith.addf %669, %668 : vector<2x32xf32>
    %671 = arith.divf %669, %670 : vector<2x32xf32>
    %672 = vector.extract_strided_slice %660 {offsets = [0, 32], sizes = [2, 32], strides = [1, 1]} : vector<2x96xf32> to vector<2x32xf32>
    %673 = vector.extract_strided_slice %663 {offsets = [0, 32], sizes = [2, 32], strides = [1, 1]} : vector<2x96xf32> to vector<2x32xf32>
    %674 = arith.addf %672, %673 : vector<2x32xf32>
    %675 = arith.negf %674 : vector<2x32xf32>
    %676 = math.exp %675 : vector<2x32xf32>
    %cst_173 = arith.constant 1.000000e+00 : f32
    %677 = vector.broadcast %cst_173 : f32 to vector<2x32xf32>
    %678 = arith.addf %677, %676 : vector<2x32xf32>
    %679 = arith.divf %677, %678 : vector<2x32xf32>
    %680 = vector.extract_strided_slice %660 {offsets = [0, 64], sizes = [2, 32], strides = [1, 1]} : vector<2x96xf32> to vector<2x32xf32>
    %681 = vector.extract_strided_slice %663 {offsets = [0, 64], sizes = [2, 32], strides = [1, 1]} : vector<2x96xf32> to vector<2x32xf32>
    %682 = arith.mulf %671, %681 : vector<2x32xf32>
    %683 = arith.addf %680, %682 : vector<2x32xf32>
    %684 = math.tanh %683 : vector<2x32xf32>
    %cst_174 = arith.constant 1.000000e+00 : f32
    %685 = vector.broadcast %cst_174 : f32 to vector<2x32xf32>
    %686 = arith.subf %685, %679 : vector<2x32xf32>
    %687 = arith.mulf %686, %684 : vector<2x32xf32>
    %688 = arith.mulf %679, %657 : vector<2x32xf32>
    %689 = arith.addf %687, %688 : vector<2x32xf32>
    %690 = vector.broadcast %659 : vector<2x1xf32> to vector<2x32xf32>
    %691 = arith.mulf %690, %689 : vector<2x32xf32>
    %cst_175 = arith.constant 1.000000e+00 : f32
    %692 = vector.broadcast %cst_175 : f32 to vector<2x1xf32>
    %693 = arith.subf %692, %659 : vector<2x1xf32>
    %694 = vector.broadcast %693 : vector<2x1xf32> to vector<2x32xf32>
    %695 = arith.mulf %694, %657 : vector<2x32xf32>
    %696 = arith.addf %691, %695 : vector<2x32xf32>
    %c14_176 = arith.constant 14 : index
    %c0_177 = arith.constant 0 : index
    %697 = vector.load %arg12[%c14_176, %c0_177] : memref<20x32xf32, #tpu.memory_space<vmem>>, vector<2x32xf32>
    tpu.vector_store %arg12[%c14_176, %c0_177], %696 {strides = array<i32>} : memref<20x32xf32, #tpu.memory_space<vmem>>, vector<2x32xf32>,
    %c16_178 = arith.constant 16 : index
    %c0_179 = arith.constant 0 : index
    %698 = vector.load %arg2[%c16_178, %c0_179] : memref<20x1xf32, #tpu.memory_space<vmem>>, vector<2x1xf32>
    %c16_180 = arith.constant 16 : index
    %c0_181 = arith.constant 0 : index
    %699 = vector.load %arg1[%c16_180, %c0_181] : memref<20x96xf32, #tpu.memory_space<vmem>>, vector<2x96xf32>
    %cst_182 = arith.constant dense<0.000000e+00> : vector<2x96xf32>
    %700 = tpu.matmul %696, %2, %cst_182 {dimension_numbers = #tpu.dot_dimension_numbers<[1], [0], [0], [1], [0, 0, 1, 1], [], []>} : vector<2x32xf32>, vector<32x96xf32>, vector<2x96xf32> -> vector<2x96xf32>
    %701 = vector.broadcast %3 : vector<1x96xf32> to vector<2x96xf32>
    %702 = arith.addf %700, %701 : vector<2x96xf32>
    %703 = vector.extract_strided_slice %699 {offsets = [0, 0], sizes = [2, 32], strides = [1, 1]} : vector<2x96xf32> to vector<2x32xf32>
    %704 = vector.extract_strided_slice %702 {offsets = [0, 0], sizes = [2, 32], strides = [1, 1]} : vector<2x96xf32> to vector<2x32xf32>
    %705 = arith.addf %703, %704 : vector<2x32xf32>
    %706 = arith.negf %705 : vector<2x32xf32>
    %707 = math.exp %706 : vector<2x32xf32>
    %cst_183 = arith.constant 1.000000e+00 : f32
    %708 = vector.broadcast %cst_183 : f32 to vector<2x32xf32>
    %709 = arith.addf %708, %707 : vector<2x32xf32>
    %710 = arith.divf %708, %709 : vector<2x32xf32>
    %711 = vector.extract_strided_slice %699 {offsets = [0, 32], sizes = [2, 32], strides = [1, 1]} : vector<2x96xf32> to vector<2x32xf32>
    %712 = vector.extract_strided_slice %702 {offsets = [0, 32], sizes = [2, 32], strides = [1, 1]} : vector<2x96xf32> to vector<2x32xf32>
    %713 = arith.addf %711, %712 : vector<2x32xf32>
    %714 = arith.negf %713 : vector<2x32xf32>
    %715 = math.exp %714 : vector<2x32xf32>
    %cst_184 = arith.constant 1.000000e+00 : f32
    %716 = vector.broadcast %cst_184 : f32 to vector<2x32xf32>
    %717 = arith.addf %716, %715 : vector<2x32xf32>
    %718 = arith.divf %716, %717 : vector<2x32xf32>
    %719 = vector.extract_strided_slice %699 {offsets = [0, 64], sizes = [2, 32], strides = [1, 1]} : vector<2x96xf32> to vector<2x32xf32>
    %720 = vector.extract_strided_slice %702 {offsets = [0, 64], sizes = [2, 32], strides = [1, 1]} : vector<2x96xf32> to vector<2x32xf32>
    %721 = arith.mulf %710, %720 : vector<2x32xf32>
    %722 = arith.addf %719, %721 : vector<2x32xf32>
    %723 = math.tanh %722 : vector<2x32xf32>
    %cst_185 = arith.constant 1.000000e+00 : f32
    %724 = vector.broadcast %cst_185 : f32 to vector<2x32xf32>
    %725 = arith.subf %724, %718 : vector<2x32xf32>
    %726 = arith.mulf %725, %723 : vector<2x32xf32>
    %727 = arith.mulf %718, %696 : vector<2x32xf32>
    %728 = arith.addf %726, %727 : vector<2x32xf32>
    %729 = vector.broadcast %698 : vector<2x1xf32> to vector<2x32xf32>
    %730 = arith.mulf %729, %728 : vector<2x32xf32>
    %cst_186 = arith.constant 1.000000e+00 : f32
    %731 = vector.broadcast %cst_186 : f32 to vector<2x1xf32>
    %732 = arith.subf %731, %698 : vector<2x1xf32>
    %733 = vector.broadcast %732 : vector<2x1xf32> to vector<2x32xf32>
    %734 = arith.mulf %733, %696 : vector<2x32xf32>
    %735 = arith.addf %730, %734 : vector<2x32xf32>
    %c16_187 = arith.constant 16 : index
    %c0_188 = arith.constant 0 : index
    %736 = vector.load %arg12[%c16_187, %c0_188] : memref<20x32xf32, #tpu.memory_space<vmem>>, vector<2x32xf32>
    tpu.vector_store %arg12[%c16_187, %c0_188], %735 {strides = array<i32>} : memref<20x32xf32, #tpu.memory_space<vmem>>, vector<2x32xf32>,
    %c18_189 = arith.constant 18 : index
    %c0_190 = arith.constant 0 : index
    %737 = vector.load %arg2[%c18_189, %c0_190] : memref<20x1xf32, #tpu.memory_space<vmem>>, vector<2x1xf32>
    %c18_191 = arith.constant 18 : index
    %c0_192 = arith.constant 0 : index
    %738 = vector.load %arg1[%c18_191, %c0_192] : memref<20x96xf32, #tpu.memory_space<vmem>>, vector<2x96xf32>
    %cst_193 = arith.constant dense<0.000000e+00> : vector<2x96xf32>
    %739 = tpu.matmul %735, %2, %cst_193 {dimension_numbers = #tpu.dot_dimension_numbers<[1], [0], [0], [1], [0, 0, 1, 1], [], []>} : vector<2x32xf32>, vector<32x96xf32>, vector<2x96xf32> -> vector<2x96xf32>
    %740 = vector.broadcast %3 : vector<1x96xf32> to vector<2x96xf32>
    %741 = arith.addf %739, %740 : vector<2x96xf32>
    %742 = vector.extract_strided_slice %738 {offsets = [0, 0], sizes = [2, 32], strides = [1, 1]} : vector<2x96xf32> to vector<2x32xf32>
    %743 = vector.extract_strided_slice %741 {offsets = [0, 0], sizes = [2, 32], strides = [1, 1]} : vector<2x96xf32> to vector<2x32xf32>
    %744 = arith.addf %742, %743 : vector<2x32xf32>
    %745 = arith.negf %744 : vector<2x32xf32>
    %746 = math.exp %745 : vector<2x32xf32>
    %cst_194 = arith.constant 1.000000e+00 : f32
    %747 = vector.broadcast %cst_194 : f32 to vector<2x32xf32>
    %748 = arith.addf %747, %746 : vector<2x32xf32>
    %749 = arith.divf %747, %748 : vector<2x32xf32>
    %750 = vector.extract_strided_slice %738 {offsets = [0, 32], sizes = [2, 32], strides = [1, 1]} : vector<2x96xf32> to vector<2x32xf32>
    %751 = vector.extract_strided_slice %741 {offsets = [0, 32], sizes = [2, 32], strides = [1, 1]} : vector<2x96xf32> to vector<2x32xf32>
    %752 = arith.addf %750, %751 : vector<2x32xf32>
    %753 = arith.negf %752 : vector<2x32xf32>
    %754 = math.exp %753 : vector<2x32xf32>
    %cst_195 = arith.constant 1.000000e+00 : f32
    %755 = vector.broadcast %cst_195 : f32 to vector<2x32xf32>
    %756 = arith.addf %755, %754 : vector<2x32xf32>
    %757 = arith.divf %755, %756 : vector<2x32xf32>
    %758 = vector.extract_strided_slice %738 {offsets = [0, 64], sizes = [2, 32], strides = [1, 1]} : vector<2x96xf32> to vector<2x32xf32>
    %759 = vector.extract_strided_slice %741 {offsets = [0, 64], sizes = [2, 32], strides = [1, 1]} : vector<2x96xf32> to vector<2x32xf32>
    %760 = arith.mulf %749, %759 : vector<2x32xf32>
    %761 = arith.addf %758, %760 : vector<2x32xf32>
    %762 = math.tanh %761 : vector<2x32xf32>
    %cst_196 = arith.constant 1.000000e+00 : f32
    %763 = vector.broadcast %cst_196 : f32 to vector<2x32xf32>
    %764 = arith.subf %763, %757 : vector<2x32xf32>
    %765 = arith.mulf %764, %762 : vector<2x32xf32>
    %766 = arith.mulf %757, %735 : vector<2x32xf32>
    %767 = arith.addf %765, %766 : vector<2x32xf32>
    %768 = vector.broadcast %737 : vector<2x1xf32> to vector<2x32xf32>
    %769 = arith.mulf %768, %767 : vector<2x32xf32>
    %cst_197 = arith.constant 1.000000e+00 : f32
    %770 = vector.broadcast %cst_197 : f32 to vector<2x1xf32>
    %771 = arith.subf %770, %737 : vector<2x1xf32>
    %772 = vector.broadcast %771 : vector<2x1xf32> to vector<2x32xf32>
    %773 = arith.mulf %772, %735 : vector<2x32xf32>
    %774 = arith.addf %769, %773 : vector<2x32xf32>
    %c18_198 = arith.constant 18 : index
    %c0_199 = arith.constant 0 : index
    %775 = vector.load %arg12[%c18_198, %c0_199] : memref<20x32xf32, #tpu.memory_space<vmem>>, vector<2x32xf32>
    tpu.vector_store %arg12[%c18_198, %c0_199], %774 {strides = array<i32>} : memref<20x32xf32, #tpu.memory_space<vmem>>, vector<2x32xf32>,
    %c0_200 = arith.constant 0 : index
    %c0_201 = arith.constant 0 : index
    %776 = vector.load %arg12[%c0_200, %c0_201] : memref<20x32xf32, #tpu.memory_space<vmem>>, vector<20x32xf32>
    %c0_202 = arith.constant 0 : index
    %c0_203 = arith.constant 0 : index
    %777 = vector.load %arg8[%c0_202, %c0_203] : memref<32x24xf32, #tpu.memory_space<vmem>>, vector<32x24xf32>
    %cst_204 = arith.constant dense<0.000000e+00> : vector<20x24xf32>
    %778 = tpu.matmul %776, %777, %cst_204 {dimension_numbers = #tpu.dot_dimension_numbers<[1], [0], [0], [1], [0, 0, 1, 1], [], []>} : vector<20x32xf32>, vector<32x24xf32>, vector<20x24xf32> -> vector<20x24xf32>
    %c0_205 = arith.constant 0 : index
    %c0_206 = arith.constant 0 : index
    %779 = vector.load %arg9[%c0_205, %c0_206] : memref<1x24xf32, #tpu.memory_space<vmem>>, vector<1x24xf32>
    %780 = vector.broadcast %779 : vector<1x24xf32> to vector<20x24xf32>
    %781 = arith.addf %778, %780 : vector<20x24xf32>
    %cst_207 = arith.constant dense<0xFF800000> : vector<20xf32>
    %782 = vector.multi_reduction <maximumf>, %781, %cst_207 [1] : vector<20x24xf32> to vector<20xf32>
    %783 = vector.shape_cast %782 : vector<20xf32> to vector<20x1xf32>
    %784 = vector.broadcast %783 : vector<20x1xf32> to vector<20x24xf32>
    %785 = arith.subf %781, %784 : vector<20x24xf32>
    %786 = math.exp %785 : vector<20x24xf32>
    %cst_208 = arith.constant dense<0.000000e+00> : vector<20xf32>
    %787 = vector.multi_reduction <add>, %786, %cst_208 [1] : vector<20x24xf32> to vector<20xf32>
    %788 = vector.shape_cast %787 : vector<20xf32> to vector<20x1xf32>
    %789 = math.log %788 : vector<20x1xf32>
    %790 = arith.addf %789, %783 : vector<20x1xf32>
    %791 = vector.broadcast %790 : vector<20x1xf32> to vector<20x24xf32>
    %792 = arith.subf %781, %791 : vector<20x24xf32>
    %c0_209 = arith.constant 0 : index
    %c0_210 = arith.constant 0 : index
    %793 = vector.load %arg3[%c0_209, %c0_210] : memref<20x24xf32, #tpu.memory_space<vmem>>, vector<20x24xf32>
    %794 = arith.mulf %793, %792 : vector<20x24xf32>
    %cst_211 = arith.constant dense<0.000000e+00> : vector<20xf32>
    %795 = vector.multi_reduction <add>, %794, %cst_211 [1] : vector<20x24xf32> to vector<20xf32>
    %796 = vector.shape_cast %795 : vector<20xf32> to vector<20x1xf32>
    %cst_212 = arith.constant 0.000000e+00 : f32
    %797 = vector.broadcast %cst_212 : f32 to vector<20x1xf32>
    %798 = arith.subf %797, %796 : vector<20x1xf32>
    %cst_213 = arith.constant dense<0.000000e+00> : vector<1xf32>
    %799 = vector.multi_reduction <add>, %798, %cst_213 [0] : vector<20x1xf32> to vector<1xf32>
    %800 = vector.shape_cast %799 : vector<1xf32> to vector<1x1xf32>
    %c0_214 = arith.constant 0 : index
    %c0_215 = arith.constant 0 : index
    %801 = vector.load %arg11[%c0_214, %c0_215] : memref<1x1xf32, #tpu.memory_space<vmem>>, vector<1x1xf32>
    tpu.vector_store %arg11[%c0_214, %c0_215], %800 {strides = array<i32>} : memref<1x1xf32, #tpu.memory_space<vmem>>, vector<1x1xf32>,
    return
  }
}

</mosaic_0001>

<bundles_post_ra>
// kernel: _autoencode_batch_impl.1
= control target key start
LH: loop header
LB: loop body
LE: loop exit
PB: predicated region body
PF: predicated region fallthrough
CT: control target
= control target key end

     0   :  { %17 = vsyncpa [#allocation4], 0  ;;  %v3333_v3 = vmov 0.0|0.0   ;;  %vm3334_vm0 = vmmov 0   ;;  %v3335_v6 = vmov 0.0   ;;  %s3885_s0 = inlined_call_operand.vmem [shape: f32[20,96], index: 0, kind: input, shape index: {}]   ;;  %s3886_s1 = inlined_call_operand.vmem [shape: f32[20,96], index: 1, kind: input, shape index: {}]   ;;  %s3887_s2 = inlined_call_operand.vmem [shape: f32[20,1], index: 2, kind: input, shape index: {}]   ;;  %s3888_s3 = inlined_call_operand.vmem [shape: f32[20,24], index: 3, kind: input, shape index: {}]   ;;  %s3889_s4 = inlined_call_operand.vmem [shape: f32[32,96], index: 4, kind: input, shape index: {}]   ;;  %s3890_s5 = inlined_call_operand.vmem [shape: f32[1,96], index: 5, kind: input, shape index: {}]   ;;  %s3891_s6 = inlined_call_operand.vmem [shape: f32[32,96], index: 6, kind: input, shape index: {}]   ;;  %s3892_s7 = inlined_call_operand.vmem [shape: f32[1,96], index: 7, kind: input, shape index: {}]   ;;  %s3893_s8 = inlined_call_operand.vmem [shape: f32[32,24], index: 8, kind: input, shape index: {}]   ;;  %s3894_s9 = inlined_call_operand.vmem [shape: f32[1,24], index: 9, kind: input, shape index: {}]   ;;  %s3895_s10 = inlined_call_operand.hbm [shape: f32[2,32], index: 10, kind: output, shape index: {0}]   ;;  %s3896_s11 = inlined_call_operand.hbm [shape: f32[1,1], index: 11, kind: output, shape index: {1}]  }
   0x1   :  { %v39_v0 = vld [vmem:[%s3889_s4] sm:$0xff]  ;;  %v40_v1 = vld [vmem:[%s3889_s4 + $0x8] sm:$0xff]  ;;  %v41_v2 = vld [vmem:[%s3889_s4 + $0x10] sm:$0xff]  ;;  %3017 = vmatprep.subr.bf16.mxu1 %v3333_v3  ;;  %2788 = vmatprep.mubr.msk.f32.mxu1 %vm3334_vm0, %v3335_v6 }
   0x2   :  { %v3411_v4 = vpack.c.bf16 %v40_v1, %v39_v0  ;;  %v42_v5 = vld [vmem:[%s3889_s4 + $0x18] sm:$0xff]  ;;  %3029 = vmatprep.subr.bf16.mxu0 %v3333_v3  ;;  %2810 = vmatprep.mubr.msk.f32.mxu0 %vm3334_vm0, %v3335_v6 }
   0x3   :  { %18 = vsyncpa [#allocation6], 0  ;;  %v3422_v7 = vpack.c.bf16 %v42_v5, %v41_v2  ;;  %v49_v8 = vld [vmem:[%s3887_s2] sm:$0x3]  ;;  %v3336_v9 = vmov 0   ;;  %s3337_s28 = smov 64  }
   0x4   :  { %3019 = vmatpush3.bf16.msra.mxu1 %v3411_v4  ;;  %3031 = vmatpush3.bf16.msra.mxu0 %v3411_v4  ;;  %v163_v10 = vsub.f32 1.0, %v49_v8  ;;  %v3444_v11 = vld [vmem:[%s3890_s5] ss:$0 sm:$0xff]  ;;  %s3338_s5 = smov 96   ;;  %vm57_vm1 = vcmask 261120   ;;  %vm1228_vm2 = vcmask 254976  }
   0x5   :  { %3020 = vmatprep.subr.bf16.mxu1 %v3333_v3  ;;  %3032 = vmatprep.subr.bf16.mxu0 %v3333_v3  ;;  %v50_v15 = vld [vmem:[%s3885_s0] sm:$0x3]  ;;  %v171_v40 = vld [vmem:[%s3887_s2 + $0x2] sm:$0x3]  ;;  %v288_v5 = vld [vmem:[%s3887_s2 + $0x4] sm:$0x3] }
   0x6   :  { %3151 = vset.pattern.permute.xlu1 %v3336_v9  ;;  %3152 = vset.pattern.permute.xlu0 %v3336_v9  ;;  %v172_v41 = vld [vmem:[%s3885_s0 + $0x2] sm:$0x3]  ;;  %v280_v49 = vsub.f32 1.0, %v171_v40  ;;  %vm2529_vm3 = vcmask 195584   ;;  %vm2536_vm4 = vcmask 191488   ;;  %s3339_s23 = smov [#allocation3]  }
   0x7   :  { %159 = vperm.xlu1 %3151, %v49_v8   ;;  %v289_v8 = vld [vmem:[%s3885_s0 + $0x4] sm:$0x3]  ;;  %s2606_s24 = sshll.u32 %s3339_s23, 4  ;;  %s2607_s24 = int_to_ptr.vmem [resolvable:$true] %s2606_s24 }
   0x8   :  { %3022 = vmatpush3.bf16.msra.mxu1 %v3422_v7  ;;  %3034 = vmatpush3.bf16.msra.mxu0 %v3422_v7  ;;  %s3285_s4 = scalar_lea.vmem %s2607_s24, 32  ;;  %p3290_p1 = scmp.lt.s32.totalorder %s2607_s24, %s2607_s24 }
   0x9   :  { %3023 = vmatprep.subr.bf16.mxu1 %v3333_v3  ;;  %3041 = vmatprep.subr.bf16.mxu0 %v3333_v3  ;;  %p3286_p0 = scmp.ne.s32.totalorder %s2607_s24, %s3285_s4  ;;  %p3291_p2 = scmp.lt.s32.totalorder %s3285_s4, %s3285_s4 }
   0xb   :  { %2789 = vmatmul.mubr.f32.vlgmr.msra.gmra.mrb[0].mxu1 %v3335_v6  ;;  %166 = vperm.xlu1 %3151, %v163_v10   ;;  %p3292_p3 = por %p3291_p2, %p3290_p1 }
   0xc   :  { %3025 = vmatpush3.bf16.msra.mxu1 %v3411_v4  ;;  %2799 = vmatprep.mubr.msk.f32.mxu1 %vm3334_vm0, %v3335_v6 }
   0xd   :  { %3026 = vmatprep.subr.bf16.mxu1 %v3333_v3  ;;  %p3293_p4 = pnand %p3292_p3, %p3286_p0 }
  0x10   :  { %3028 = vmatpush3.bf16.msra.mxu1 %v3422_v7 }
  0x11   :  { %3035 = vmatprep.subr.bf16.mxu1 %v3333_v3 }
  0x86   :  { %v160_v26 = vpop.permute.xlu1 %159 }
  0x8a   :  { %v167_v31 = vpop.permute.xlu1 %166 }
  0x8b   :  { %v169_v33 = vmul.f32 0.0, %v167_v31 }
  0xde   :  { %v127_v12 = vpop.f32.mrb[0].mxu1 }
  0xdf   :  { %v128_v13 = vadd.f32 %v3444_v11, %v127_v12  ;;  %v2790_v14 = vpop.f32.mrb[1].mxu1 }
  0xe1   :  { %139 = vrot.lane.b32.xlu0 %v128_v13, %s3337_s28  ;;  %v131_v16 = vadd.f32 %v128_v13, %v50_v15 }
  0xe3   :  { %v2629_v17 = vmul.f32 -1.442695, %v131_v16 }
  0xe5   :  { %3153 = vpow2.f32 %v2629_v17  ;;  %v397_v17 = vsub.f32 1.0, %v288_v5 }
  0xef   :  { %v3154_v18 = vpop.eup %3153 }
  0xf0   :  { %v135_v19 = vadd.f32 1.0, %v3154_v18 }
  0xf2   :  { %3155 = vrcp.f32 %v135_v19 }
  0xfc   :  { %v3156_v20 = vpop.eup %3155 }
  0xfd   :  { %v149_v27 = vsub.f32 1.0, %v3156_v20  ;;  %v155_v29 = vmul.f32 0.0, %v3156_v20 }
 0x153   :  { %v140_v21 = vpop.permute.xlu0 %139 }
 0x154   :  { %v142_v22 = vmul.f32 %v3156_v20, %v140_v21 }
 0x156   :  { %144 = vrot.lane.b32.xlu0 %v142_v22, %s3337_s28 }
 0x1c8   :  { %v145_v23 = vpop.permute.xlu0 %144 }
 0x1c9   :  { %v147_v24 = vadd.f32 %v145_v23, %v50_v15 }
 0x1cb   :  { %3157 = vtanh.f32 %v147_v24 }
 0x1d5   :  { %v3158_v25 = vpop.eup %3157 }
 0x1d6   :  { %151 = vrot.lane.b32.xlu0 %v3158_v25, %s3338_s5 }
 0x248   :  { %v152_v28 = vpop.permute.xlu0 %151 }
 0x249   :  { %v154_v30 = vmul.f32 %v152_v28, %v149_v27 }
 0x24b   :  { %v156_v32 = vadd.f32 %v155_v29, %v154_v30 }
 0x24d   :  { %v162_v34 = vmul.f32 %v160_v26, %v156_v32 }
 0x24f   :  { %v170_v35 = vadd.f32 %v169_v33, %v162_v34 }
 0x251   :  { %174 = vrot.lane.b32.xlu1 %v170_v35, %s3338_s5 }
 0x2c3   :  { %v175_v36 = vpop.permute.xlu1 %174 }
 0x2c4   :  { %2800 = vmatmul.mubr.msk.f32.vlgmr.msra.gmra.mrb[2].mxu1 %vm57_vm1, %v175_v36  ;;  %v406_v36 = vld [vmem:[%s3885_s0 + $0x6] sm:$0x3] }
 0x2c5   :  { %3037 = vmatpush3.bf16.msra.mxu1 %v3411_v4  ;;  %2821 = vmatprep.mubr.msk.f32.mxu1 %vm3334_vm0, %v3335_v6 }
 0x2c6   :  { %3038 = vmatprep.subr.bf16.mxu1 %v3333_v3 }
 0x2c9   :  { %3040 = vmatpush3.bf16.msra.mxu1 %v3422_v7 }
 0x2ca   :  { %3047 = vmatprep.subr.bf16.mxu1 %v3333_v3 }
 0x397   :  { %v244_v37 = vpop.f32.mrb[2].mxu1 }
 0x398   :  { %v245_v38 = vadd.f32 %v3444_v11, %v244_v37  ;;  %v2801_v39 = vpop.f32.mrb[3].mxu1 }
 0x39a   :  { %256 = vrot.lane.b32.xlu0 %v245_v38, %s3337_s28  ;;  %v248_v42 = vadd.f32 %v245_v38, %v172_v41 }
 0x39c   :  { %v2631_v43 = vmul.f32 -1.442695, %v248_v42 }
 0x39e   :  { %276 = vperm.xlu0 %3152, %v171_v40   ;;  %3159 = vpow2.f32 %v2631_v43 }
 0x3a8   :  { %v3160_v44 = vpop.eup %3159 }
 0x3a9   :  { %v252_v45 = vadd.f32 1.0, %v3160_v44 }
 0x3ab   :  { %3161 = vrcp.f32 %v252_v45 }
 0x3b5   :  { %v3162_v46 = vpop.eup %3161 }
 0x3b6   :  { %v266_v54 = vsub.f32 1.0, %v3162_v46  ;;  %v272_v57 = vmul.f32 %v3162_v46, %v170_v35 }
 0x40c   :  { %v257_v47 = vpop.permute.xlu0 %256 }
 0x40d   :  { %v259_v48 = vmul.f32 %v3162_v46, %v257_v47 }
 0x40f   :  { %261 = vrot.lane.b32.xlu1 %v259_v48, %s3337_s28 }
 0x413   :  { %283 = vperm.xlu1 %3151, %v280_v49  }
 0x41d   :  { %v277_v58 = vpop.permute.xlu0 %276 }
 0x481   :  { %v262_v50 = vpop.permute.xlu1 %261 }
 0x482   :  { %v264_v51 = vadd.f32 %v262_v50, %v172_v41 }
 0x484   :  { %3163 = vtanh.f32 %v264_v51 }
 0x48e   :  { %v3164_v52 = vpop.eup %3163 }
 0x48f   :  { %268 = vrot.lane.b32.xlu1 %v3164_v52, %s3338_s5 }
 0x492   :  { %v284_v53 = vpop.permute.xlu1 %283 }
 0x493   :  { %v286_v60 = vmul.f32 %v284_v53, %v170_v35  ;;  %v405_v35 = vld [vmem:[%s3887_s2 + $0x6] sm:$0x3] }
 0x494   :  { %v514_v44 = vsub.f32 1.0, %v405_v35 }
 0x501   :  { %v269_v55 = vpop.permute.xlu1 %268 }
 0x502   :  { %v271_v56 = vmul.f32 %v269_v55, %v266_v54 }
 0x504   :  { %v273_v59 = vadd.f32 %v272_v57, %v271_v56 }
 0x506   :  { %v279_v61 = vmul.f32 %v277_v58, %v273_v59 }
 0x508   :  { %v287_v62 = vadd.f32 %v286_v60, %v279_v61 }
 0x50a   :  { %291 = vrot.lane.b32.xlu0 %v287_v62, %s3338_s5 }
 0x57c   :  { %v292_v63 = vpop.permute.xlu0 %291 }
 0x57d   :  { %2811 = vmatmul.mubr.msk.f32.vlgmr.msra.gmra.mrb[0].mxu0 %vm57_vm1, %v292_v63  ;;  %v523_v63 = vld [vmem:[%s3885_s0 + $0x8] sm:$0x3] }
 0x57e   :  { %3043 = vmatpush3.bf16.msra.mxu0 %v3411_v4  ;;  %2832 = vmatprep.mubr.msk.f32.mxu0 %vm3334_vm0, %v3335_v6 }
 0x57f   :  { %3044 = vmatprep.subr.bf16.mxu0 %v3333_v3 }
 0x582   :  { %3046 = vmatpush3.bf16.msra.mxu0 %v3422_v7 }
 0x583   :  { %3053 = vmatprep.subr.bf16.mxu0 %v3333_v3 }
 0x650   :  { %v361_v0 = vpop.f32.mrb[0].mxu0 }
 0x651   :  { %v362_v1 = vadd.f32 %v3444_v11, %v361_v0  ;;  %v2812_v2 = vpop.f32.mrb[1].mxu0 }
 0x653   :  { %373 = vrot.lane.b32.xlu1 %v362_v1, %s3337_s28  ;;  %v365_v9 = vadd.f32 %v362_v1, %v289_v8 }
 0x655   :  { %v2633_v10 = vmul.f32 -1.442695, %v365_v9 }
 0x657   :  { %393 = vperm.xlu1 %3151, %v288_v5   ;;  %3165 = vpow2.f32 %v2633_v10 }
 0x661   :  { %v3166_v12 = vpop.eup %3165 }
 0x662   :  { %v369_v13 = vadd.f32 1.0, %v3166_v12 }
 0x664   :  { %3167 = vrcp.f32 %v369_v13 }
 0x66e   :  { %v3168_v14 = vpop.eup %3167 }
 0x66f   :  { %v383_v22 = vsub.f32 1.0, %v3168_v14  ;;  %v389_v24 = vmul.f32 %v3168_v14, %v287_v62 }
 0x6c5   :  { %v374_v15 = vpop.permute.xlu1 %373 }
 0x6c6   :  { %v376_v16 = vmul.f32 %v3168_v14, %v374_v15 }
 0x6c8   :  { %378 = vrot.lane.b32.xlu0 %v376_v16, %s3337_s28 }
 0x6cc   :  { %400 = vperm.xlu0 %3152, %v397_v17  }
 0x6d6   :  { %v394_v21 = vpop.permute.xlu1 %393 }
 0x73a   :  { %v379_v18 = vpop.permute.xlu0 %378 }
 0x73b   :  { %v381_v19 = vadd.f32 %v379_v18, %v289_v8 }
 0x73d   :  { %3169 = vtanh.f32 %v381_v19 }
 0x747   :  { %v3170_v20 = vpop.eup %3169 }
 0x748   :  { %385 = vrot.lane.b32.xlu1 %v3170_v20, %s3338_s5 }
 0x74b   :  { %v401_v26 = vpop.permute.xlu0 %400 }
 0x74c   :  { %v403_v28 = vmul.f32 %v401_v26, %v287_v62  ;;  %v522_v62 = vld [vmem:[%s3887_s2 + $0x8] sm:$0x3] }
 0x74d   :  { %v631_v12 = vsub.f32 1.0, %v522_v62 }
 0x7ba   :  { %v386_v23 = vpop.permute.xlu1 %385 }
 0x7bb   :  { %v388_v25 = vmul.f32 %v386_v23, %v383_v22 }
 0x7bd   :  { %v390_v27 = vadd.f32 %v389_v24, %v388_v25 }
 0x7bf   :  { %v396_v29 = vmul.f32 %v394_v21, %v390_v27 }
 0x7c1   :  { %v404_v30 = vadd.f32 %v403_v28, %v396_v29 }
 0x7c3   :  { %408 = vrot.lane.b32.xlu0 %v404_v30, %s3338_s5 }
 0x835   :  { %v409_v31 = vpop.permute.xlu0 %408 }
 0x836   :  { %2822 = vmatmul.mubr.msk.f32.vlgmr.msra.gmra.mrb[4].mxu1 %vm57_vm1, %v409_v31  ;;  %v640_v31 = vld [vmem:[%s3885_s0 + $0xa] sm:$0x3] }
 0x837   :  { %3049 = vmatpush3.bf16.msra.mxu1 %v3411_v4  ;;  %2843 = vmatprep.mubr.msk.f32.mxu1 %vm3334_vm0, %v3335_v6 }
 0x838   :  { %3050 = vmatprep.subr.bf16.mxu1 %v3333_v3 }
 0x83b   :  { %3052 = vmatpush3.bf16.msra.mxu1 %v3422_v7 }
 0x83c   :  { %3059 = vmatprep.subr.bf16.mxu1 %v3333_v3 }
 0x909   :  { %v478_v32 = vpop.f32.mrb[4].mxu1 }
 0x90a   :  { %v479_v33 = vadd.f32 %v3444_v11, %v478_v32  ;;  %v2823_v34 = vpop.f32.mrb[5].mxu1 }
 0x90c   :  { %490 = vrot.lane.b32.xlu1 %v479_v33, %s3337_s28  ;;  %v482_v37 = vadd.f32 %v479_v33, %v406_v36 }
 0x90e   :  { %v2635_v38 = vmul.f32 -1.442695, %v482_v37 }
 0x910   :  { %510 = vperm.xlu1 %3151, %v405_v35   ;;  %3171 = vpow2.f32 %v2635_v38 }
 0x91a   :  { %v3172_v39 = vpop.eup %3171 }
 0x91b   :  { %v486_v40 = vadd.f32 1.0, %v3172_v39 }
 0x91d   :  { %3173 = vrcp.f32 %v486_v40 }
 0x927   :  { %v3174_v41 = vpop.eup %3173 }
 0x928   :  { %v500_v49 = vsub.f32 1.0, %v3174_v41  ;;  %v506_v51 = vmul.f32 %v3174_v41, %v404_v30 }
 0x97e   :  { %v491_v42 = vpop.permute.xlu1 %490 }
 0x97f   :  { %v493_v43 = vmul.f32 %v3174_v41, %v491_v42 }
 0x981   :  { %495 = vrot.lane.b32.xlu0 %v493_v43, %s3337_s28 }
 0x985   :  { %517 = vperm.xlu0 %3152, %v514_v44  }
 0x98f   :  { %v511_v48 = vpop.permute.xlu1 %510 }
 0x9f3   :  { %v496_v45 = vpop.permute.xlu0 %495 }
 0x9f4   :  { %v498_v46 = vadd.f32 %v496_v45, %v406_v36 }
 0x9f6   :  { %3175 = vtanh.f32 %v498_v46 }
 0xa00   :  { %v3176_v47 = vpop.eup %3175 }
 0xa01   :  { %502 = vrot.lane.b32.xlu1 %v3176_v47, %s3338_s5 }
 0xa04   :  { %v518_v53 = vpop.permute.xlu0 %517 }
 0xa05   :  { %v520_v55 = vmul.f32 %v518_v53, %v404_v30  ;;  %v639_v30 = vld [vmem:[%s3887_s2 + $0xa] sm:$0x3] }
 0xa06   :  { %v748_v39 = vsub.f32 1.0, %v639_v30 }
 0xa73   :  { %v503_v50 = vpop.permute.xlu1 %502 }
 0xa74   :  { %v505_v52 = vmul.f32 %v503_v50, %v500_v49 }
 0xa76   :  { %v507_v54 = vadd.f32 %v506_v51, %v505_v52 }
 0xa78   :  { %v513_v56 = vmul.f32 %v511_v48, %v507_v54 }
 0xa7a   :  { %v521_v57 = vadd.f32 %v520_v55, %v513_v56 }
 0xa7c   :  { %525 = vrot.lane.b32.xlu0 %v521_v57, %s3338_s5 }
 0xaee   :  { %v526_v58 = vpop.permute.xlu0 %525 }
 0xaef   :  { %2833 = vmatmul.mubr.msk.f32.vlgmr.msra.gmra.mrb[2].mxu0 %vm57_vm1, %v526_v58  ;;  %v757_v58 = vld [vmem:[%s3885_s0 + $0xc] sm:$0x3] }
 0xaf0   :  { %3055 = vmatpush3.bf16.msra.mxu0 %v3411_v4  ;;  %2854 = vmatprep.mubr.msk.f32.mxu0 %vm3334_vm0, %v3335_v6 }
 0xaf1   :  { %3056 = vmatprep.subr.bf16.mxu0 %v3333_v3 }
 0xaf4   :  { %3058 = vmatpush3.bf16.msra.mxu0 %v3422_v7 }
 0xaf5   :  { %3065 = vmatprep.subr.bf16.mxu0 %v3333_v3 }
 0xbc2   :  { %v595_v59 = vpop.f32.mrb[2].mxu0 }
 0xbc3   :  { %v596_v60 = vadd.f32 %v3444_v11, %v595_v59  ;;  %v2834_v61 = vpop.f32.mrb[3].mxu0 }
 0xbc5   :  { %607 = vrot.lane.b32.xlu1 %v596_v60, %s3337_s28  ;;  %v599_v0 = vadd.f32 %v596_v60, %v523_v63 }
 0xbc7   :  { %v2637_v1 = vmul.f32 -1.442695, %v599_v0 }
 0xbc9   :  { %627 = vperm.xlu1 %3151, %v522_v62   ;;  %3177 = vpow2.f32 %v2637_v1 }
 0xbd3   :  { %v3178_v2 = vpop.eup %3177 }
 0xbd4   :  { %v603_v5 = vadd.f32 1.0, %v3178_v2 }
 0xbd6   :  { %3179 = vrcp.f32 %v603_v5 }
 0xbe0   :  { %v3180_v8 = vpop.eup %3179 }
 0xbe1   :  { %v617_v17 = vsub.f32 1.0, %v3180_v8  ;;  %v623_v19 = vmul.f32 %v3180_v8, %v521_v57 }
 0xc37   :  { %v608_v9 = vpop.permute.xlu1 %607 }
 0xc38   :  { %v610_v10 = vmul.f32 %v3180_v8, %v608_v9 }
 0xc3a   :  { %612 = vrot.lane.b32.xlu0 %v610_v10, %s3337_s28 }
 0xc3e   :  { %634 = vperm.xlu0 %3152, %v631_v12  }
 0xc48   :  { %v628_v16 = vpop.permute.xlu1 %627 }
 0xcac   :  { %v613_v13 = vpop.permute.xlu0 %612 }
 0xcad   :  { %v615_v14 = vadd.f32 %v613_v13, %v523_v63 }
 0xcaf   :  { %3181 = vtanh.f32 %v615_v14 }
 0xcb9   :  { %v3182_v15 = vpop.eup %3181 }
 0xcba   :  { %619 = vrot.lane.b32.xlu1 %v3182_v15, %s3338_s5 }
 0xcbd   :  { %v635_v21 = vpop.permute.xlu0 %634 }
 0xcbe   :  { %v637_v23 = vmul.f32 %v635_v21, %v521_v57  ;;  %v756_v57 = vld [vmem:[%s3887_s2 + $0xc] sm:$0x3] }
 0xcbf   :  { %v865_v2 = vsub.f32 1.0, %v756_v57 }
 0xd2c   :  { %v620_v18 = vpop.permute.xlu1 %619 }
 0xd2d   :  { %v622_v20 = vmul.f32 %v620_v18, %v617_v17 }
 0xd2f   :  { %v624_v22 = vadd.f32 %v623_v19, %v622_v20 }
 0xd31   :  { %v630_v24 = vmul.f32 %v628_v16, %v624_v22 }
 0xd33   :  { %v638_v25 = vadd.f32 %v637_v23, %v630_v24 }
 0xd35   :  { %642 = vrot.lane.b32.xlu0 %v638_v25, %s3338_s5 }
 0xda7   :  { %v643_v26 = vpop.permute.xlu0 %642 }
 0xda8   :  { %2844 = vmatmul.mubr.msk.f32.vlgmr.msra.gmra.mrb[6].mxu1 %vm57_vm1, %v643_v26 }
 0xda9   :  { %3061 = vmatpush3.bf16.msra.mxu1 %v3411_v4  ;;  %2865 = vmatprep.mubr.msk.f32.mxu1 %vm3334_vm0, %v3335_v6 }
 0xdaa   :  { %3062 = vmatprep.subr.bf16.mxu1 %v3333_v3 }
 0xdad   :  { %3064 = vmatpush3.bf16.msra.mxu1 %v3422_v7 }
 0xdae   :  { %3071 = vmatprep.subr.bf16.mxu1 %v3333_v3 }
 0xe7b   :  { %v712_v27 = vpop.f32.mrb[6].mxu1 }
 0xe7c   :  { %v713_v28 = vadd.f32 %v3444_v11, %v712_v27  ;;  %v2845_v29 = vpop.f32.mrb[7].mxu1 }
 0xe7e   :  { %724 = vrot.lane.b32.xlu1 %v713_v28, %s3337_s28  ;;  %v716_v32 = vadd.f32 %v713_v28, %v640_v31 }
 0xe80   :  { %v2639_v33 = vmul.f32 -1.442695, %v716_v32 }
 0xe82   :  { %744 = vperm.xlu1 %3151, %v639_v30   ;;  %3183 = vpow2.f32 %v2639_v33 }
 0xe8c   :  { %v3184_v34 = vpop.eup %3183 }
 0xe8d   :  { %v720_v35 = vadd.f32 1.0, %v3184_v34 }
 0xe8f   :  { %3185 = vrcp.f32 %v720_v35 }
 0xe99   :  { %v3186_v36 = vpop.eup %3185 }
 0xe9a   :  { %v734_v44 = vsub.f32 1.0, %v3186_v36  ;;  %v740_v46 = vmul.f32 %v3186_v36, %v638_v25 }
 0xef0   :  { %v725_v37 = vpop.permute.xlu1 %724 }
 0xef1   :  { %v727_v38 = vmul.f32 %v3186_v36, %v725_v37 }
 0xef3   :  { %729 = vrot.lane.b32.xlu0 %v727_v38, %s3337_s28 }
 0xef7   :  { %751 = vperm.xlu0 %3152, %v748_v39  }
 0xf01   :  { %v745_v43 = vpop.permute.xlu1 %744 }
 0xf65   :  { %v730_v40 = vpop.permute.xlu0 %729 }
 0xf66   :  { %v732_v41 = vadd.f32 %v730_v40, %v640_v31 }
 0xf68   :  { %3187 = vtanh.f32 %v732_v41 }
 0xf72   :  { %v3188_v42 = vpop.eup %3187 }
 0xf73   :  { %736 = vrot.lane.b32.xlu1 %v3188_v42, %s3338_s5 }
 0xf76   :  { %v752_v48 = vpop.permute.xlu0 %751 }
 0xf77   :  { %v754_v50 = vmul.f32 %v752_v48, %v638_v25  ;;  %v873_v25 = vld [vmem:[%s3887_s2 + $0xe] sm:$0x3] }
 0xf78   :  { %v982_v32 = vsub.f32 1.0, %v873_v25 }
 0xfe5   :  { %v737_v45 = vpop.permute.xlu1 %736 }
 0xfe6   :  { %v739_v47 = vmul.f32 %v737_v45, %v734_v44 }
 0xfe8   :  { %v741_v49 = vadd.f32 %v740_v46, %v739_v47 }
 0xfea   :  { %v747_v51 = vmul.f32 %v745_v43, %v741_v49 }
 0xfec   :  { %v755_v52 = vadd.f32 %v754_v50, %v747_v51  ;;  %v990_v50 = vld [vmem:[%s3887_s2 + $0x10] sm:$0x3] }
 0xfed   :  { %v991_v51 = vld [vmem:[%s3885_s0 + $0x10] sm:$0x3] }
 0xfee   :  { %759 = vrot.lane.b32.xlu0 %v755_v52, %s3338_s5 }
0x1060   :  { %v760_v53 = vpop.permute.xlu0 %759 }
0x1061   :  { %2855 = vmatmul.mubr.msk.f32.vlgmr.msra.gmra.mrb[4].mxu0 %vm57_vm1, %v760_v53 }
0x1062   :  { %3067 = vmatpush3.bf16.msra.mxu0 %v3411_v4  ;;  %2876 = vmatprep.mubr.msk.f32.mxu0 %vm3334_vm0, %v3335_v6 }
0x1063   :  { %3068 = vmatprep.subr.bf16.mxu0 %v3333_v3 }
0x1066   :  { %3070 = vmatpush3.bf16.msra.mxu0 %v3422_v7 }
0x1067   :  { %3077 = vmatprep.subr.bf16.mxu0 %v3333_v3 }
0x1134   :  { %v829_v54 = vpop.f32.mrb[4].mxu0 }
0x1135   :  { %v830_v55 = vadd.f32 %v3444_v11, %v829_v54  ;;  %v2856_v56 = vpop.f32.mrb[5].mxu0 }
0x1137   :  { %841 = vrot.lane.b32.xlu1 %v830_v55, %s3337_s28  ;;  %v833_v59 = vadd.f32 %v830_v55, %v757_v58 }
0x1139   :  { %v2641_v60 = vmul.f32 -1.442695, %v833_v59  ;;  %v1099_v59 = vsub.f32 1.0, %v990_v50 }
0x113b   :  { %861 = vperm.xlu1 %3151, %v756_v57   ;;  %3189 = vpow2.f32 %v2641_v60 }
0x1145   :  { %v3190_v61 = vpop.eup %3189 }
0x1146   :  { %v837_v62 = vadd.f32 1.0, %v3190_v61 }
0x1148   :  { %3191 = vrcp.f32 %v837_v62 }
0x1152   :  { %v3192_v63 = vpop.eup %3191 }
0x1153   :  { %v851_v12 = vsub.f32 1.0, %v3192_v63  ;;  %v857_v14 = vmul.f32 %v3192_v63, %v755_v52 }
0x11a9   :  { %v842_v0 = vpop.permute.xlu1 %841 }
0x11aa   :  { %v844_v1 = vmul.f32 %v3192_v63, %v842_v0 }
0x11ac   :  { %846 = vrot.lane.b32.xlu0 %v844_v1, %s3337_s28 }
0x11b0   :  { %868 = vperm.xlu0 %3152, %v865_v2  }
0x11ba   :  { %v862_v10 = vpop.permute.xlu1 %861 }
0x121e   :  { %v847_v5 = vpop.permute.xlu0 %846 }
0x121f   :  { %v849_v8 = vadd.f32 %v847_v5, %v757_v58 }
0x1221   :  { %3193 = vtanh.f32 %v849_v8 }
0x122b   :  { %v3194_v9 = vpop.eup %3193 }
0x122c   :  { %853 = vrot.lane.b32.xlu1 %v3194_v9, %s3338_s5 }
0x122f   :  { %v869_v16 = vpop.permute.xlu0 %868 }
0x1230   :  { %v871_v18 = vmul.f32 %v869_v16, %v755_v52 }
0x129e   :  { %v854_v13 = vpop.permute.xlu1 %853 }
0x129f   :  { %v856_v15 = vmul.f32 %v854_v13, %v851_v12 }
0x12a1   :  { %v858_v17 = vadd.f32 %v857_v14, %v856_v15 }
0x12a3   :  { %v864_v19 = vmul.f32 %v862_v10, %v858_v17 }
0x12a5   :  { %v872_v20 = vadd.f32 %v871_v18, %v864_v19  ;;  %v1107_v18 = vld [vmem:[%s3887_s2 + $0x12] sm:$0x3] }
0x12a6   :  { %v1108_v19 = vld [vmem:[%s3885_s0 + $0x12] sm:$0x3] }
0x12a7   :  { %876 = vrot.lane.b32.xlu0 %v872_v20, %s3338_s5 }
0x1319   :  { %v877_v21 = vpop.permute.xlu0 %876 }
0x131a   :  { %2866 = vmatmul.mubr.msk.f32.vlgmr.msra.gmra.mrb[8].mxu1 %vm57_vm1, %v877_v21 }
0x131b   :  { %3073 = vmatpush3.bf16.msra.mxu1 %v3411_v4  ;;  %2887 = vmatprep.mubr.msk.f32.mxu1 %vm3334_vm0, %v3335_v6  ;;  %v874_v4 = vld [vmem:[%s3885_s0 + $0xe] sm:$0x3] }
0x131c   :  { %3074 = vmatprep.subr.bf16.mxu1 %v3333_v3 }
0x131f   :  { %3076 = vmatpush3.bf16.msra.mxu1 %v3422_v7 }
0x1320   :  { %3083 = vmatprep.subr.bf16.mxu1 %v3333_v3 }
0x13ed   :  { %v946_v22 = vpop.f32.mrb[8].mxu1 }
0x13ee   :  { %v947_v23 = vadd.f32 %v3444_v11, %v946_v22  ;;  %v2867_v24 = vpop.f32.mrb[9].mxu1 }
0x13f0   :  { %958 = vrot.lane.b32.xlu1 %v947_v23, %s3337_s28  ;;  %v950_v26 = vadd.f32 %v947_v23, %v874_v4 }
0x13f2   :  { %v2643_v27 = vmul.f32 -1.442695, %v950_v26 }
0x13f4   :  { %978 = vperm.xlu1 %3151, %v873_v25   ;;  %3195 = vpow2.f32 %v2643_v27 }
0x13fe   :  { %v3196_v7 = vpop.eup %3195 }
0x13ff   :  { %v954_v28 = vadd.f32 1.0, %v3196_v7  ;;  %v44_v7 = vld [vmem:[%s3891_s6] sm:$0xff] }
0x1401   :  { %3197 = vrcp.f32 %v954_v28  ;;  %v45_v28 = vld [vmem:[%s3891_s6 + $0x8] sm:$0xff] }
0x140b   :  { %v3198_v29 = vpop.eup %3197 }
0x140c   :  { %v968_v37 = vsub.f32 1.0, %v3198_v29  ;;  %v974_v39 = vmul.f32 %v3198_v29, %v872_v20 }
0x1462   :  { %v959_v30 = vpop.permute.xlu1 %958 }
0x1463   :  { %v961_v31 = vmul.f32 %v3198_v29, %v959_v30  ;;  %v46_v29 = vld [vmem:[%s3891_s6 + $0x10] sm:$0xff]  ;;  %v3615_v30 = vpack.c.bf16 %v45_v28, %v44_v7 }
0x1465   :  { %963 = vrot.lane.b32.xlu0 %v961_v31, %s3337_s28  ;;  %v47_v31 = vld [vmem:[%s3891_s6 + $0x18] sm:$0xff] }
0x1469   :  { %985 = vperm.xlu0 %3152, %v982_v32   ;;  %v3621_v32 = vpack.c.bf16 %v47_v31, %v46_v29 }
0x1473   :  { %v979_v36 = vpop.permute.xlu1 %978 }
0x14d7   :  { %v964_v33 = vpop.permute.xlu0 %963 }
0x14d8   :  { %v966_v34 = vadd.f32 %v964_v33, %v874_v4  ;;  %v1216_v4 = vsub.f32 1.0, %v1107_v18 }
0x14da   :  { %3199 = vtanh.f32 %v966_v34 }
0x14e4   :  { %v3200_v35 = vpop.eup %3199 }
0x14e5   :  { %970 = vrot.lane.b32.xlu1 %v3200_v35, %s3338_s5 }
0x14e8   :  { %v986_v41 = vpop.permute.xlu0 %985 }
0x14e9   :  { %v988_v43 = vmul.f32 %v986_v41, %v872_v20 }
0x1557   :  { %v971_v38 = vpop.permute.xlu1 %970 }
0x1558   :  { %v973_v40 = vmul.f32 %v971_v38, %v968_v37 }
0x155a   :  { %v975_v42 = vadd.f32 %v974_v39, %v973_v40 }
0x155c   :  { %v981_v44 = vmul.f32 %v979_v36, %v975_v42 }
0x155e   :  { %v989_v45 = vadd.f32 %v988_v43, %v981_v44 }
0x1560   :  { %993 = vrot.lane.b32.xlu0 %v989_v45, %s3338_s5 }
0x15d2   :  { %v994_v46 = vpop.permute.xlu0 %993 }
0x15d3   :  { %2877 = vmatmul.mubr.msk.f32.vlgmr.msra.gmra.mrb[6].mxu0 %vm57_vm1, %v994_v46 }
0x15d4   :  { %2898 = vmatprep.mubr.msk.f32.mxu0 %vm3334_vm0, %v3335_v6  ;;  %3079 = vmatpush3.bf16.msra.mxu0 %v3615_v30 }
0x15d5   :  { %3080 = vmatprep.subr.bf16.mxu0 %v3333_v3 }
0x15d8   :  { %3082 = vmatpush3.bf16.msra.mxu0 %v3621_v32 }
0x15d9   :  { %3089 = vmatprep.subr.bf16.mxu0 %v3333_v3 }
0x16a6   :  { %v1063_v47 = vpop.f32.mrb[6].mxu0 }
0x16a7   :  { %v1064_v48 = vadd.f32 %v3444_v11, %v1063_v47  ;;  %v2878_v49 = vpop.f32.mrb[7].mxu0 }
0x16a8   :  { %v1230_v49 = vld [vmem:[%s3887_s2] sm:$0x3] }
0x16a9   :  { %1075 = vrot.lane.b32.xlu1 %v1064_v48, %s3337_s28  ;;  %v1067_v52 = vadd.f32 %v1064_v48, %v991_v51 }
0x16ab   :  { %v2645_v53 = vmul.f32 -1.442695, %v1067_v52 }
0x16ad   :  { %1095 = vperm.xlu1 %3151, %v990_v50   ;;  %3201 = vpow2.f32 %v2645_v53  ;;  %v1231_v50 = vld [vmem:[%s3886_s1] sm:$0x3] }
0x16b7   :  { %v3202_v54 = vpop.eup %3201 }
0x16b8   :  { %v1071_v55 = vadd.f32 1.0, %v3202_v54 }
0x16ba   :  { %3203 = vrcp.f32 %v1071_v55 }
0x16c4   :  { %v3204_v56 = vpop.eup %3203 }
0x16c5   :  { %v1085_v0 = vsub.f32 1.0, %v3204_v56  ;;  %v1091_v2 = vmul.f32 %v3204_v56, %v989_v45 }
0x171b   :  { %v1076_v57 = vpop.permute.xlu1 %1075 }
0x171c   :  { %v1078_v58 = vmul.f32 %v3204_v56, %v1076_v57 }
0x171e   :  { %1080 = vrot.lane.b32.xlu0 %v1078_v58, %s3337_s28  ;;  %v1342_v58 = vsub.f32 1.0, %v1230_v49 }
0x1722   :  { %1102 = vperm.xlu0 %3152, %v1099_v59  }
0x172c   :  { %v1096_v63 = vpop.permute.xlu1 %1095 }
0x1790   :  { %v1081_v60 = vpop.permute.xlu0 %1080 }
0x1791   :  { %v1083_v61 = vadd.f32 %v1081_v60, %v991_v51 }
0x1793   :  { %3205 = vtanh.f32 %v1083_v61 }
0x179d   :  { %v3206_v62 = vpop.eup %3205 }
0x179e   :  { %1087 = vrot.lane.b32.xlu1 %v3206_v62, %s3338_s5 }
0x17a1   :  { %v1103_v8 = vpop.permute.xlu0 %1102 }
0x17a2   :  { %v1105_v10 = vmul.f32 %v1103_v8, %v989_v45  ;;  %v3643_v45 = vld [vmem:[%s3892_s7] ss:$0 sm:$0xff] }
0x1810   :  { %v1088_v1 = vpop.permute.xlu1 %1087 }
0x1811   :  { %v1090_v5 = vmul.f32 %v1088_v1, %v1085_v0 }
0x1813   :  { %v1092_v9 = vadd.f32 %v1091_v2, %v1090_v5 }
0x1815   :  { %v1098_v12 = vmul.f32 %v1096_v63, %v1092_v9 }
0x1817   :  { %v1106_v13 = vadd.f32 %v1105_v10, %v1098_v12 }
0x1819   :  { %1110 = vrot.lane.b32.xlu0 %v1106_v13, %s3338_s5 }
0x188b   :  { %v1111_v14 = vpop.permute.xlu0 %1110 }
0x188c   :  { %2888 = vmatmul.mubr.msk.f32.vlgmr.msra.gmra.mrb[10].mxu1 %vm57_vm1, %v1111_v14 }
0x188d   :  { %2909 = vmatprep.mubr.msk.f32.mxu1 %vm3334_vm0, %v3335_v6  ;;  %3085 = vmatpush3.bf16.msra.mxu1 %v3615_v30 }
0x188e   :  { %3086 = vmatprep.subr.bf16.mxu1 %v3333_v3 }
0x1891   :  { %3088 = vmatpush3.bf16.msra.mxu1 %v3621_v32 }
0x1892   :  { %3095 = vmatprep.subr.bf16.mxu1 %v3333_v3 }
0x195f   :  { %v1180_v15 = vpop.f32.mrb[10].mxu1 }
0x1960   :  { %v1181_v16 = vadd.f32 %v3444_v11, %v1180_v15  ;;  %v2889_v17 = vpop.f32.mrb[11].mxu1 }
0x1961   :  { %v1355_v17 = vld [vmem:[%s3887_s2 + $0x2] sm:$0x3] }
0x1962   :  { %1192 = vrot.lane.b32.xlu1 %v1181_v16, %s3337_s28  ;;  %v1184_v20 = vadd.f32 %v1181_v16, %v1108_v19 }
0x1964   :  { %v2647_v21 = vmul.f32 -1.442695, %v1184_v20 }
0x1966   :  { %1212 = vperm.xlu1 %3151, %v1107_v18   ;;  %3207 = vpow2.f32 %v2647_v21  ;;  %v1356_v18 = vld [vmem:[%s3886_s1 + $0x2] sm:$0x3] }
0x1970   :  { %v3208_v22 = vpop.eup %3207 }
0x1971   :  { %v1188_v23 = vadd.f32 1.0, %v3208_v22 }
0x1973   :  { %3209 = vrcp.f32 %v1188_v23 }
0x197d   :  { %v3210_v24 = vpop.eup %3209 }
0x197e   :  { %v1202_v35 = vsub.f32 1.0, %v3210_v24  ;;  %v1208_v37 = vmul.f32 %v3210_v24, %v1106_v13 }
0x19d4   :  { %v1193_v11 = vpop.permute.xlu1 %1192 }
0x19d5   :  { %v1195_v25 = vmul.f32 %v3210_v24, %v1193_v11 }
0x19d7   :  { %1197 = vrot.lane.b32.xlu0 %v1195_v25, %s3337_s28  ;;  %v1461_v25 = vsub.f32 1.0, %v1355_v17 }
0x19db   :  { %1219 = vperm.xlu0 %3152, %v1216_v4  }
0x19e5   :  { %v1213_v34 = vpop.permute.xlu1 %1212 }
0x1a49   :  { %v1198_v26 = vpop.permute.xlu0 %1197 }
0x1a4a   :  { %v1200_v27 = vadd.f32 %v1198_v26, %v1108_v19 }
0x1a4c   :  { %3211 = vtanh.f32 %v1200_v27 }
0x1a56   :  { %v3212_v33 = vpop.eup %3211 }
0x1a57   :  { %1204 = vrot.lane.b32.xlu1 %v3212_v33, %s3338_s5 }
0x1a5a   :  { %v1220_v39 = vpop.permute.xlu0 %1219 }
0x1a5b   :  { %v1222_v41 = vmul.f32 %v1220_v39, %v1106_v13 }
0x1ac9   :  { %v1205_v36 = vpop.permute.xlu1 %1204 }
0x1aca   :  { %v1207_v38 = vmul.f32 %v1205_v36, %v1202_v35 }
0x1acc   :  { %v1209_v40 = vadd.f32 %v1208_v37, %v1207_v38 }
0x1ace   :  { %v1215_v42 = vmul.f32 %v1213_v34, %v1209_v40 }
0x1ad0   :  { %v1223_v43 = vadd.f32 %v1222_v41, %v1215_v42 }
0x1ad2   :  { %1225 = vrot.lane.b32.xlu0 %v1223_v43, %s3338_s5 }
0x1b44   :  { %v1226_v44 = vpop.permute.xlu0 %1225 }
0x1b45   :  { %2899 = vmatmul.mubr.msk.f32.vlgmr.msra.gmra.mrb[8].mxu0 %vm57_vm1, %v1226_v44  ;;  %1229 = vst.msk [vmem:[#allocation3] sm:$0x3] %vm1228_vm2, %v1226_v44  ;;  %v1475_v44 = vld [vmem:[%s3886_s1 + $0x4] sm:$0x3] }
0x1b46   :  { %3091 = vmatpush3.bf16.msra.mxu0 %v3615_v30  ;;  %2920 = vmatprep.mubr.msk.f32.mxu0 %vm3334_vm0, %v3335_v6 }
0x1b47   :  { %3092 = vmatprep.subr.bf16.mxu0 %v3333_v3 }
0x1b4a   :  { %3094 = vmatpush3.bf16.msra.mxu0 %v3621_v32 }
0x1b4b   :  { %3101 = vmatprep.subr.bf16.mxu0 %v3333_v3 }
0x1c18   :  { %v1306_v46 = vpop.f32.mrb[8].mxu0 }
0x1c19   :  { %v1307_v47 = vadd.f32 %v3643_v45, %v1306_v46  ;;  %v2900_v48 = vpop.f32.mrb[9].mxu0 }
0x1c1b   :  { %1318 = vrot.lane.b32.xlu1 %v1307_v47, %s3337_s28  ;;  %v1310_v51 = vadd.f32 %v1307_v47, %v1231_v50 }
0x1c1d   :  { %v2650_v52 = vmul.f32 -1.442695, %v1310_v51 }
0x1c1f   :  { %1338 = vperm.xlu1 %3151, %v1230_v49   ;;  %3213 = vpow2.f32 %v2650_v52 }
0x1c29   :  { %v3214_v53 = vpop.eup %3213 }
0x1c2a   :  { %v1314_v54 = vadd.f32 1.0, %v3214_v53 }
0x1c2c   :  { %3215 = vrcp.f32 %v1314_v54 }
0x1c36   :  { %v3216_v55 = vpop.eup %3215 }
0x1c37   :  { %v1328_v63 = vsub.f32 1.0, %v3216_v55  ;;  %v1334_v1 = vmul.f32 %v3216_v55, %v1223_v43 }
0x1c8d   :  { %v1319_v56 = vpop.permute.xlu1 %1318 }
0x1c8e   :  { %v1321_v57 = vmul.f32 %v3216_v55, %v1319_v56 }
0x1c90   :  { %1323 = vrot.lane.b32.xlu0 %v1321_v57, %s3337_s28 }
0x1c94   :  { %1345 = vperm.xlu0 %3152, %v1342_v58  }
0x1c9e   :  { %v1339_v62 = vpop.permute.xlu1 %1338 }
0x1d02   :  { %v1324_v59 = vpop.permute.xlu0 %1323 }
0x1d03   :  { %v1326_v60 = vadd.f32 %v1324_v59, %v1231_v50 }
0x1d05   :  { %3217 = vtanh.f32 %v1326_v60 }
0x1d0f   :  { %v3218_v61 = vpop.eup %3217 }
0x1d10   :  { %1330 = vrot.lane.b32.xlu1 %v3218_v61, %s3338_s5 }
0x1d13   :  { %v1346_v5 = vpop.permute.xlu0 %1345 }
0x1d14   :  { %v1348_v9 = vmul.f32 %v1346_v5, %v1223_v43  ;;  %v1474_v43 = vld [vmem:[%s3887_s2 + $0x4] sm:$0x3] }
0x1d15   :  { %v1580_v53 = vsub.f32 1.0, %v1474_v43 }
0x1d82   :  { %v1331_v0 = vpop.permute.xlu1 %1330 }
0x1d83   :  { %v1333_v2 = vmul.f32 %v1331_v0, %v1328_v63 }
0x1d85   :  { %v1335_v8 = vadd.f32 %v1334_v1, %v1333_v2 }
0x1d87   :  { %v1341_v10 = vmul.f32 %v1339_v62, %v1335_v8 }
0x1d89   :  { %v1349_v12 = vadd.f32 %v1348_v9, %v1341_v10 }
0x1d8b   :  { %1351 = vrot.lane.b32.xlu0 %v1349_v12, %s3338_s5 }
0x1dfd   :  { %v1352_v13 = vpop.permute.xlu0 %1351 }
0x1dfe   :  { %1354 = vst.msk [vmem:[#allocation2] sm:$0x3] %vm1228_vm2, %v1352_v13  ;;  %2910 = vmatmul.mubr.msk.f32.vlgmr.msra.gmra.mrb[12].mxu1 %vm57_vm1, %v1352_v13  ;;  %v1594_v13 = vld [vmem:[%s3886_s1 + $0x6] sm:$0x3] }
0x1dff   :  { %3097 = vmatpush3.bf16.msra.mxu1 %v3615_v30  ;;  %2931 = vmatprep.mubr.msk.f32.mxu1 %vm3334_vm0, %v3335_v6 }
0x1e00   :  { %3098 = vmatprep.subr.bf16.mxu1 %v3333_v3 }
0x1e03   :  { %3100 = vmatpush3.bf16.msra.mxu1 %v3621_v32 }
0x1e04   :  { %3107 = vmatprep.subr.bf16.mxu1 %v3333_v3 }
0x1ed1   :  { %v1425_v14 = vpop.f32.mrb[12].mxu1 }
0x1ed2   :  { %v1426_v15 = vadd.f32 %v3643_v45, %v1425_v14  ;;  %v2911_v16 = vpop.f32.mrb[13].mxu1 }
0x1ed4   :  { %1437 = vrot.lane.b32.xlu1 %v1426_v15, %s3337_s28  ;;  %v1429_v19 = vadd.f32 %v1426_v15, %v1356_v18 }
0x1ed6   :  { %v2652_v20 = vmul.f32 -1.442695, %v1429_v19 }
0x1ed8   :  { %1457 = vperm.xlu1 %3151, %v1355_v17   ;;  %3219 = vpow2.f32 %v2652_v20 }
0x1ee2   :  { %v3220_v21 = vpop.eup %3219 }
0x1ee3   :  { %v1433_v22 = vadd.f32 1.0, %v3220_v21 }
0x1ee5   :  { %3221 = vrcp.f32 %v1433_v22 }
0x1eef   :  { %v3222_v23 = vpop.eup %3221 }
0x1ef0   :  { %v1447_v28 = vsub.f32 1.0, %v3222_v23  ;;  %v1453_v31 = vmul.f32 %v3222_v23, %v1349_v12 }
0x1f46   :  { %v1438_v24 = vpop.permute.xlu1 %1437 }
0x1f47   :  { %v1440_v11 = vmul.f32 %v3222_v23, %v1438_v24 }
0x1f49   :  { %1442 = vrot.lane.b32.xlu0 %v1440_v11, %s3337_s28 }
0x1f4d   :  { %1464 = vperm.xlu0 %3152, %v1461_v25  }
0x1f57   :  { %v1458_v7 = vpop.permute.xlu1 %1457 }
0x1fbb   :  { %v1443_v4 = vpop.permute.xlu0 %1442 }
0x1fbc   :  { %v1445_v26 = vadd.f32 %v1443_v4, %v1356_v18 }
0x1fbe   :  { %3223 = vtanh.f32 %v1445_v26 }
0x1fc8   :  { %v3224_v27 = vpop.eup %3223 }
0x1fc9   :  { %1449 = vrot.lane.b32.xlu1 %v3224_v27, %s3338_s5 }
0x1fcc   :  { %v1465_v34 = vpop.permute.xlu0 %1464 }
0x1fcd   :  { %v1467_v36 = vmul.f32 %v1465_v34, %v1349_v12  ;;  %v1593_v12 = vld [vmem:[%s3887_s2 + $0x6] sm:$0x3] }
0x1fce   :  { %v1699_v21 = vsub.f32 1.0, %v1593_v12 }
0x203b   :  { %v1450_v29 = vpop.permute.xlu1 %1449 }
0x203c   :  { %v1452_v33 = vmul.f32 %v1450_v29, %v1447_v28 }
0x203e   :  { %v1454_v35 = vadd.f32 %v1453_v31, %v1452_v33 }
0x2040   :  { %v1460_v37 = vmul.f32 %v1458_v7, %v1454_v35 }
0x2042   :  { %v1468_v38 = vadd.f32 %v1467_v36, %v1460_v37 }
0x2044   :  { %1470 = vrot.lane.b32.xlu0 %v1468_v38, %s3338_s5 }
0x20b6   :  { %v1471_v39 = vpop.permute.xlu0 %1470 }
0x20b7   :  { %1473 = vst.msk [vmem:[#allocation2 + $0x2] sm:$0x3] %vm1228_vm2, %v1471_v39  ;;  %2921 = vmatmul.mubr.msk.f32.vlgmr.msra.gmra.mrb[10].mxu0 %vm57_vm1, %v1471_v39  ;;  %v1713_v39 = vld [vmem:[%s3886_s1 + $0x8] sm:$0x3] }
0x20b8   :  { %3103 = vmatpush3.bf16.msra.mxu0 %v3615_v30  ;;  %2942 = vmatprep.mubr.msk.f32.mxu0 %vm3334_vm0, %v3335_v6 }
0x20b9   :  { %3104 = vmatprep.subr.bf16.mxu0 %v3333_v3 }
0x20bc   :  { %3106 = vmatpush3.bf16.msra.mxu0 %v3621_v32 }
0x20bd   :  { %3113 = vmatprep.subr.bf16.mxu0 %v3333_v3 }
0x218a   :  { %v1544_v40 = vpop.f32.mrb[10].mxu0 }
0x218b   :  { %v1545_v41 = vadd.f32 %v3643_v45, %v1544_v40  ;;  %v2922_v42 = vpop.f32.mrb[11].mxu0 }
0x218d   :  { %1556 = vrot.lane.b32.xlu1 %v1545_v41, %s3337_s28  ;;  %v1548_v46 = vadd.f32 %v1545_v41, %v1475_v44 }
0x218f   :  { %v2654_v47 = vmul.f32 -1.442695, %v1548_v46 }
0x2191   :  { %1576 = vperm.xlu1 %3151, %v1474_v43   ;;  %3225 = vpow2.f32 %v2654_v47 }
0x219b   :  { %v3226_v48 = vpop.eup %3225 }
0x219c   :  { %v1552_v49 = vadd.f32 1.0, %v3226_v48 }
0x219e   :  { %3227 = vrcp.f32 %v1552_v49 }
0x21a8   :  { %v3228_v50 = vpop.eup %3227 }
0x21a9   :  { %v1566_v58 = vsub.f32 1.0, %v3228_v50  ;;  %v1572_v60 = vmul.f32 %v3228_v50, %v1468_v38 }
0x21ff   :  { %v1557_v51 = vpop.permute.xlu1 %1556 }
0x2200   :  { %v1559_v52 = vmul.f32 %v3228_v50, %v1557_v51 }
0x2202   :  { %1561 = vrot.lane.b32.xlu0 %v1559_v52, %s3337_s28 }
0x2206   :  { %1583 = vperm.xlu0 %3152, %v1580_v53  }
0x2210   :  { %v1577_v57 = vpop.permute.xlu1 %1576 }
0x2274   :  { %v1562_v54 = vpop.permute.xlu0 %1561 }
0x2275   :  { %v1564_v55 = vadd.f32 %v1562_v54, %v1475_v44 }
0x2277   :  { %3229 = vtanh.f32 %v1564_v55 }
0x2281   :  { %v3230_v56 = vpop.eup %3229 }
0x2282   :  { %1568 = vrot.lane.b32.xlu1 %v3230_v56, %s3338_s5 }
0x2285   :  { %v1584_v62 = vpop.permute.xlu0 %1583 }
0x2286   :  { %v1586_v0 = vmul.f32 %v1584_v62, %v1468_v38  ;;  %v1712_v38 = vld [vmem:[%s3887_s2 + $0x8] sm:$0x3] }
0x2287   :  { %v1818_v48 = vsub.f32 1.0, %v1712_v38 }
0x22f4   :  { %v1569_v59 = vpop.permute.xlu1 %1568 }
0x22f5   :  { %v1571_v61 = vmul.f32 %v1569_v59, %v1566_v58 }
0x22f7   :  { %v1573_v63 = vadd.f32 %v1572_v60, %v1571_v61 }
0x22f9   :  { %v1579_v1 = vmul.f32 %v1577_v57, %v1573_v63 }
0x22fb   :  { %v1587_v2 = vadd.f32 %v1586_v0, %v1579_v1 }
0x22fd   :  { %1589 = vrot.lane.b32.xlu0 %v1587_v2, %s3338_s5 }
0x236f   :  { %v1590_v5 = vpop.permute.xlu0 %1589 }
0x2370   :  { %1592 = vst.msk [vmem:[#allocation2 + $0x4] sm:$0x3] %vm1228_vm2, %v1590_v5  ;;  %2932 = vmatmul.mubr.msk.f32.vlgmr.msra.gmra.mrb[14].mxu1 %vm57_vm1, %v1590_v5  ;;  %v1832_v5 = vld [vmem:[%s3886_s1 + $0xa] sm:$0x3] }
0x2371   :  { %3109 = vmatpush3.bf16.msra.mxu1 %v3615_v30  ;;  %2953 = vmatprep.mubr.msk.f32.mxu1 %vm3334_vm0, %v3335_v6 }
0x2372   :  { %3110 = vmatprep.subr.bf16.mxu1 %v3333_v3 }
0x2375   :  { %3112 = vmatpush3.bf16.msra.mxu1 %v3621_v32 }
0x2376   :  { %3119 = vmatprep.subr.bf16.mxu1 %v3333_v3 }
0x2443   :  { %v1663_v8 = vpop.f32.mrb[14].mxu1 }
0x2444   :  { %v1664_v9 = vadd.f32 %v3643_v45, %v1663_v8  ;;  %v2933_v10 = vpop.f32.mrb[15].mxu1 }
0x2446   :  { %1675 = vrot.lane.b32.xlu1 %v1664_v9, %s3337_s28  ;;  %v1667_v14 = vadd.f32 %v1664_v9, %v1594_v13 }
0x2448   :  { %v2656_v15 = vmul.f32 -1.442695, %v1667_v14 }
0x244a   :  { %1695 = vperm.xlu1 %3151, %v1593_v12   ;;  %3231 = vpow2.f32 %v2656_v15 }
0x2454   :  { %v3232_v16 = vpop.eup %3231 }
0x2455   :  { %v1671_v17 = vadd.f32 1.0, %v3232_v16 }
0x2457   :  { %3233 = vrcp.f32 %v1671_v17 }
0x2461   :  { %v3234_v18 = vpop.eup %3233 }
0x2462   :  { %v1685_v25 = vsub.f32 1.0, %v3234_v18  ;;  %v1691_v26 = vmul.f32 %v3234_v18, %v1587_v2 }
0x24b8   :  { %v1676_v19 = vpop.permute.xlu1 %1675 }
0x24b9   :  { %v1678_v20 = vmul.f32 %v3234_v18, %v1676_v19 }
0x24bb   :  { %1680 = vrot.lane.b32.xlu0 %v1678_v20, %s3337_s28 }
0x24bf   :  { %1702 = vperm.xlu0 %3152, %v1699_v21  }
0x24c9   :  { %v1696_v11 = vpop.permute.xlu1 %1695 }
0x252d   :  { %v1681_v22 = vpop.permute.xlu0 %1680 }
0x252e   :  { %v1683_v23 = vadd.f32 %v1681_v22, %v1594_v13 }
0x2530   :  { %3235 = vtanh.f32 %v1683_v23 }
0x253a   :  { %v3236_v24 = vpop.eup %3235 }
0x253b   :  { %1687 = vrot.lane.b32.xlu1 %v3236_v24, %s3338_s5 }
0x253e   :  { %v1703_v7 = vpop.permute.xlu0 %1702 }
0x253f   :  { %v1705_v29 = vmul.f32 %v1703_v7, %v1587_v2  ;;  %v1831_v2 = vld [vmem:[%s3887_s2 + $0xa] sm:$0x3] }
0x2540   :  { %v1937_v16 = vsub.f32 1.0, %v1831_v2 }
0x25ad   :  { %v1688_v4 = vpop.permute.xlu1 %1687 }
0x25ae   :  { %v1690_v27 = vmul.f32 %v1688_v4, %v1685_v25 }
0x25b0   :  { %v1692_v28 = vadd.f32 %v1691_v26, %v1690_v27 }
0x25b2   :  { %v1698_v31 = vmul.f32 %v1696_v11, %v1692_v28 }
0x25b4   :  { %v1706_v33 = vadd.f32 %v1705_v29, %v1698_v31 }
0x25b6   :  { %1708 = vrot.lane.b32.xlu0 %v1706_v33, %s3338_s5 }
0x2628   :  { %v1709_v34 = vpop.permute.xlu0 %1708 }
0x2629   :  { %1711 = vst.msk [vmem:[#allocation2 + $0x6] sm:$0x3] %vm1228_vm2, %v1709_v34  ;;  %2943 = vmatmul.mubr.msk.f32.vlgmr.msra.gmra.mrb[12].mxu0 %vm57_vm1, %v1709_v34  ;;  %v1951_v34 = vld [vmem:[%s3886_s1 + $0xc] sm:$0x3] }
0x262a   :  { %3115 = vmatpush3.bf16.msra.mxu0 %v3615_v30  ;;  %2964 = vmatprep.mubr.msk.f32.mxu0 %vm3334_vm0, %v3335_v6 }
0x262b   :  { %3116 = vmatprep.subr.bf16.mxu0 %v3333_v3 }
0x262e   :  { %3118 = vmatpush3.bf16.msra.mxu0 %v3621_v32 }
0x262f   :  { %3125 = vmatprep.subr.bf16.mxu0 %v3333_v3 }
0x26fc   :  { %v1782_v35 = vpop.f32.mrb[12].mxu0 }
0x26fd   :  { %v1783_v36 = vadd.f32 %v3643_v45, %v1782_v35  ;;  %v2944_v37 = vpop.f32.mrb[13].mxu0 }
0x26ff   :  { %1794 = vrot.lane.b32.xlu1 %v1783_v36, %s3337_s28  ;;  %v1786_v40 = vadd.f32 %v1783_v36, %v1713_v39 }
0x2701   :  { %v2658_v41 = vmul.f32 -1.442695, %v1786_v40 }
0x2703   :  { %1814 = vperm.xlu1 %3151, %v1712_v38   ;;  %3237 = vpow2.f32 %v2658_v41 }
0x270d   :  { %v3238_v42 = vpop.eup %3237 }
0x270e   :  { %v1790_v43 = vadd.f32 1.0, %v3238_v42 }
0x2710   :  { %3239 = vrcp.f32 %v1790_v43 }
0x271a   :  { %v3240_v44 = vpop.eup %3239 }
0x271b   :  { %v1804_v53 = vsub.f32 1.0, %v3240_v44  ;;  %v1810_v55 = vmul.f32 %v3240_v44, %v1706_v33 }
0x2771   :  { %v1795_v46 = vpop.permute.xlu1 %1794 }
0x2772   :  { %v1797_v47 = vmul.f32 %v3240_v44, %v1795_v46 }
0x2774   :  { %1799 = vrot.lane.b32.xlu0 %v1797_v47, %s3337_s28 }
0x2778   :  { %1821 = vperm.xlu0 %3152, %v1818_v48  }
0x2782   :  { %v1815_v52 = vpop.permute.xlu1 %1814 }
0x27e6   :  { %v1800_v49 = vpop.permute.xlu0 %1799 }
0x27e7   :  { %v1802_v50 = vadd.f32 %v1800_v49, %v1713_v39 }
0x27e9   :  { %3241 = vtanh.f32 %v1802_v50 }
0x27f3   :  { %v3242_v51 = vpop.eup %3241 }
0x27f4   :  { %1806 = vrot.lane.b32.xlu1 %v3242_v51, %s3338_s5 }
0x27f7   :  { %v1822_v57 = vpop.permute.xlu0 %1821 }
0x27f8   :  { %v1824_v59 = vmul.f32 %v1822_v57, %v1706_v33  ;;  %v1950_v33 = vld [vmem:[%s3887_s2 + $0xc] sm:$0x3] }
0x27f9   :  { %v2056_v42 = vsub.f32 1.0, %v1950_v33 }
0x2866   :  { %v1807_v54 = vpop.permute.xlu1 %1806 }
0x2867   :  { %v1809_v56 = vmul.f32 %v1807_v54, %v1804_v53 }
0x2869   :  { %v1811_v58 = vadd.f32 %v1810_v55, %v1809_v56 }
0x286b   :  { %v1817_v60 = vmul.f32 %v1815_v52, %v1811_v58 }
0x286d   :  { %v1825_v61 = vadd.f32 %v1824_v59, %v1817_v60 }
0x286f   :  { %1827 = vrot.lane.b32.xlu0 %v1825_v61, %s3338_s5 }
0x28e1   :  { %v1828_v62 = vpop.permute.xlu0 %1827 }
0x28e2   :  { %1830 = vst.msk [vmem:[#allocation2 + $0x8] sm:$0x3] %vm1228_vm2, %v1828_v62  ;;  %2954 = vmatmul.mubr.msk.f32.vlgmr.msra.gmra.mrb[16].mxu1 %vm57_vm1, %v1828_v62 }
0x28e3   :  { %3121 = vmatpush3.bf16.msra.mxu1 %v3615_v30  ;;  %2975 = vmatprep.mubr.msk.f32.mxu1 %vm3334_vm0, %v3335_v6 }
0x28e4   :  { %3122 = vmatprep.subr.bf16.mxu1 %v3333_v3 }
0x28e7   :  { %3124 = vmatpush3.bf16.msra.mxu1 %v3621_v32 }
0x28e8   :  { %3131 = vmatprep.subr.bf16.mxu1 %v3333_v3 }
0x29b5   :  { %v1901_v63 = vpop.f32.mrb[16].mxu1 }
0x29b6   :  { %v1902_v0 = vadd.f32 %v3643_v45, %v1901_v63  ;;  %v2955_v1 = vpop.f32.mrb[17].mxu1 }
0x29b8   :  { %1913 = vrot.lane.b32.xlu1 %v1902_v0, %s3337_s28  ;;  %v1905_v8 = vadd.f32 %v1902_v0, %v1832_v5 }
0x29ba   :  { %v2660_v9 = vmul.f32 -1.442695, %v1905_v8 }
0x29bc   :  { %1933 = vperm.xlu1 %3151, %v1831_v2   ;;  %3243 = vpow2.f32 %v2660_v9 }
0x29c6   :  { %v3244_v10 = vpop.eup %3243 }
0x29c7   :  { %v1909_v12 = vadd.f32 1.0, %v3244_v10 }
0x29c9   :  { %3245 = vrcp.f32 %v1909_v12 }
0x29d3   :  { %v3246_v13 = vpop.eup %3245 }
0x29d4   :  { %v1923_v21 = vsub.f32 1.0, %v3246_v13  ;;  %v1929_v23 = vmul.f32 %v3246_v13, %v1825_v61 }
0x2a2a   :  { %v1914_v14 = vpop.permute.xlu1 %1913 }
0x2a2b   :  { %v1916_v15 = vmul.f32 %v3246_v13, %v1914_v14 }
0x2a2d   :  { %1918 = vrot.lane.b32.xlu0 %v1916_v15, %s3337_s28 }
0x2a31   :  { %1940 = vperm.xlu0 %3152, %v1937_v16  }
0x2a3b   :  { %v1934_v20 = vpop.permute.xlu1 %1933 }
0x2a9f   :  { %v1919_v17 = vpop.permute.xlu0 %1918 }
0x2aa0   :  { %v1921_v18 = vadd.f32 %v1919_v17, %v1832_v5 }
0x2aa2   :  { %3247 = vtanh.f32 %v1921_v18 }
0x2aac   :  { %v3248_v19 = vpop.eup %3247 }
0x2aad   :  { %1925 = vrot.lane.b32.xlu1 %v3248_v19, %s3338_s5 }
0x2ab0   :  { %v1941_v11 = vpop.permute.xlu0 %1940 }
0x2ab1   :  { %v1943_v4 = vmul.f32 %v1941_v11, %v1825_v61  ;;  %v2069_v61 = vld [vmem:[%s3887_s2 + $0xe] sm:$0x3] }
0x2ab2   :  { %v2175_v8 = vsub.f32 1.0, %v2069_v61 }
0x2b1f   :  { %v1926_v22 = vpop.permute.xlu1 %1925 }
0x2b20   :  { %v1928_v24 = vmul.f32 %v1926_v22, %v1923_v21 }
0x2b22   :  { %v1930_v25 = vadd.f32 %v1929_v23, %v1928_v24  ;;  %v2429_v23 = vld [vmem:[%s3893_s8] sm:$0xff]  ;;  %v2430_v24 = vld [vmem:[%s3893_s8 + $0x8] sm:$0xff] }
0x2b23   :  { %v3138_v11 = vpack.c.bf16 %v2430_v24, %v2429_v23 }
0x2b24   :  { %v1936_v26 = vmul.f32 %v1934_v20, %v1930_v25  ;;  %v2431_v25 = vld [vmem:[%s3893_s8 + $0x10] sm:$0xff] }
0x2b26   :  { %v1944_v27 = vadd.f32 %v1943_v4, %v1936_v26  ;;  %v2432_v4 = vld [vmem:[%s3893_s8 + $0x18] sm:$0xff] }
0x2b28   :  { %1946 = vrot.lane.b32.xlu0 %v1944_v27, %s3338_s5 }
0x2b9a   :  { %v1947_v7 = vpop.permute.xlu0 %1946 }
0x2b9b   :  { %1949 = vst.msk [vmem:[#allocation2 + $0xa] sm:$0x3] %vm1228_vm2, %v1947_v7  ;;  %2965 = vmatmul.mubr.msk.f32.vlgmr.msra.gmra.mrb[14].mxu0 %vm57_vm1, %v1947_v7  ;;  %v2426_v7 = vld [vmem:[#allocation2] sm:$0xff] }
0x2b9c   :  { %3127 = vmatpush3.bf16.msra.mxu0 %v3615_v30  ;;  %2986 = vmatprep.mubr.msk.f32.mxu0 %vm3334_vm0, %v3335_v6 }
0x2b9d   :  { %3128 = vmatprep.subr.bf16.mxu0 %v3333_v3 }
0x2ba0   :  { %3130 = vmatpush3.bf16.msra.mxu0 %v3621_v32 }
0x2ba1   :  { %3137 = vmatprep.subr.bf16.mxu0 %v3333_v3 }
0x2c6e   :  { %v2020_v28 = vpop.f32.mrb[14].mxu0 }
0x2c6f   :  { %v2021_v29 = vadd.f32 %v3643_v45, %v2020_v28  ;;  %v2966_v31 = vpop.f32.mrb[15].mxu0 }
0x2c71   :  { %2032 = vrot.lane.b32.xlu1 %v2021_v29, %s3337_s28  ;;  %v2024_v35 = vadd.f32 %v2021_v29, %v1951_v34 }
0x2c73   :  { %v2662_v36 = vmul.f32 -1.442695, %v2024_v35 }
0x2c75   :  { %2052 = vperm.xlu1 %3151, %v1950_v33   ;;  %3249 = vpow2.f32 %v2662_v36 }
0x2c7f   :  { %v3250_v37 = vpop.eup %3249 }
0x2c80   :  { %v2028_v38 = vadd.f32 1.0, %v3250_v37 }
0x2c82   :  { %3251 = vrcp.f32 %v2028_v38 }
0x2c8c   :  { %v3252_v39 = vpop.eup %3251 }
0x2c8d   :  { %v2042_v48 = vsub.f32 1.0, %v3252_v39  ;;  %v2048_v50 = vmul.f32 %v3252_v39, %v1944_v27 }
0x2ce3   :  { %v2033_v40 = vpop.permute.xlu1 %2032 }
0x2ce4   :  { %v2035_v41 = vmul.f32 %v3252_v39, %v2033_v40 }
0x2ce6   :  { %2037 = vrot.lane.b32.xlu0 %v2035_v41, %s3337_s28 }
0x2cea   :  { %2059 = vperm.xlu0 %3152, %v2056_v42  }
0x2cf4   :  { %v2053_v47 = vpop.permute.xlu1 %2052 }
0x2d58   :  { %v2038_v43 = vpop.permute.xlu0 %2037 }
0x2d59   :  { %v2040_v44 = vadd.f32 %v2038_v43, %v1951_v34 }
0x2d5b   :  { %3253 = vtanh.f32 %v2040_v44 }
0x2d65   :  { %v3254_v46 = vpop.eup %3253 }
0x2d66   :  { %2044 = vrot.lane.b32.xlu1 %v3254_v46, %s3338_s5 }
0x2d69   :  { %v2060_v52 = vpop.permute.xlu0 %2059 }
0x2d6a   :  { %v2062_v54 = vmul.f32 %v2060_v52, %v1944_v27  ;;  %v3141_v27 = vpack.c.bf16 %v2432_v4, %v2431_v25 }
0x2dd8   :  { %v2045_v49 = vpop.permute.xlu1 %2044 }
0x2dd9   :  { %v2047_v51 = vmul.f32 %v2045_v49, %v2042_v48 }
0x2ddb   :  { %v2049_v53 = vadd.f32 %v2048_v50, %v2047_v51 }
0x2ddd   :  { %v2055_v55 = vmul.f32 %v2053_v47, %v2049_v53 }
0x2ddf   :  { %v2063_v56 = vadd.f32 %v2062_v54, %v2055_v55 }
0x2de1   :  { %2065 = vrot.lane.b32.xlu0 %v2063_v56, %s3338_s5 }
0x2e53   :  { %v2066_v57 = vpop.permute.xlu0 %2065 }
0x2e54   :  { %2068 = vst.msk [vmem:[#allocation2 + $0xc] sm:$0x3] %vm1228_vm2, %v2066_v57  ;;  %2976 = vmatmul.mubr.msk.f32.vlgmr.msra.gmra.mrb[18].mxu1 %vm57_vm1, %v2066_v57 }
0x2e55   :  { %3133 = vmatpush3.bf16.msra.mxu1 %v3615_v30  ;;  %2997 = vmatprep.mubr.msk.f32.mxu1 %vm3334_vm0, %v3335_v6  ;;  %v2070_v30 = vld [vmem:[%s3886_s1 + $0xe] sm:$0x3] }
0x2e56   :  { %3134 = vmatprep.subr.bf16.mxu1 %v3333_v3 }
0x2e59   :  { %3136 = vmatpush3.bf16.msra.mxu1 %v3621_v32 }
0x2f27   :  { %v2139_v58 = vpop.f32.mrb[18].mxu1 }
0x2f28   :  { %v2140_v59 = vadd.f32 %v3643_v45, %v2139_v58  ;;  %v2977_v60 = vpop.f32.mrb[19].mxu1 }
0x2f2a   :  { %2151 = vrot.lane.b32.xlu1 %v2140_v59, %s3337_s28  ;;  %v2143_v62 = vadd.f32 %v2140_v59, %v2070_v30 }
0x2f2c   :  { %v2664_v63 = vmul.f32 -1.442695, %v2143_v62 }
0x2f2e   :  { %2171 = vperm.xlu1 %3151, %v2069_v61   ;;  %3255 = vpow2.f32 %v2664_v63  ;;  %v2307_v63 = vld [vmem:[%s3887_s2 + $0x12] sm:$0x3] }
0x2f38   :  { %v3256_v0 = vpop.eup %3255 }
0x2f39   :  { %v2147_v32 = vadd.f32 1.0, %v3256_v0  ;;  %v2308_v0 = vld [vmem:[%s3886_s1 + $0x12] sm:$0x3] }
0x2f3b   :  { %3257 = vrcp.f32 %v2147_v32 }
0x2f45   :  { %v3258_v1 = vpop.eup %3257 }
0x2f46   :  { %v2161_v14 = vsub.f32 1.0, %v3258_v1  ;;  %v2167_v16 = vmul.f32 %v3258_v1, %v2063_v56 }
0x2f9c   :  { %v2152_v2 = vpop.permute.xlu1 %2151 }
0x2f9d   :  { %v2154_v5 = vmul.f32 %v3258_v1, %v2152_v2 }
0x2f9f   :  { %2156 = vrot.lane.b32.xlu0 %v2154_v5, %s3337_s28 }
0x2fa3   :  { %2178 = vperm.xlu0 %3152, %v2175_v8  }
0x2fad   :  { %v2172_v13 = vpop.permute.xlu1 %2171 }
0x3011   :  { %v2157_v9 = vpop.permute.xlu0 %2156 }
0x3012   :  { %v2159_v10 = vadd.f32 %v2157_v9, %v2070_v30 }
0x3014   :  { %3259 = vtanh.f32 %v2159_v10  ;;  %v2413_v10 = vsub.f32 1.0, %v2307_v63 }
0x301e   :  { %v3260_v12 = vpop.eup %3259 }
0x301f   :  { %2163 = vrot.lane.b32.xlu1 %v3260_v12, %s3338_s5 }
0x3022   :  { %v2179_v18 = vpop.permute.xlu0 %2178 }
0x3023   :  { %v2181_v20 = vmul.f32 %v2179_v18, %v2063_v56 }
0x3091   :  { %v2164_v15 = vpop.permute.xlu1 %2163 }
0x3092   :  { %v2166_v17 = vmul.f32 %v2164_v15, %v2161_v14  ;;  %v2669_v15 = vld [vmem:[%s3894_s9] ss:$0 sm:$0xff] }
0x3094   :  { %v2168_v19 = vadd.f32 %v2167_v16, %v2166_v17 }
0x3096   :  { %v2174_v21 = vmul.f32 %v2172_v13, %v2168_v19 }
0x3098   :  { %v2182_v22 = vadd.f32 %v2181_v20, %v2174_v21 }
0x309a   :  { %2184 = vrot.lane.b32.xlu0 %v2182_v22, %s3338_s5 }
0x310c   :  { %v2185_v26 = vpop.permute.xlu0 %2184 }
0x310d   :  { %2187 = vst.msk [vmem:[#allocation2 + $0xe] sm:$0x3] %vm1228_vm2, %v2185_v26  ;;  %2987 = vmatmul.mubr.msk.f32.vlgmr.msra.gmra.mrb[16].mxu0 %vm57_vm1, %v2185_v26 }
0x310e   :  { %3139 = vmatpush3.bf16.msra.mxu0 %v3138_v11  ;;  %3008 = vmatprep.mubr.msk.f32.mxu0 %vm3334_vm0, %v3335_v6 }
0x310f   :  { %3140 = vmatprep.subr.bf16.mxu0 %v3333_v3  ;;  %v2188_v3 = vld [vmem:[%s3887_s2 + $0x10] sm:$0x3] }
0x3110   :  { %v2294_v46 = vsub.f32 1.0, %v2188_v3 }
0x3112   :  { %3142 = vmatpush3.bf16.msra.mxu0 %v3141_v27 }
0x3114   :  { %v2427_v28 = vld [vmem:[#allocation2 + $0x8] sm:$0xff] }
0x3115   :  { %3009 = vmatmul.mubr.msk.f32.vlgmr.msra.gmra.mrb[18].mxu0 %vm57_vm1, %v2426_v7 }
0x3116   :  { %3011 = vmatprep.mubr.msk.f32.mxu0 %vm3334_vm0, %v3335_v6 }
0x3119   :  { %3012 = vmatmul.mubr.msk.f32.gmra.mrb[20].mxu0 %vm57_vm1, %v2427_v28 }
0x311a   :  { %3014 = vmatprep.mubr.msk.f32.mxu0 %vm3334_vm0, %v3335_v6  ;;  %v2189_v6 = vld [vmem:[%s3886_s1 + $0x10] sm:$0x3] }
0x31e0   :  { %v2258_v29 = vpop.f32.mrb[16].mxu0 }
0x31e1   :  { %v2259_v31 = vadd.f32 %v3643_v45, %v2258_v29  ;;  %v2988_v33 = vpop.f32.mrb[17].mxu0 }
0x31e3   :  { %2270 = vrot.lane.b32.xlu1 %v2259_v31, %s3337_s28  ;;  %v2262_v38 = vadd.f32 %v2259_v31, %v2189_v6 }
0x31e5   :  { %v2666_v39 = vmul.f32 -1.442695, %v2262_v38 }
0x31e7   :  { %2290 = vperm.xlu1 %3151, %v2188_v3   ;;  %3261 = vpow2.f32 %v2666_v39 }
0x31e8   :  { %v2515_v34 = vpop.f32.mrb[18].mxu0 }
0x31e9   :  { %v3010_v35 = vpop.f32.mrb[19].mxu0  ;;  %v2516_v16 = vadd.f32 %v2669_v15, %v2515_v34 }
0x31eb   :  { %v2530_v17 = vsel %vm2529_vm3, %v2516_v16, -inf }
0x31ec   :  { %v3816_v36 = vpop.f32.mrb[20].mxu0 }
0x31ed   :  { %v3013_v37 = vpop.f32.mrb[21].mxu0  ;;  %v2521_v26 = vadd.f32 %v2669_v15, %v3816_v36 }
0x31ef   :  { %v2533_v27 = vsel %vm2529_vm3, %v2521_v26, -inf }
0x31f1   :  { %v3262_v40 = vpop.eup %3261 }
0x31f2   :  { %v2266_v41 = vadd.f32 1.0, %v3262_v40 }
0x31f4   :  { %3263 = vrcp.f32 %v2266_v41 }
0x31fe   :  { %v3264_v42 = vpop.eup %3263 }
0x31ff   :  { %v2280_v51 = vsub.f32 1.0, %v3264_v42  ;;  %v2286_v53 = vmul.f32 %v3264_v42, %v2182_v22 }
0x3255   :  { %v2271_v43 = vpop.permute.xlu1 %2270 }
0x3256   :  { %v2273_v44 = vmul.f32 %v3264_v42, %v2271_v43 }
0x3258   :  { %2275 = vrot.lane.b32.xlu0 %v2273_v44, %s3337_s28 }
0x325c   :  { %2297 = vperm.xlu0 %3152, %v2294_v46  }
0x3266   :  { %v2291_v50 = vpop.permute.xlu1 %2290 }
0x32ca   :  { %v2276_v47 = vpop.permute.xlu0 %2275 }
0x32cb   :  { %v2278_v48 = vadd.f32 %v2276_v47, %v2189_v6 }
0x32cd   :  { %3265 = vtanh.f32 %v2278_v48  ;;  %v2570_v48 = vld [vmem:[%s3888_s3] sm:$0xff] }
0x32d7   :  { %v3266_v49 = vpop.eup %3265 }
0x32d8   :  { %2282 = vrot.lane.b32.xlu1 %v3266_v49, %s3338_s5 }
0x32db   :  { %v2298_v55 = vpop.permute.xlu0 %2297 }
0x32dc   :  { %v2300_v57 = vmul.f32 %v2298_v55, %v2182_v22 }
0x334a   :  { %v2283_v52 = vpop.permute.xlu1 %2282 }
0x334b   :  { %v2285_v54 = vmul.f32 %v2283_v52, %v2280_v51 }
0x334d   :  { %v2287_v56 = vadd.f32 %v2286_v53, %v2285_v54 }
0x334f   :  { %v2293_v58 = vmul.f32 %v2291_v50, %v2287_v56 }
0x3351   :  { %v2301_v59 = vadd.f32 %v2300_v57, %v2293_v58 }
0x3353   :  { %2303 = vrot.lane.b32.xlu0 %v2301_v59, %s3338_s5 }
0x33c5   :  { %v2304_v60 = vpop.permute.xlu0 %2303 }
0x33c6   :  { %2306 = vst.msk [vmem:[#allocation2 + $0x10] sm:$0x3] %vm1228_vm2, %v2304_v60  ;;  %2998 = vmatmul.mubr.msk.f32.vlgmr.msra.gmra.mrb[20].mxu1 %vm57_vm1, %v2304_v60 }
0x3499   :  { %v2377_v61 = vpop.f32.mrb[20].mxu1 }
0x349a   :  { %v2378_v30 = vadd.f32 %v3643_v45, %v2377_v61  ;;  %v2999_v62 = vpop.f32.mrb[21].mxu1  ;;  %v2571_v61 = vld [vmem:[%s3888_s3 + $0x8] sm:$0xff] }
0x349c   :  { %2389 = vrot.lane.b32.xlu1 %v2378_v30, %s3337_s28  ;;  %v2381_v32 = vadd.f32 %v2378_v30, %v2308_v0 }
0x349e   :  { %v2668_v1 = vmul.f32 -1.442695, %v2381_v32 }
0x34a0   :  { %2409 = vperm.xlu1 %3151, %v2307_v63   ;;  %3267 = vpow2.f32 %v2668_v1 }
0x34aa   :  { %v3268_v2 = vpop.eup %3267 }
0x34ab   :  { %v2385_v5 = vadd.f32 1.0, %v3268_v2 }
0x34ad   :  { %3269 = vrcp.f32 %v2385_v5  ;;  %v2572_v5 = vld [vmem:[%s3888_s3 + $0x10] sm:$0xf] }
0x34b7   :  { %v3270_v8 = vpop.eup %3269 }
0x34b8   :  { %v2399_v19 = vsub.f32 1.0, %v3270_v8  ;;  %v2405_v21 = vmul.f32 %v3270_v8, %v2301_v59 }
0x350e   :  { %v2390_v45 = vpop.permute.xlu1 %2389 }
0x350f   :  { %v2392_v9 = vmul.f32 %v3270_v8, %v2390_v45 }
0x3511   :  { %2394 = vrot.lane.b32.xlu0 %v2392_v9, %s3337_s28 }
0x3515   :  { %2416 = vperm.xlu0 %3152, %v2413_v10  }
0x351f   :  { %v2410_v18 = vpop.permute.xlu1 %2409 }
0x3583   :  { %v2395_v12 = vpop.permute.xlu0 %2394 }
0x3584   :  { %v2397_v13 = vadd.f32 %v2395_v12, %v2308_v0 }
0x3586   :  { %3271 = vtanh.f32 %v2397_v13 }
0x3590   :  { %v3272_v14 = vpop.eup %3271 }
0x3591   :  { %2401 = vrot.lane.b32.xlu1 %v3272_v14, %s3338_s5 }
0x3594   :  { %v2417_v23 = vpop.permute.xlu0 %2416 }
0x3595   :  { %v2419_v11 = vmul.f32 %v2417_v23, %v2301_v59 }
0x35b5   :  { %2531 = vmax.xlane.f32.xlu1 %v2530_v17 }
0x3603   :  { %v2402_v20 = vpop.permute.xlu1 %2401 }
0x3604   :  { %v2404_v22 = vmul.f32 %v2402_v20, %v2399_v19 }
0x3606   :  { %v2406_v24 = vadd.f32 %v2405_v21, %v2404_v22 }
0x3608   :  { %v2412_v25 = vmul.f32 %v2410_v18, %v2406_v24 }
0x360a   :  { %v2420_v4 = vadd.f32 %v2419_v11, %v2412_v25 }
0x360c   :  { %2422 = vrot.lane.b32.xlu0 %v2420_v4, %s3338_s5 }
0x362b   :  { %2534 = vmax.xlane.f32.xlu0 %v2533_v27 }
0x3642   :  { %v2532_v7 = vpop.xlane.xlu1 %2531 }
0x3643   :  { %v2540_v28 = vsub.f32 %v2516_v16, %v2532_v7 }
0x3645   :  { %v2543_v29 = vmul.f32 1.442695, %v2540_v28 }
0x3647   :  { %3273 = vpow2.f32 %v2543_v29 }
0x3651   :  { %v3274_v31 = vpop.eup %3273 }
0x3652   :  { %v2549_v33 = vsel %vm2529_vm3, %v3274_v31, 0.0 }
0x3653   :  { %2550 = vadd.xlane.f32.xlu1 %v2549_v33 }
0x367e   :  { %v2423_v3 = vpop.permute.xlu0 %2422 }
0x367f   :  { %2425 = vst.msk [vmem:[#allocation2 + $0x12] sm:$0x3] %vm1228_vm2, %v2423_v3 }
0x3686   :  { %v2428_v34 = vld [vmem:[#allocation2 + $0x10] sm:$0xf] }
0x3687   :  { %3015 = vmatmul.mubr.msk.f32.gmra.mrb[22].mxu0 %vm57_vm1, %v2428_v34 }
0x36b8   :  { %v2535_v36 = vpop.xlane.xlu0 %2534 }
0x36b9   :  { %v2541_v37 = vsub.f32 %v2521_v26, %v2535_v36 }
0x36bb   :  { %v2545_v6 = vmul.f32 1.442695, %v2541_v37 }
0x36e0   :  { %v2551_v35 = vpop.xlane.xlu1 %2550 }
0x36e1   :  { %3275 = vlog2.f32 %v2551_v35 }
0x36e2   :  { %3277 = vpow2.f32 %v2545_v6 }
0x36eb   :  { %v3276_v38 = vpop.eup %3275 }
0x36ec   :  { %v2559_v39 = vmul.f32 0.6931472, %v3276_v38  ;;  %v3278_v47 = vpop.eup %3277 }
0x36ed   :  { %v2552_v49 = vsel %vm2529_vm3, %v3278_v47, 0.0 }
0x36ee   :  { %v2564_v40 = vadd.f32 %v2559_v39, %v2532_v7 }
0x36f0   :  { %v2567_v46 = vsub.f32 %v2516_v16, %v2564_v40 }
0x36f2   :  { %v2573_v50 = vmul.f32 %v2570_v48, %v2567_v46 }
0x36f4   :  { %v2576_v51 = vsel %vm2529_vm3, %v2573_v50, 0.0 }
0x375a   :  { %v2525_v41 = vpop.f32.mrb[22].mxu0 }
0x375b   :  { %v2526_v42 = vadd.f32 %v2669_v15, %v2525_v41  ;;  %v3016_v43 = vpop.f32.mrb[23].mxu0 }
0x375d   :  { %v2537_v44 = vsel %vm2536_vm4, %v2526_v42, -inf }
0x375e   :  { %2538 = vmax.xlane.f32.xlu0 %v2537_v44 }
0x3762   :  { %2553 = vadd.xlane.f32.xlu0 %v2552_v49 }
0x3766   :  { %2577 = vadd.xlane.f32.xlu0 %v2576_v51 }
0x37eb   :  { %v2539_v52 = vpop.xlane.xlu0 %2538 }
0x37ec   :  { %v2542_v53 = vsub.f32 %v2526_v42, %v2539_v52 }
0x37ee   :  { %v2547_v54 = vmul.f32 1.442695, %v2542_v53 }
0x37ef   :  { %v2554_v55 = vpop.xlane.xlu0 %2553 }
0x37f0   :  { %3279 = vpow2.f32 %v2547_v54 }
0x37f1   :  { %3281 = vlog2.f32 %v2554_v55 }
0x37fa   :  { %v3280_v56 = vpop.eup %3279 }
0x37fb   :  { %v3282_v57 = vpop.eup %3281  ;;  %v2555_v58 = vsel %vm2536_vm4, %v3280_v56, 0.0 }
0x37fc   :  { %v2561_v59 = vmul.f32 0.6931472, %v3282_v57  ;;  %2556 = vadd.xlane.f32.xlu1 %v2555_v58 }
0x37fe   :  { %v2565_v60 = vadd.f32 %v2561_v59, %v2535_v36 }
0x3800   :  { %v2568_v30 = vsub.f32 %v2521_v26, %v2565_v60 }
0x3802   :  { %v2574_v62 = vmul.f32 %v2571_v61, %v2568_v30 }
0x3804   :  { %v2579_v63 = vsel %vm2529_vm3, %v2574_v62, 0.0 }
0x3805   :  { %2580 = vadd.xlane.f32.xlu1 %v2579_v63 }
0x3889   :  { %v2557_v0 = vpop.xlane.xlu1 %2556 }
0x388a   :  { %3283 = vlog2.f32 %v2557_v0 }
0x3894   :  { %v3284_v32 = vpop.eup %3283 }
0x3895   :  { %v2563_v1 = vmul.f32 0.6931472, %v3284_v32 }
0x3897   :  { %v2566_v2 = vadd.f32 %v2563_v1, %v2539_v52 }
0x3899   :  { %v2569_v8 = vsub.f32 %v2526_v42, %v2566_v2 }
0x389b   :  { %v2575_v45 = vmul.f32 %v2572_v5, %v2569_v8 }
0x389d   :  { %v2582_v9 = vsel %vm2536_vm4, %v2575_v45, 0.0 }
0x389e   :  { %2583 = vadd.xlane.f32.xlu0 %v2582_v9 }
0x389f   :  { %3296 = shalt.err (!%p3293_p4)
}
0x38a0   :  { %s3297_s27 = scalar_lea.hbm %s3895_s10, 32 }
0x38a1   :  { %p3298_p5 = scmp.ne.s32.totalorder %s3895_s10, %s3297_s27  ;;  %p3301_p6 = scmp.lt.u32.totalorder %s3297_s27, %s3895_s10 }
0x38a3   :  { %p3303_p7 = pnand %p3301_p6, %p3298_p5 }
0x38a5   :  { %3306 = shalt.err (!%p3303_p7)
}
0x38a6   :  { %2609 = dma.vmem_to_hbm [thread:$0]  %s2607_s24, 32, %s3895_s10, [#allocation4]   ;;  %v2581_v10 = vpop.xlane.xlu1 %2580  ;;  %v2578_v12 = vpop.xlane.xlu0 %2577  ;;  %vm2589_vm5 = vcmask 1043456   ;;  %vm2598_vm6 = vcmask 0  }
0x38a7   :  { %v2586_v13 = vsub.f32 0.0, %v2581_v10  ;;  %v2585_v14 = vsub.f32 0.0, %v2578_v12  ;;  %s3340_s14 = smov [#allocation5]  }
0x38a8   :  { %s2616_s8 = sshll.u32 %s3340_s14, 4  ;;  %s2617_s8 = int_to_ptr.vmem [resolvable:$true] %s2616_s8 }
0x38a9   :  { %v2588_v17 = vadd.f32 %v2586_v13, %v2585_v14  ;;  %s3307_s10 = scalar_lea.vmem %s2617_s8, 16  ;;  %s3311_s15 = scalar_lea.vmem %s2617_s8, 32 }
0x38aa   :  { %p3308_p8 = scmp.ne.s32.totalorder %s2617_s8, %s3307_s10  ;;  %p3312_p9 = scmp.lt.s32.totalorder %s2617_s8, %s2617_s8 }
0x38ab   :  { %p3313_p10 = scmp.lt.s32.totalorder %s3311_s15, %s3307_s10 }
0x38ad   :  { %p3314_p11 = por %p3313_p10, %p3312_p9 }
0x38af   :  { %p3315_p12 = pnand %p3314_p11, %p3308_p8 }
0x392b   :  { %v2584_v15 = vpop.xlane.xlu0 %2583 }
0x392c   :  { %v2587_v16 = vsub.f32 0.0, %v2584_v15 }
0x392e   :  { %v2590_v18 = vsel %vm2589_vm5, %v2587_v16, 0.0 }
0x392f   :  { %v2591_v19 = vadd.f32 %v2590_v18, %v2588_v17 }
0x3931   :  { %v2592_v20 = vrot.slane %v2591_v19, 4 }
0x3933   :  { %v2593_v21 = vadd.f32 %v2592_v20, %v2591_v19 }
0x3935   :  { %v2594_v22 = vrot.slane %v2593_v21, 2 }
0x3937   :  { %v2595_v23 = vadd.f32 %v2594_v22, %v2593_v21 }
0x3939   :  { %v2596_v24 = vrot.slane %v2595_v23, 1 }
0x393b   :  { %v2597_v11 = vadd.f32 %v2596_v24, %v2595_v23 }
0x393d   :  { %2599 = vst.msk [vmem:[#allocation5] sm:$0x1] %vm2598_vm6, %v2597_v11 }
0x393e   :  { %3318 = shalt.err (!%p3315_p12)
}
0x393f   :  { %s3319_s17 = scalar_lea.hbm %s3896_s11, 16 }
0x3940   :  { %p3320_p13 = scmp.ne.s32.totalorder %s3896_s11, %s3319_s17  ;;  %p3323_p0 = scmp.lt.u32.totalorder %s3319_s17, %s3896_s11 }
0x3942   :  { %p3325_p1 = pnand %p3323_p0, %p3320_p13 }
0x3944   :  { %3328 = shalt.err (!%p3325_p1)
}
0x3945   :  { %2619 = dma.vmem_to_hbm [thread:$0]  %s2617_s8, 16, %s3896_s11, [#allocation6]  }
0x3946   :  { %3329 = dma.done.wait [#allocation4], 32  }
0x3947   :  { %3330 = vsyncadd [#allocation4], 4294967264 }
0x3948   :  { %3331 = dma.done.wait [#allocation6], 16  }
0x3949   :  { %3332 = vsyncadd [#allocation6], 4294967280 }
0x394a   :  { %2626 = vsyncpa [#allocation4], 1 }
0x394b   :  { %2627 = vsyncpa [#allocation6], 1 }

</bundles_post_ra>
